<compile_context>
chip_gen: v7x
topology: tpu7x:2x2x1
jax: 0.10.0
libtpu: 0.0.40
codegen_flags: <defaults>
</compile_context>

<pallas_src>
import jax
import jax.numpy as jnp
import numpy as np
from jax.experimental import pallas as pl
from jax.experimental.pallas import tpu as pltpu

OBS_DIM = 8                 # env.observation_space.shape[0] for LunarLander-v2
ACT_DIM = 4                 # env.action_space.n for LunarLander-v2
IN_DIM = OBS_DIM + ACT_DIM  # 12 — Residue2 concatenates state and action
HIDDEN = 256
W4 = 4 * HIDDEN             # packed slab row width (1024)
N_BLOCKS = 3
AUX_ROWS = 1 + 3 * N_BLOCKS  # row 0: head bias / value weight / value bias; 3 rows per block
LN_EPS = 1e-5
GRID_BATCH_THRESHOLD = 256   # below this, run gridless (single TC, fully resident)


# --------------------------------------------------------------------------- kernel

def _layernorm(x, g, b):
    # One-pass stats: mean(x) and mean(x*x) are independent cross-lane reductions.
    mu = jnp.mean(x, axis=-1, keepdims=True)
    msq = jnp.mean(x * x, axis=-1, keepdims=True)
    var = jnp.maximum(msq - mu * mu, 0.0)
    return (x - mu) * jax.lax.rsqrt(var + LN_EPS) * g + b


def critic_kernel(sa_ref, head_w_ref, w_ref, aux_ref, out_ref):
    # sa_ref:     (Bt, 12)           concat([state, action])
    # head_w_ref: (12, 256)          headfc weight (pre-transposed: y = x @ W)
    # w_ref:      (3, 256, 1024)     per block: [w1 | wres | w2 | w3] along the output dim
    # aux_ref:    (10, 1024)         row 0: [head_b | value_w | value_b(bcast) | 0]
    #                                rows 1+3b: [b1|bres|b2|b3], 2+3b: [g1|g2|g3|0], 3+3b: [be1|be2|be3|0]
    sa = sa_ref[...]

    bh = aux_ref[0:1, 0:HIDDEN]
    h = jnp.maximum(
        jnp.dot(sa, head_w_ref[...], preferred_element_type=jnp.float32) + bh, 0.0)
    identity0 = h                       # Residue2 head identity, used at the very end
    x = h

    for blk in range(N_BLOCKS):
        br = 1 + 3 * blk                # bias row
        gr = 2 + 3 * blk                # gamma row
        er = 3 + 3 * blk                # beta row

        w1res = w_ref[blk, :, 0:2 * HIDDEN]          # (256, 512): [w1 | wres]
        w2 = w_ref[blk, :, 2 * HIDDEN:3 * HIDDEN]    # (256, 256)
        w3 = w_ref[blk, :, 3 * HIDDEN:4 * HIDDEN]    # (256, 256)

        b1res = aux_ref[br:br + 1, 0:2 * HIDDEN]     # (1, 512): [b1 | bres]
        b2 = aux_ref[br:br + 1, 2 * HIDDEN:3 * HIDDEN]
        b3 = aux_ref[br:br + 1, 3 * HIDDEN:4 * HIDDEN]
        g1 = aux_ref[gr:gr + 1, 0:HIDDEN]
        g2 = aux_ref[gr:gr + 1, HIDDEN:2 * HIDDEN]
        g3 = aux_ref[gr:gr + 1, 2 * HIDDEN:3 * HIDDEN]
        be1 = aux_ref[er:er + 1, 0:HIDDEN]
        be2 = aux_ref[er:er + 1, HIDDEN:2 * HIDDEN]
        be3 = aux_ref[er:er + 1, 2 * HIDDEN:3 * HIDDEN]

        # Fused lin1 + lin_res (shared input x) — one MXU dot instead of two.
        y = jnp.dot(x, w1res, preferred_element_type=jnp.float32) + b1res
        o = _layernorm(jnp.maximum(y[:, 0:HIDDEN], 0.0), g1, be1)
        idn = y[:, HIDDEN:2 * HIDDEN]                # lin_res(x), no activation

        o = _layernorm(
            jnp.maximum(jnp.dot(o, w2, preferred_element_type=jnp.float32) + b2, 0.0),
            g2, be2)
        o = _layernorm(
            jnp.maximum(jnp.dot(o, w3, preferred_element_type=jnp.float32) + b3, 0.0),
            g3, be3)
        x = jnp.maximum(o + idn, 0.0)

    # value head: (x + identity0) @ Wv + bv, done as a VPU multiply + lane reduction
    # (avoids an N=1 MXU tile).
    wv = aux_ref[0:1, HIDDEN:2 * HIDDEN]             # (1, 256) value weight
    bv = aux_ref[0:1, 2 * HIDDEN:2 * HIDDEN + 1]     # (1, 1)   value bias
    z = x + identity0
    out_ref[...] = jnp.sum(z * wv, axis=-1, keepdims=True) + bv


# --------------------------------------------------------------------------- wrapper

@jax.jit
def critic_forward(state, action, packed):
    """state: (B, OBS_DIM) f32; action: (B, ACT_DIM) f32; packed = (head_w, w_slab, aux)."""
    head_w, w_slab, aux = packed
    sa = jnp.concatenate([state, action], axis=-1).astype(jnp.float32)
    b = sa.shape[0]

    if b >= GRID_BATCH_THRESHOLD:
        # Large batch: 1-D parallel grid over 128-row batch blocks (engages both v7x TCs).
        bt = 128
        b_pad = ((b + bt - 1) // bt) * bt
        sa_p = jnp.pad(sa, ((0, b_pad - b), (0, 0)))
        out = pl.pallas_call(
            critic_kernel,
            out_shape=jax.ShapeDtypeStruct((b_pad, 1), jnp.float32),
            grid=(b_pad // bt,),
            in_specs=[
                pl.BlockSpec((bt, IN_DIM), lambda i: (i, 0)),
                pl.BlockSpec((IN_DIM, HIDDEN), lambda i: (0, 0)),
                pl.BlockSpec((N_BLOCKS, HIDDEN, W4), lambda i: (0, 0, 0)),
                pl.BlockSpec((AUX_ROWS, W4), lambda i: (0, 0)),
            ],
            out_specs=pl.BlockSpec((bt, 1), lambda i: (i, 0)),
            compiler_params=pltpu.CompilerParams(dimension_semantics=("parallel",)),
        )(sa_p, head_w, w_slab, aux)
    else:
        # Small batch: gridless, everything VMEM-resident, 4 input DMAs total.
        b_pad = max(8, ((b + 7) // 8) * 8)
        sa_p = jnp.pad(sa, ((0, b_pad - b), (0, 0)))
        out = pl.pallas_call(
            critic_kernel,
            out_shape=jax.ShapeDtypeStruct((b_pad, 1), jnp.float32),
            in_specs=[pl.BlockSpec(memory_space=pltpu.MemorySpace.VMEM)] * 4,
            out_specs=pl.BlockSpec(memory_space=pltpu.MemorySpace.VMEM),
        )(sa_p, head_w, w_slab, aux)

    return out[:b]


# --------------------------------------------------------------------------- params (plain JAX glue)

def _init_linear(key, in_f, out_f):
    # PyTorch nn.Linear default: U(-1/sqrt(in_f), 1/sqrt(in_f)) for W and b.
    kw, kb = jax.random.split(key)
    bound = 1.0 / np.sqrt(in_f)
    w = jax.random.uniform(kw, (in_f, out_f), jnp.float32, -bound, bound)  # pre-transposed (in, out)
    b = jax.random.uniform(kb, (out_f,), jnp.float32, -bound, bound)
    return w, b


def _init_block(key):
    k1, k2, k3, k4, kg, kbe = jax.random.split(key, 6)
    w1, b1 = _init_linear(k1, HIDDEN, HIDDEN)
    w2, b2 = _init_linear(k2, HIDDEN, HIDDEN)
    w3, b3 = _init_linear(k3, HIDDEN, HIDDEN)
    wres, bres = _init_linear(k4, HIDDEN, HIDDEN)
    # PyTorch LayerNorm init is gamma=1 / beta=0; perturb so the test exercises the affine path.
    g = 1.0 + 0.1 * jax.random.normal(kg, (3, HIDDEN), jnp.float32)
    be = 0.1 * jax.random.normal(kbe, (3, HIDDEN), jnp.float32)
    return dict(w1=w1, b1=b1, w2=w2, b2=b2, w3=w3, b3=b3, wres=wres, bres=bres,
                g1=g[0], g2=g[1], g3=g[2], be1=be[0], be2=be[1], be3=be[2])


def init_critic_params(key):
    kh, k1, k2, k3, kv = jax.random.split(key, 5)
    head_w, head_b = _init_linear(kh, IN_DIM, HIDDEN)
    blocks = [_init_block(k) for k in (k1, k2, k3)]
    value_w2, value_b = _init_linear(kv, HIDDEN, 1)
    return dict(head_w=head_w, head_b=head_b, blocks=blocks,
                value_w=value_w2[:, 0], value_b=value_b[0])


def pack_params(p):
    """Pack the 44 raw tensors into 3 slabs -> 4 DMAs per kernel call."""
    w_slab = jnp.stack(
        [jnp.concatenate([blk['w1'], blk['wres'], blk['w2'], blk['w3']], axis=1)
         for blk in p['blocks']], axis=0)                          # (3, 256, 1024)
    z = jnp.zeros((HIDDEN,), jnp.float32)
    rows = [jnp.concatenate([p['head_b'], p['value_w'],
                             jnp.full((HIDDEN,), p['value_b'], jnp.float32), z])]
    for blk in p['blocks']:
        rows.append(jnp.concatenate([blk['b1'], blk['bres'], blk['b2'], blk['b3']]))
        rows.append(jnp.concatenate([blk['g1'], blk['g2'], blk['g3'], z]))
        rows.append(jnp.concatenate([blk['be1'], blk['be2'], blk['be3'], z]))
    aux = jnp.stack(rows, axis=0)                                  # (10, 1024)
    return p['head_w'], w_slab, aux


# --------------------------------------------------------------------------- pure-JAX reference

def _ref_ln(x, g, b):
    mu = jnp.mean(x, axis=-1, keepdims=True)
    var = jnp.mean((x - mu) ** 2, axis=-1, keepdims=True)
    return (x - mu) / jnp.sqrt(var + LN_EPS) * g + b


def critic_ref(state, action, p):
    hp = jax.lax.Precision.HIGHEST
    x = jnp.concatenate([state, action], axis=-1)
    h = jax.nn.relu(jnp.dot(x, p['head_w'], precision=hp) + p['head_b'])
    idn0 = h
    out = h
    for blk in p['blocks']:
        o = _ref_ln(jax.nn.relu(jnp.dot(out, blk['w1'], precision=hp) + blk['b1']),
                    blk['g1'], blk['be1'])
        o = _ref_ln(jax.nn.relu(jnp.dot(o, blk['w2'], precision=hp) + blk['b2']),
                    blk['g2'], blk['be2'])
        o = _ref_ln(jax.nn.relu(jnp.dot(o, blk['w3'], precision=hp) + blk['b3']),
                    blk['g3'], blk['be3'])
        out = jax.nn.relu(o + jnp.dot(out, blk['wres'], precision=hp) + blk['bres'])
    z = out + idn0
    return jnp.dot(z, p['value_w'][:, None], precision=hp) + p['value_b']


# --------------------------------------------------------------------------- demo / validation

if __name__ == "__main__":
    key = jax.random.PRNGKey(0)
    kp, ks, ka, ks2, ka2 = jax.random.split(key, 5)

    params = init_critic_params(kp)
    packed = pack_params(params)

    # Small batch -> gridless, fully VMEM-resident path.
    b = 2
    state = jax.random.normal(ks, (b, OBS_DIM), jnp.float32)
    action = jax.nn.softmax(jax.random.normal(ka, (b, ACT_DIM), jnp.float32), axis=-1)
    out = jax.block_until_ready(critic_forward(state, action, packed))
    ref = critic_ref(state, action, params)
    np.testing.assert_allclose(np.asarray(out), np.asarray(ref), rtol=1e-4, atol=1e-4)
    assert out.shape == (b, 1)

    # Larger batch -> batch-parallel grid path (both TensorCores on v7x).
    b2 = 300
    state2 = jax.random.normal(ks2, (b2, OBS_DIM), jnp.float32)
    action2 = jax.nn.softmax(jax.random.normal(ka2, (b2, ACT_DIM), jnp.float32), axis=-1)
    out2 = jax.block_until_ready(critic_forward(state2, action2, packed))
    ref2 = critic_ref(state2, action2, params)
    np.testing.assert_allclose(np.asarray(out2), np.asarray(ref2), rtol=1e-4, atol=1e-4)
    assert out2.shape == (b2, 1)

    print("KERNEL_OK")
</pallas_src>

<mosaic_0001>
module attributes {stable_mosaic.version = 11 : i64} {
  func.func @critic_kernel(%arg0: memref<8x12xf32, #tpu.memory_space<vmem>>, %arg1: memref<12x256xf32, #tpu.memory_space<vmem>>, %arg2: memref<3x256x1024xf32, #tpu.memory_space<vmem>>, %arg3: memref<10x1024xf32, #tpu.memory_space<vmem>>, %arg4: memref<8x1xf32, #tpu.memory_space<vmem>>) attributes {dimension_semantics = [], scalar_prefetch = 0 : i64, scratch_operands = 0 : i64, tpu.core_type = #tpu.core_type<tc>} {
    %c0 = arith.constant 0 : index
    %c0_0 = arith.constant 0 : index
    %0 = vector.load %arg0[%c0, %c0_0] : memref<8x12xf32, #tpu.memory_space<vmem>>, vector<8x12xf32>
    %c0_1 = arith.constant 0 : index
    %c0_2 = arith.constant 0 : index
    %1 = vector.load %arg3[%c0_1, %c0_2] : memref<10x1024xf32, #tpu.memory_space<vmem>>, vector<1x256xf32>
    %c0_3 = arith.constant 0 : index
    %c0_4 = arith.constant 0 : index
    %2 = vector.load %arg1[%c0_3, %c0_4] : memref<12x256xf32, #tpu.memory_space<vmem>>, vector<12x256xf32>
    %cst = arith.constant dense<0.000000e+00> : vector<8x256xf32>
    %3 = tpu.matmul %0, %2, %cst {dimension_numbers = #tpu.dot_dimension_numbers<[1], [0], [0], [1], [0, 0, 1, 1], [], []>} : vector<8x12xf32>, vector<12x256xf32>, vector<8x256xf32> -> vector<8x256xf32>
    %4 = vector.broadcast %1 : vector<1x256xf32> to vector<8x256xf32>
    %5 = arith.addf %3, %4 : vector<8x256xf32>
    %cst_5 = arith.constant 0.000000e+00 : f32
    %6 = vector.broadcast %cst_5 : f32 to vector<8x256xf32>
    %7 = arith.maximumf %5, %6 : vector<8x256xf32>
    %c0_6 = arith.constant 0 : index
    %c0_7 = arith.constant 0 : index
    %c0_8 = arith.constant 0 : index
    %8 = vector.load %arg2[%c0_6, %c0_7, %c0_8] : memref<3x256x1024xf32, #tpu.memory_space<vmem>>, vector<1x256x512xf32>
    %9 = vector.shape_cast %8 : vector<1x256x512xf32> to vector<256x512xf32>
    %c0_9 = arith.constant 0 : index
    %c0_10 = arith.constant 0 : index
    %c512 = arith.constant 512 : index
    %10 = vector.load %arg2[%c0_9, %c0_10, %c512] : memref<3x256x1024xf32, #tpu.memory_space<vmem>>, vector<1x256x256xf32>
    %11 = vector.shape_cast %10 : vector<1x256x256xf32> to vector<256x256xf32>
    %c0_11 = arith.constant 0 : index
    %c0_12 = arith.constant 0 : index
    %c768 = arith.constant 768 : index
    %12 = vector.load %arg2[%c0_11, %c0_12, %c768] : memref<3x256x1024xf32, #tpu.memory_space<vmem>>, vector<1x256x256xf32>
    %13 = vector.shape_cast %12 : vector<1x256x256xf32> to vector<256x256xf32>
    %c1 = arith.constant 1 : index
    %c0_13 = arith.constant 0 : index
    %14 = vector.load %arg3[%c1, %c0_13] : memref<10x1024xf32, #tpu.memory_space<vmem>>, vector<1x512xf32>
    %c1_14 = arith.constant 1 : index
    %c512_15 = arith.constant 512 : index
    %15 = vector.load %arg3[%c1_14, %c512_15] : memref<10x1024xf32, #tpu.memory_space<vmem>>, vector<1x256xf32>
    %c1_16 = arith.constant 1 : index
    %c768_17 = arith.constant 768 : index
    %16 = vector.load %arg3[%c1_16, %c768_17] : memref<10x1024xf32, #tpu.memory_space<vmem>>, vector<1x256xf32>
    %c2 = arith.constant 2 : index
    %c0_18 = arith.constant 0 : index
    %17 = vector.load %arg3[%c2, %c0_18] : memref<10x1024xf32, #tpu.memory_space<vmem>>, vector<1x256xf32>
    %c2_19 = arith.constant 2 : index
    %c256 = arith.constant 256 : index
    %18 = vector.load %arg3[%c2_19, %c256] : memref<10x1024xf32, #tpu.memory_space<vmem>>, vector<1x256xf32>
    %c2_20 = arith.constant 2 : index
    %c512_21 = arith.constant 512 : index
    %19 = vector.load %arg3[%c2_20, %c512_21] : memref<10x1024xf32, #tpu.memory_space<vmem>>, vector<1x256xf32>
    %c3 = arith.constant 3 : index
    %c0_22 = arith.constant 0 : index
    %20 = vector.load %arg3[%c3, %c0_22] : memref<10x1024xf32, #tpu.memory_space<vmem>>, vector<1x256xf32>
    %c3_23 = arith.constant 3 : index
    %c256_24 = arith.constant 256 : index
    %21 = vector.load %arg3[%c3_23, %c256_24] : memref<10x1024xf32, #tpu.memory_space<vmem>>, vector<1x256xf32>
    %c3_25 = arith.constant 3 : index
    %c512_26 = arith.constant 512 : index
    %22 = vector.load %arg3[%c3_25, %c512_26] : memref<10x1024xf32, #tpu.memory_space<vmem>>, vector<1x256xf32>
    %cst_27 = arith.constant dense<0.000000e+00> : vector<8x512xf32>
    %23 = tpu.matmul %7, %9, %cst_27 {dimension_numbers = #tpu.dot_dimension_numbers<[1], [0], [0], [1], [0, 0, 1, 1], [], []>} : vector<8x256xf32>, vector<256x512xf32>, vector<8x512xf32> -> vector<8x512xf32>
    %24 = vector.broadcast %14 : vector<1x512xf32> to vector<8x512xf32>
    %25 = arith.addf %23, %24 : vector<8x512xf32>
    %26 = vector.extract_strided_slice %25 {offsets = [0, 0], sizes = [8, 256], strides = [1, 1]} : vector<8x512xf32> to vector<8x256xf32>
    %cst_28 = arith.constant 0.000000e+00 : f32
    %27 = vector.broadcast %cst_28 : f32 to vector<8x256xf32>
    %28 = arith.maximumf %26, %27 : vector<8x256xf32>
    %cst_29 = arith.constant dense<0.000000e+00> : vector<8xf32>
    %29 = vector.multi_reduction <add>, %28, %cst_29 [1] : vector<8x256xf32> to vector<8xf32>
    %30 = vector.shape_cast %29 : vector<8xf32> to vector<8x1xf32>
    %cst_30 = arith.constant 2.560000e+02 : f32
    %31 = vector.broadcast %cst_30 : f32 to vector<8x1xf32>
    %32 = arith.divf %30, %31 : vector<8x1xf32>
    %33 = arith.mulf %28, %28 : vector<8x256xf32>
    %cst_31 = arith.constant dense<0.000000e+00> : vector<8xf32>
    %34 = vector.multi_reduction <add>, %33, %cst_31 [1] : vector<8x256xf32> to vector<8xf32>
    %35 = vector.shape_cast %34 : vector<8xf32> to vector<8x1xf32>
    %cst_32 = arith.constant 2.560000e+02 : f32
    %36 = vector.broadcast %cst_32 : f32 to vector<8x1xf32>
    %37 = arith.divf %35, %36 : vector<8x1xf32>
    %38 = arith.mulf %32, %32 : vector<8x1xf32>
    %39 = arith.subf %37, %38 : vector<8x1xf32>
    %cst_33 = arith.constant 0.000000e+00 : f32
    %40 = vector.broadcast %cst_33 : f32 to vector<8x1xf32>
    %41 = arith.maximumf %39, %40 : vector<8x1xf32>
    %42 = vector.broadcast %32 : vector<8x1xf32> to vector<8x256xf32>
    %43 = arith.subf %28, %42 : vector<8x256xf32>
    %cst_34 = arith.constant 9.99999974E-6 : f32
    %44 = vector.broadcast %cst_34 : f32 to vector<8x1xf32>
    %45 = arith.addf %41, %44 : vector<8x1xf32>
    %46 = math.rsqrt %45 : vector<8x1xf32>
    %47 = vector.broadcast %46 : vector<8x1xf32> to vector<8x256xf32>
    %48 = arith.mulf %43, %47 : vector<8x256xf32>
    %49 = vector.broadcast %17 : vector<1x256xf32> to vector<8x256xf32>
    %50 = arith.mulf %48, %49 : vector<8x256xf32>
    %51 = vector.broadcast %20 : vector<1x256xf32> to vector<8x256xf32>
    %52 = arith.addf %50, %51 : vector<8x256xf32>
    %53 = vector.extract_strided_slice %25 {offsets = [0, 256], sizes = [8, 256], strides = [1, 1]} : vector<8x512xf32> to vector<8x256xf32>
    %cst_35 = arith.constant dense<0.000000e+00> : vector<8x256xf32>
    %54 = tpu.matmul %52, %11, %cst_35 {dimension_numbers = #tpu.dot_dimension_numbers<[1], [0], [0], [1], [0, 0, 1, 1], [], []>} : vector<8x256xf32>, vector<256x256xf32>, vector<8x256xf32> -> vector<8x256xf32>
    %55 = vector.broadcast %15 : vector<1x256xf32> to vector<8x256xf32>
    %56 = arith.addf %54, %55 : vector<8x256xf32>
    %cst_36 = arith.constant 0.000000e+00 : f32
    %57 = vector.broadcast %cst_36 : f32 to vector<8x256xf32>
    %58 = arith.maximumf %56, %57 : vector<8x256xf32>
    %cst_37 = arith.constant dense<0.000000e+00> : vector<8xf32>
    %59 = vector.multi_reduction <add>, %58, %cst_37 [1] : vector<8x256xf32> to vector<8xf32>
    %60 = vector.shape_cast %59 : vector<8xf32> to vector<8x1xf32>
    %cst_38 = arith.constant 2.560000e+02 : f32
    %61 = vector.broadcast %cst_38 : f32 to vector<8x1xf32>
    %62 = arith.divf %60, %61 : vector<8x1xf32>
    %63 = arith.mulf %58, %58 : vector<8x256xf32>
    %cst_39 = arith.constant dense<0.000000e+00> : vector<8xf32>
    %64 = vector.multi_reduction <add>, %63, %cst_39 [1] : vector<8x256xf32> to vector<8xf32>
    %65 = vector.shape_cast %64 : vector<8xf32> to vector<8x1xf32>
    %cst_40 = arith.constant 2.560000e+02 : f32
    %66 = vector.broadcast %cst_40 : f32 to vector<8x1xf32>
    %67 = arith.divf %65, %66 : vector<8x1xf32>
    %68 = arith.mulf %62, %62 : vector<8x1xf32>
    %69 = arith.subf %67, %68 : vector<8x1xf32>
    %cst_41 = arith.constant 0.000000e+00 : f32
    %70 = vector.broadcast %cst_41 : f32 to vector<8x1xf32>
    %71 = arith.maximumf %69, %70 : vector<8x1xf32>
    %72 = vector.broadcast %62 : vector<8x1xf32> to vector<8x256xf32>
    %73 = arith.subf %58, %72 : vector<8x256xf32>
    %cst_42 = arith.constant 9.99999974E-6 : f32
    %74 = vector.broadcast %cst_42 : f32 to vector<8x1xf32>
    %75 = arith.addf %71, %74 : vector<8x1xf32>
    %76 = math.rsqrt %75 : vector<8x1xf32>
    %77 = vector.broadcast %76 : vector<8x1xf32> to vector<8x256xf32>
    %78 = arith.mulf %73, %77 : vector<8x256xf32>
    %79 = vector.broadcast %18 : vector<1x256xf32> to vector<8x256xf32>
    %80 = arith.mulf %78, %79 : vector<8x256xf32>
    %81 = vector.broadcast %21 : vector<1x256xf32> to vector<8x256xf32>
    %82 = arith.addf %80, %81 : vector<8x256xf32>
    %cst_43 = arith.constant dense<0.000000e+00> : vector<8x256xf32>
    %83 = tpu.matmul %82, %13, %cst_43 {dimension_numbers = #tpu.dot_dimension_numbers<[1], [0], [0], [1], [0, 0, 1, 1], [], []>} : vector<8x256xf32>, vector<256x256xf32>, vector<8x256xf32> -> vector<8x256xf32>
    %84 = vector.broadcast %16 : vector<1x256xf32> to vector<8x256xf32>
    %85 = arith.addf %83, %84 : vector<8x256xf32>
    %cst_44 = arith.constant 0.000000e+00 : f32
    %86 = vector.broadcast %cst_44 : f32 to vector<8x256xf32>
    %87 = arith.maximumf %85, %86 : vector<8x256xf32>
    %cst_45 = arith.constant dense<0.000000e+00> : vector<8xf32>
    %88 = vector.multi_reduction <add>, %87, %cst_45 [1] : vector<8x256xf32> to vector<8xf32>
    %89 = vector.shape_cast %88 : vector<8xf32> to vector<8x1xf32>
    %cst_46 = arith.constant 2.560000e+02 : f32
    %90 = vector.broadcast %cst_46 : f32 to vector<8x1xf32>
    %91 = arith.divf %89, %90 : vector<8x1xf32>
    %92 = arith.mulf %87, %87 : vector<8x256xf32>
    %cst_47 = arith.constant dense<0.000000e+00> : vector<8xf32>
    %93 = vector.multi_reduction <add>, %92, %cst_47 [1] : vector<8x256xf32> to vector<8xf32>
    %94 = vector.shape_cast %93 : vector<8xf32> to vector<8x1xf32>
    %cst_48 = arith.constant 2.560000e+02 : f32
    %95 = vector.broadcast %cst_48 : f32 to vector<8x1xf32>
    %96 = arith.divf %94, %95 : vector<8x1xf32>
    %97 = arith.mulf %91, %91 : vector<8x1xf32>
    %98 = arith.subf %96, %97 : vector<8x1xf32>
    %cst_49 = arith.constant 0.000000e+00 : f32
    %99 = vector.broadcast %cst_49 : f32 to vector<8x1xf32>
    %100 = arith.maximumf %98, %99 : vector<8x1xf32>
    %101 = vector.broadcast %91 : vector<8x1xf32> to vector<8x256xf32>
    %102 = arith.subf %87, %101 : vector<8x256xf32>
    %cst_50 = arith.constant 9.99999974E-6 : f32
    %103 = vector.broadcast %cst_50 : f32 to vector<8x1xf32>
    %104 = arith.addf %100, %103 : vector<8x1xf32>
    %105 = math.rsqrt %104 : vector<8x1xf32>
    %106 = vector.broadcast %105 : vector<8x1xf32> to vector<8x256xf32>
    %107 = arith.mulf %102, %106 : vector<8x256xf32>
    %108 = vector.broadcast %19 : vector<1x256xf32> to vector<8x256xf32>
    %109 = arith.mulf %107, %108 : vector<8x256xf32>
    %110 = vector.broadcast %22 : vector<1x256xf32> to vector<8x256xf32>
    %111 = arith.addf %109, %110 : vector<8x256xf32>
    %112 = arith.addf %111, %53 : vector<8x256xf32>
    %cst_51 = arith.constant 0.000000e+00 : f32
    %113 = vector.broadcast %cst_51 : f32 to vector<8x256xf32>
    %114 = arith.maximumf %112, %113 : vector<8x256xf32>
    %c1_52 = arith.constant 1 : index
    %c0_53 = arith.constant 0 : index
    %c0_54 = arith.constant 0 : index
    %115 = vector.load %arg2[%c1_52, %c0_53, %c0_54] : memref<3x256x1024xf32, #tpu.memory_space<vmem>>, vector<1x256x512xf32>
    %116 = vector.shape_cast %115 : vector<1x256x512xf32> to vector<256x512xf32>
    %c1_55 = arith.constant 1 : index
    %c0_56 = arith.constant 0 : index
    %c512_57 = arith.constant 512 : index
    %117 = vector.load %arg2[%c1_55, %c0_56, %c512_57] : memref<3x256x1024xf32, #tpu.memory_space<vmem>>, vector<1x256x256xf32>
    %118 = vector.shape_cast %117 : vector<1x256x256xf32> to vector<256x256xf32>
    %c1_58 = arith.constant 1 : index
    %c0_59 = arith.constant 0 : index
    %c768_60 = arith.constant 768 : index
    %119 = vector.load %arg2[%c1_58, %c0_59, %c768_60] : memref<3x256x1024xf32, #tpu.memory_space<vmem>>, vector<1x256x256xf32>
    %120 = vector.shape_cast %119 : vector<1x256x256xf32> to vector<256x256xf32>
    %c4 = arith.constant 4 : index
    %c0_61 = arith.constant 0 : index
    %121 = vector.load %arg3[%c4, %c0_61] : memref<10x1024xf32, #tpu.memory_space<vmem>>, vector<1x512xf32>
    %c4_62 = arith.constant 4 : index
    %c512_63 = arith.constant 512 : index
    %122 = vector.load %arg3[%c4_62, %c512_63] : memref<10x1024xf32, #tpu.memory_space<vmem>>, vector<1x256xf32>
    %c4_64 = arith.constant 4 : index
    %c768_65 = arith.constant 768 : index
    %123 = vector.load %arg3[%c4_64, %c768_65] : memref<10x1024xf32, #tpu.memory_space<vmem>>, vector<1x256xf32>
    %c5 = arith.constant 5 : index
    %c0_66 = arith.constant 0 : index
    %124 = vector.load %arg3[%c5, %c0_66] : memref<10x1024xf32, #tpu.memory_space<vmem>>, vector<1x256xf32>
    %c5_67 = arith.constant 5 : index
    %c256_68 = arith.constant 256 : index
    %125 = vector.load %arg3[%c5_67, %c256_68] : memref<10x1024xf32, #tpu.memory_space<vmem>>, vector<1x256xf32>
    %c5_69 = arith.constant 5 : index
    %c512_70 = arith.constant 512 : index
    %126 = vector.load %arg3[%c5_69, %c512_70] : memref<10x1024xf32, #tpu.memory_space<vmem>>, vector<1x256xf32>
    %c6 = arith.constant 6 : index
    %c0_71 = arith.constant 0 : index
    %127 = vector.load %arg3[%c6, %c0_71] : memref<10x1024xf32, #tpu.memory_space<vmem>>, vector<1x256xf32>
    %c6_72 = arith.constant 6 : index
    %c256_73 = arith.constant 256 : index
    %128 = vector.load %arg3[%c6_72, %c256_73] : memref<10x1024xf32, #tpu.memory_space<vmem>>, vector<1x256xf32>
    %c6_74 = arith.constant 6 : index
    %c512_75 = arith.constant 512 : index
    %129 = vector.load %arg3[%c6_74, %c512_75] : memref<10x1024xf32, #tpu.memory_space<vmem>>, vector<1x256xf32>
    %cst_76 = arith.constant dense<0.000000e+00> : vector<8x512xf32>
    %130 = tpu.matmul %114, %116, %cst_76 {dimension_numbers = #tpu.dot_dimension_numbers<[1], [0], [0], [1], [0, 0, 1, 1], [], []>} : vector<8x256xf32>, vector<256x512xf32>, vector<8x512xf32> -> vector<8x512xf32>
    %131 = vector.broadcast %121 : vector<1x512xf32> to vector<8x512xf32>
    %132 = arith.addf %130, %131 : vector<8x512xf32>
    %133 = vector.extract_strided_slice %132 {offsets = [0, 0], sizes = [8, 256], strides = [1, 1]} : vector<8x512xf32> to vector<8x256xf32>
    %cst_77 = arith.constant 0.000000e+00 : f32
    %134 = vector.broadcast %cst_77 : f32 to vector<8x256xf32>
    %135 = arith.maximumf %133, %134 : vector<8x256xf32>
    %cst_78 = arith.constant dense<0.000000e+00> : vector<8xf32>
    %136 = vector.multi_reduction <add>, %135, %cst_78 [1] : vector<8x256xf32> to vector<8xf32>
    %137 = vector.shape_cast %136 : vector<8xf32> to vector<8x1xf32>
    %cst_79 = arith.constant 2.560000e+02 : f32
    %138 = vector.broadcast %cst_79 : f32 to vector<8x1xf32>
    %139 = arith.divf %137, %138 : vector<8x1xf32>
    %140 = arith.mulf %135, %135 : vector<8x256xf32>
    %cst_80 = arith.constant dense<0.000000e+00> : vector<8xf32>
    %141 = vector.multi_reduction <add>, %140, %cst_80 [1] : vector<8x256xf32> to vector<8xf32>
    %142 = vector.shape_cast %141 : vector<8xf32> to vector<8x1xf32>
    %cst_81 = arith.constant 2.560000e+02 : f32
    %143 = vector.broadcast %cst_81 : f32 to vector<8x1xf32>
    %144 = arith.divf %142, %143 : vector<8x1xf32>
    %145 = arith.mulf %139, %139 : vector<8x1xf32>
    %146 = arith.subf %144, %145 : vector<8x1xf32>
    %cst_82 = arith.constant 0.000000e+00 : f32
    %147 = vector.broadcast %cst_82 : f32 to vector<8x1xf32>
    %148 = arith.maximumf %146, %147 : vector<8x1xf32>
    %149 = vector.broadcast %139 : vector<8x1xf32> to vector<8x256xf32>
    %150 = arith.subf %135, %149 : vector<8x256xf32>
    %cst_83 = arith.constant 9.99999974E-6 : f32
    %151 = vector.broadcast %cst_83 : f32 to vector<8x1xf32>
    %152 = arith.addf %148, %151 : vector<8x1xf32>
    %153 = math.rsqrt %152 : vector<8x1xf32>
    %154 = vector.broadcast %153 : vector<8x1xf32> to vector<8x256xf32>
    %155 = arith.mulf %150, %154 : vector<8x256xf32>
    %156 = vector.broadcast %124 : vector<1x256xf32> to vector<8x256xf32>
    %157 = arith.mulf %155, %156 : vector<8x256xf32>
    %158 = vector.broadcast %127 : vector<1x256xf32> to vector<8x256xf32>
    %159 = arith.addf %157, %158 : vector<8x256xf32>
    %160 = vector.extract_strided_slice %132 {offsets = [0, 256], sizes = [8, 256], strides = [1, 1]} : vector<8x512xf32> to vector<8x256xf32>
    %cst_84 = arith.constant dense<0.000000e+00> : vector<8x256xf32>
    %161 = tpu.matmul %159, %118, %cst_84 {dimension_numbers = #tpu.dot_dimension_numbers<[1], [0], [0], [1], [0, 0, 1, 1], [], []>} : vector<8x256xf32>, vector<256x256xf32>, vector<8x256xf32> -> vector<8x256xf32>
    %162 = vector.broadcast %122 : vector<1x256xf32> to vector<8x256xf32>
    %163 = arith.addf %161, %162 : vector<8x256xf32>
    %cst_85 = arith.constant 0.000000e+00 : f32
    %164 = vector.broadcast %cst_85 : f32 to vector<8x256xf32>
    %165 = arith.maximumf %163, %164 : vector<8x256xf32>
    %cst_86 = arith.constant dense<0.000000e+00> : vector<8xf32>
    %166 = vector.multi_reduction <add>, %165, %cst_86 [1] : vector<8x256xf32> to vector<8xf32>
    %167 = vector.shape_cast %166 : vector<8xf32> to vector<8x1xf32>
    %cst_87 = arith.constant 2.560000e+02 : f32
    %168 = vector.broadcast %cst_87 : f32 to vector<8x1xf32>
    %169 = arith.divf %167, %168 : vector<8x1xf32>
    %170 = arith.mulf %165, %165 : vector<8x256xf32>
    %cst_88 = arith.constant dense<0.000000e+00> : vector<8xf32>
    %171 = vector.multi_reduction <add>, %170, %cst_88 [1] : vector<8x256xf32> to vector<8xf32>
    %172 = vector.shape_cast %171 : vector<8xf32> to vector<8x1xf32>
    %cst_89 = arith.constant 2.560000e+02 : f32
    %173 = vector.broadcast %cst_89 : f32 to vector<8x1xf32>
    %174 = arith.divf %172, %173 : vector<8x1xf32>
    %175 = arith.mulf %169, %169 : vector<8x1xf32>
    %176 = arith.subf %174, %175 : vector<8x1xf32>
    %cst_90 = arith.constant 0.000000e+00 : f32
    %177 = vector.broadcast %cst_90 : f32 to vector<8x1xf32>
    %178 = arith.maximumf %176, %177 : vector<8x1xf32>
    %179 = vector.broadcast %169 : vector<8x1xf32> to vector<8x256xf32>
    %180 = arith.subf %165, %179 : vector<8x256xf32>
    %cst_91 = arith.constant 9.99999974E-6 : f32
    %181 = vector.broadcast %cst_91 : f32 to vector<8x1xf32>
    %182 = arith.addf %178, %181 : vector<8x1xf32>
    %183 = math.rsqrt %182 : vector<8x1xf32>
    %184 = vector.broadcast %183 : vector<8x1xf32> to vector<8x256xf32>
    %185 = arith.mulf %180, %184 : vector<8x256xf32>
    %186 = vector.broadcast %125 : vector<1x256xf32> to vector<8x256xf32>
    %187 = arith.mulf %185, %186 : vector<8x256xf32>
    %188 = vector.broadcast %128 : vector<1x256xf32> to vector<8x256xf32>
    %189 = arith.addf %187, %188 : vector<8x256xf32>
    %cst_92 = arith.constant dense<0.000000e+00> : vector<8x256xf32>
    %190 = tpu.matmul %189, %120, %cst_92 {dimension_numbers = #tpu.dot_dimension_numbers<[1], [0], [0], [1], [0, 0, 1, 1], [], []>} : vector<8x256xf32>, vector<256x256xf32>, vector<8x256xf32> -> vector<8x256xf32>
    %191 = vector.broadcast %123 : vector<1x256xf32> to vector<8x256xf32>
    %192 = arith.addf %190, %191 : vector<8x256xf32>
    %cst_93 = arith.constant 0.000000e+00 : f32
    %193 = vector.broadcast %cst_93 : f32 to vector<8x256xf32>
    %194 = arith.maximumf %192, %193 : vector<8x256xf32>
    %cst_94 = arith.constant dense<0.000000e+00> : vector<8xf32>
    %195 = vector.multi_reduction <add>, %194, %cst_94 [1] : vector<8x256xf32> to vector<8xf32>
    %196 = vector.shape_cast %195 : vector<8xf32> to vector<8x1xf32>
    %cst_95 = arith.constant 2.560000e+02 : f32
    %197 = vector.broadcast %cst_95 : f32 to vector<8x1xf32>
    %198 = arith.divf %196, %197 : vector<8x1xf32>
    %199 = arith.mulf %194, %194 : vector<8x256xf32>
    %cst_96 = arith.constant dense<0.000000e+00> : vector<8xf32>
    %200 = vector.multi_reduction <add>, %199, %cst_96 [1] : vector<8x256xf32> to vector<8xf32>
    %201 = vector.shape_cast %200 : vector<8xf32> to vector<8x1xf32>
    %cst_97 = arith.constant 2.560000e+02 : f32
    %202 = vector.broadcast %cst_97 : f32 to vector<8x1xf32>
    %203 = arith.divf %201, %202 : vector<8x1xf32>
    %204 = arith.mulf %198, %198 : vector<8x1xf32>
    %205 = arith.subf %203, %204 : vector<8x1xf32>
    %cst_98 = arith.constant 0.000000e+00 : f32
    %206 = vector.broadcast %cst_98 : f32 to vector<8x1xf32>
    %207 = arith.maximumf %205, %206 : vector<8x1xf32>
    %208 = vector.broadcast %198 : vector<8x1xf32> to vector<8x256xf32>
    %209 = arith.subf %194, %208 : vector<8x256xf32>
    %cst_99 = arith.constant 9.99999974E-6 : f32
    %210 = vector.broadcast %cst_99 : f32 to vector<8x1xf32>
    %211 = arith.addf %207, %210 : vector<8x1xf32>
    %212 = math.rsqrt %211 : vector<8x1xf32>
    %213 = vector.broadcast %212 : vector<8x1xf32> to vector<8x256xf32>
    %214 = arith.mulf %209, %213 : vector<8x256xf32>
    %215 = vector.broadcast %126 : vector<1x256xf32> to vector<8x256xf32>
    %216 = arith.mulf %214, %215 : vector<8x256xf32>
    %217 = vector.broadcast %129 : vector<1x256xf32> to vector<8x256xf32>
    %218 = arith.addf %216, %217 : vector<8x256xf32>
    %219 = arith.addf %218, %160 : vector<8x256xf32>
    %cst_100 = arith.constant 0.000000e+00 : f32
    %220 = vector.broadcast %cst_100 : f32 to vector<8x256xf32>
    %221 = arith.maximumf %219, %220 : vector<8x256xf32>
    %c2_101 = arith.constant 2 : index
    %c0_102 = arith.constant 0 : index
    %c0_103 = arith.constant 0 : index
    %222 = vector.load %arg2[%c2_101, %c0_102, %c0_103] : memref<3x256x1024xf32, #tpu.memory_space<vmem>>, vector<1x256x512xf32>
    %223 = vector.shape_cast %222 : vector<1x256x512xf32> to vector<256x512xf32>
    %c2_104 = arith.constant 2 : index
    %c0_105 = arith.constant 0 : index
    %c512_106 = arith.constant 512 : index
    %224 = vector.load %arg2[%c2_104, %c0_105, %c512_106] : memref<3x256x1024xf32, #tpu.memory_space<vmem>>, vector<1x256x256xf32>
    %225 = vector.shape_cast %224 : vector<1x256x256xf32> to vector<256x256xf32>
    %c2_107 = arith.constant 2 : index
    %c0_108 = arith.constant 0 : index
    %c768_109 = arith.constant 768 : index
    %226 = vector.load %arg2[%c2_107, %c0_108, %c768_109] : memref<3x256x1024xf32, #tpu.memory_space<vmem>>, vector<1x256x256xf32>
    %227 = vector.shape_cast %226 : vector<1x256x256xf32> to vector<256x256xf32>
    %c7 = arith.constant 7 : index
    %c0_110 = arith.constant 0 : index
    %228 = vector.load %arg3[%c7, %c0_110] : memref<10x1024xf32, #tpu.memory_space<vmem>>, vector<1x512xf32>
    %c7_111 = arith.constant 7 : index
    %c512_112 = arith.constant 512 : index
    %229 = vector.load %arg3[%c7_111, %c512_112] : memref<10x1024xf32, #tpu.memory_space<vmem>>, vector<1x256xf32>
    %c7_113 = arith.constant 7 : index
    %c768_114 = arith.constant 768 : index
    %230 = vector.load %arg3[%c7_113, %c768_114] : memref<10x1024xf32, #tpu.memory_space<vmem>>, vector<1x256xf32>
    %c8 = arith.constant 8 : index
    %c0_115 = arith.constant 0 : index
    %231 = vector.load %arg3[%c8, %c0_115] : memref<10x1024xf32, #tpu.memory_space<vmem>>, vector<1x256xf32>
    %c8_116 = arith.constant 8 : index
    %c256_117 = arith.constant 256 : index
    %232 = vector.load %arg3[%c8_116, %c256_117] : memref<10x1024xf32, #tpu.memory_space<vmem>>, vector<1x256xf32>
    %c8_118 = arith.constant 8 : index
    %c512_119 = arith.constant 512 : index
    %233 = vector.load %arg3[%c8_118, %c512_119] : memref<10x1024xf32, #tpu.memory_space<vmem>>, vector<1x256xf32>
    %c9 = arith.constant 9 : index
    %c0_120 = arith.constant 0 : index
    %234 = vector.load %arg3[%c9, %c0_120] : memref<10x1024xf32, #tpu.memory_space<vmem>>, vector<1x256xf32>
    %c9_121 = arith.constant 9 : index
    %c256_122 = arith.constant 256 : index
    %235 = vector.load %arg3[%c9_121, %c256_122] : memref<10x1024xf32, #tpu.memory_space<vmem>>, vector<1x256xf32>
    %c9_123 = arith.constant 9 : index
    %c512_124 = arith.constant 512 : index
    %236 = vector.load %arg3[%c9_123, %c512_124] : memref<10x1024xf32, #tpu.memory_space<vmem>>, vector<1x256xf32>
    %cst_125 = arith.constant dense<0.000000e+00> : vector<8x512xf32>
    %237 = tpu.matmul %221, %223, %cst_125 {dimension_numbers = #tpu.dot_dimension_numbers<[1], [0], [0], [1], [0, 0, 1, 1], [], []>} : vector<8x256xf32>, vector<256x512xf32>, vector<8x512xf32> -> vector<8x512xf32>
    %238 = vector.broadcast %228 : vector<1x512xf32> to vector<8x512xf32>
    %239 = arith.addf %237, %238 : vector<8x512xf32>
    %240 = vector.extract_strided_slice %239 {offsets = [0, 0], sizes = [8, 256], strides = [1, 1]} : vector<8x512xf32> to vector<8x256xf32>
    %cst_126 = arith.constant 0.000000e+00 : f32
    %241 = vector.broadcast %cst_126 : f32 to vector<8x256xf32>
    %242 = arith.maximumf %240, %241 : vector<8x256xf32>
    %cst_127 = arith.constant dense<0.000000e+00> : vector<8xf32>
    %243 = vector.multi_reduction <add>, %242, %cst_127 [1] : vector<8x256xf32> to vector<8xf32>
    %244 = vector.shape_cast %243 : vector<8xf32> to vector<8x1xf32>
    %cst_128 = arith.constant 2.560000e+02 : f32
    %245 = vector.broadcast %cst_128 : f32 to vector<8x1xf32>
    %246 = arith.divf %244, %245 : vector<8x1xf32>
    %247 = arith.mulf %242, %242 : vector<8x256xf32>
    %cst_129 = arith.constant dense<0.000000e+00> : vector<8xf32>
    %248 = vector.multi_reduction <add>, %247, %cst_129 [1] : vector<8x256xf32> to vector<8xf32>
    %249 = vector.shape_cast %248 : vector<8xf32> to vector<8x1xf32>
    %cst_130 = arith.constant 2.560000e+02 : f32
    %250 = vector.broadcast %cst_130 : f32 to vector<8x1xf32>
    %251 = arith.divf %249, %250 : vector<8x1xf32>
    %252 = arith.mulf %246, %246 : vector<8x1xf32>
    %253 = arith.subf %251, %252 : vector<8x1xf32>
    %cst_131 = arith.constant 0.000000e+00 : f32
    %254 = vector.broadcast %cst_131 : f32 to vector<8x1xf32>
    %255 = arith.maximumf %253, %254 : vector<8x1xf32>
    %256 = vector.broadcast %246 : vector<8x1xf32> to vector<8x256xf32>
    %257 = arith.subf %242, %256 : vector<8x256xf32>
    %cst_132 = arith.constant 9.99999974E-6 : f32
    %258 = vector.broadcast %cst_132 : f32 to vector<8x1xf32>
    %259 = arith.addf %255, %258 : vector<8x1xf32>
    %260 = math.rsqrt %259 : vector<8x1xf32>
    %261 = vector.broadcast %260 : vector<8x1xf32> to vector<8x256xf32>
    %262 = arith.mulf %257, %261 : vector<8x256xf32>
    %263 = vector.broadcast %231 : vector<1x256xf32> to vector<8x256xf32>
    %264 = arith.mulf %262, %263 : vector<8x256xf32>
    %265 = vector.broadcast %234 : vector<1x256xf32> to vector<8x256xf32>
    %266 = arith.addf %264, %265 : vector<8x256xf32>
    %267 = vector.extract_strided_slice %239 {offsets = [0, 256], sizes = [8, 256], strides = [1, 1]} : vector<8x512xf32> to vector<8x256xf32>
    %cst_133 = arith.constant dense<0.000000e+00> : vector<8x256xf32>
    %268 = tpu.matmul %266, %225, %cst_133 {dimension_numbers = #tpu.dot_dimension_numbers<[1], [0], [0], [1], [0, 0, 1, 1], [], []>} : vector<8x256xf32>, vector<256x256xf32>, vector<8x256xf32> -> vector<8x256xf32>
    %269 = vector.broadcast %229 : vector<1x256xf32> to vector<8x256xf32>
    %270 = arith.addf %268, %269 : vector<8x256xf32>
    %cst_134 = arith.constant 0.000000e+00 : f32
    %271 = vector.broadcast %cst_134 : f32 to vector<8x256xf32>
    %272 = arith.maximumf %270, %271 : vector<8x256xf32>
    %cst_135 = arith.constant dense<0.000000e+00> : vector<8xf32>
    %273 = vector.multi_reduction <add>, %272, %cst_135 [1] : vector<8x256xf32> to vector<8xf32>
    %274 = vector.shape_cast %273 : vector<8xf32> to vector<8x1xf32>
    %cst_136 = arith.constant 2.560000e+02 : f32
    %275 = vector.broadcast %cst_136 : f32 to vector<8x1xf32>
    %276 = arith.divf %274, %275 : vector<8x1xf32>
    %277 = arith.mulf %272, %272 : vector<8x256xf32>
    %cst_137 = arith.constant dense<0.000000e+00> : vector<8xf32>
    %278 = vector.multi_reduction <add>, %277, %cst_137 [1] : vector<8x256xf32> to vector<8xf32>
    %279 = vector.shape_cast %278 : vector<8xf32> to vector<8x1xf32>
    %cst_138 = arith.constant 2.560000e+02 : f32
    %280 = vector.broadcast %cst_138 : f32 to vector<8x1xf32>
    %281 = arith.divf %279, %280 : vector<8x1xf32>
    %282 = arith.mulf %276, %276 : vector<8x1xf32>
    %283 = arith.subf %281, %282 : vector<8x1xf32>
    %cst_139 = arith.constant 0.000000e+00 : f32
    %284 = vector.broadcast %cst_139 : f32 to vector<8x1xf32>
    %285 = arith.maximumf %283, %284 : vector<8x1xf32>
    %286 = vector.broadcast %276 : vector<8x1xf32> to vector<8x256xf32>
    %287 = arith.subf %272, %286 : vector<8x256xf32>
    %cst_140 = arith.constant 9.99999974E-6 : f32
    %288 = vector.broadcast %cst_140 : f32 to vector<8x1xf32>
    %289 = arith.addf %285, %288 : vector<8x1xf32>
    %290 = math.rsqrt %289 : vector<8x1xf32>
    %291 = vector.broadcast %290 : vector<8x1xf32> to vector<8x256xf32>
    %292 = arith.mulf %287, %291 : vector<8x256xf32>
    %293 = vector.broadcast %232 : vector<1x256xf32> to vector<8x256xf32>
    %294 = arith.mulf %292, %293 : vector<8x256xf32>
    %295 = vector.broadcast %235 : vector<1x256xf32> to vector<8x256xf32>
    %296 = arith.addf %294, %295 : vector<8x256xf32>
    %cst_141 = arith.constant dense<0.000000e+00> : vector<8x256xf32>
    %297 = tpu.matmul %296, %227, %cst_141 {dimension_numbers = #tpu.dot_dimension_numbers<[1], [0], [0], [1], [0, 0, 1, 1], [], []>} : vector<8x256xf32>, vector<256x256xf32>, vector<8x256xf32> -> vector<8x256xf32>
    %298 = vector.broadcast %230 : vector<1x256xf32> to vector<8x256xf32>
    %299 = arith.addf %297, %298 : vector<8x256xf32>
    %cst_142 = arith.constant 0.000000e+00 : f32
    %300 = vector.broadcast %cst_142 : f32 to vector<8x256xf32>
    %301 = arith.maximumf %299, %300 : vector<8x256xf32>
    %cst_143 = arith.constant dense<0.000000e+00> : vector<8xf32>
    %302 = vector.multi_reduction <add>, %301, %cst_143 [1] : vector<8x256xf32> to vector<8xf32>
    %303 = vector.shape_cast %302 : vector<8xf32> to vector<8x1xf32>
    %cst_144 = arith.constant 2.560000e+02 : f32
    %304 = vector.broadcast %cst_144 : f32 to vector<8x1xf32>
    %305 = arith.divf %303, %304 : vector<8x1xf32>
    %306 = arith.mulf %301, %301 : vector<8x256xf32>
    %cst_145 = arith.constant dense<0.000000e+00> : vector<8xf32>
    %307 = vector.multi_reduction <add>, %306, %cst_145 [1] : vector<8x256xf32> to vector<8xf32>
    %308 = vector.shape_cast %307 : vector<8xf32> to vector<8x1xf32>
    %cst_146 = arith.constant 2.560000e+02 : f32
    %309 = vector.broadcast %cst_146 : f32 to vector<8x1xf32>
    %310 = arith.divf %308, %309 : vector<8x1xf32>
    %311 = arith.mulf %305, %305 : vector<8x1xf32>
    %312 = arith.subf %310, %311 : vector<8x1xf32>
    %cst_147 = arith.constant 0.000000e+00 : f32
    %313 = vector.broadcast %cst_147 : f32 to vector<8x1xf32>
    %314 = arith.maximumf %312, %313 : vector<8x1xf32>
    %315 = vector.broadcast %305 : vector<8x1xf32> to vector<8x256xf32>
    %316 = arith.subf %301, %315 : vector<8x256xf32>
    %cst_148 = arith.constant 9.99999974E-6 : f32
    %317 = vector.broadcast %cst_148 : f32 to vector<8x1xf32>
    %318 = arith.addf %314, %317 : vector<8x1xf32>
    %319 = math.rsqrt %318 : vector<8x1xf32>
    %320 = vector.broadcast %319 : vector<8x1xf32> to vector<8x256xf32>
    %321 = arith.mulf %316, %320 : vector<8x256xf32>
    %322 = vector.broadcast %233 : vector<1x256xf32> to vector<8x256xf32>
    %323 = arith.mulf %321, %322 : vector<8x256xf32>
    %324 = vector.broadcast %236 : vector<1x256xf32> to vector<8x256xf32>
    %325 = arith.addf %323, %324 : vector<8x256xf32>
    %326 = arith.addf %325, %267 : vector<8x256xf32>
    %cst_149 = arith.constant 0.000000e+00 : f32
    %327 = vector.broadcast %cst_149 : f32 to vector<8x256xf32>
    %328 = arith.maximumf %326, %327 : vector<8x256xf32>
    %c0_150 = arith.constant 0 : index
    %c256_151 = arith.constant 256 : index
    %329 = vector.load %arg3[%c0_150, %c256_151] : memref<10x1024xf32, #tpu.memory_space<vmem>>, vector<1x256xf32>
    %c0_152 = arith.constant 0 : index
    %c512_153 = arith.constant 512 : index
    %330 = vector.load %arg3[%c0_152, %c512_153] : memref<10x1024xf32, #tpu.memory_space<vmem>>, vector<1x1xf32>
    %331 = arith.addf %328, %7 : vector<8x256xf32>
    %332 = vector.broadcast %329 : vector<1x256xf32> to vector<8x256xf32>
    %333 = arith.mulf %331, %332 : vector<8x256xf32>
    %cst_154 = arith.constant dense<0.000000e+00> : vector<8xf32>
    %334 = vector.multi_reduction <add>, %333, %cst_154 [1] : vector<8x256xf32> to vector<8xf32>
    %335 = vector.shape_cast %334 : vector<8xf32> to vector<8x1xf32>
    %336 = vector.broadcast %330 : vector<1x1xf32> to vector<8x1xf32>
    %337 = arith.addf %335, %336 : vector<8x1xf32>
    %c0_155 = arith.constant 0 : index
    %c0_156 = arith.constant 0 : index
    %338 = vector.load %arg4[%c0_155, %c0_156] : memref<8x1xf32, #tpu.memory_space<vmem>>, vector<8x1xf32>
    tpu.vector_store %arg4[%c0_155, %c0_156], %337 {strides = array<i32>} : memref<8x1xf32, #tpu.memory_space<vmem>>, vector<8x1xf32>,
    return
  }
}

</mosaic_0001>

<bundles_post_ra>
// kernel: critic_forward.1
= control target key start
LH: loop header
LB: loop body
LE: loop exit
PB: predicated region body
PF: predicated region fallthrough
CT: control target
= control target key end

     0   :  { %9 = vsyncpa [#allocation3], 0  ;;  %s3605_s0 = inlined_call_operand.vmem [shape: f32[8,12], index: 0, kind: input, shape index: {}]   ;;  %s3606_s1 = inlined_call_operand.hbm [shape: f32[12,256], index: 1, kind: input, shape index: {}]   ;;  %s3607_s2 = inlined_call_operand.hbm [shape: f32[3,256,1024], index: 2, kind: input, shape index: {}]   ;;  %s3608_s3 = inlined_call_operand.hbm [shape: f32[10,1024], index: 3, kind: input, shape index: {}]   ;;  %s3609_s4 = inlined_call_operand.vmem [shape: f32[8,1], index: 4, kind: output, shape index: {}]  }
   0x1   :  { %10 = vsyncpa [#allocation5], 0  ;;  %s3306_s15 = smov [#allocation4]   ;;  %s3236_s19 = scalar_lea.hbm %s3607_s2, 98304 }
   0x2   :  { %s30_s16 = sshll.u32 %s3306_s15, 4  ;;  %p3237_p0 = scmp.ne.s32.totalorder %s3607_s2, %s3236_s19  ;;  %s31_s16 = int_to_ptr.vmem [resolvable:$true] %s30_s16 }
   0x3   :  { %p3240_p1 = scmp.lt.u32.totalorder %s3236_s19, %s3607_s2 }
   0x5   :  { %p3242_p2 = pnand %p3240_p1, %p3237_p0 }
   0x7   :  { %3245 = shalt.err (!%p3242_p2)
}
   0x8   :  { %s3246_s24 = scalar_lea.vmem %s31_s16, 98304  ;;  %p3251_p4 = scmp.lt.s32.totalorder %s31_s16, %s31_s16 }
   0x9   :  { %p3247_p3 = scmp.ne.s32.totalorder %s31_s16, %s3246_s24  ;;  %p3252_p5 = scmp.lt.s32.totalorder %s3246_s24, %s3246_s24 }
   0xb   :  { %p3253_p6 = por %p3252_p5, %p3251_p4 }
   0xd   :  { %p3254_p7 = pnand %p3253_p6, %p3247_p3 }
   0xf   :  { %3257 = shalt.err (!%p3254_p7)
}
  0x10   :  { %s3307_s25 = smov 1024   ;;  %s3308_s26 = smov 64  }
  0x11   :  { %36 = dma.hbm_to_vmem [thread:$0]  %s3607_s2, 98304, %s31_s16, [#allocation5], %s3307_s25, %s3307_s25, %s3308_s26  }
  0x12   :  { %s3309_s29 = smov [#allocation2]   ;;  %s3258_s7 = scalar_lea.hbm %s3606_s1, 512 }
  0x13   :  { %s18_s30 = sshll.u32 %s3309_s29, 4  ;;  %p3259_p8 = scmp.ne.s32.totalorder %s3606_s1, %s3258_s7  ;;  %s19_s30 = int_to_ptr.vmem [resolvable:$true] %s18_s30 }
  0x14   :  { %p3262_p9 = scmp.lt.u32.totalorder %s3258_s7, %s3606_s1 }
  0x16   :  { %p3264_p10 = pnand %p3262_p9, %p3259_p8 }
  0x18   :  { %3267 = shalt.err (!%p3264_p10)
}
  0x19   :  { %s3268_s12 = scalar_lea.vmem %s19_s30, 512  ;;  %p3273_p12 = scmp.lt.s32.totalorder %s19_s30, %s19_s30 }
  0x1a   :  { %p3269_p11 = scmp.ne.s32.totalorder %s19_s30, %s3268_s12  ;;  %p3274_p13 = scmp.lt.s32.totalorder %s3268_s12, %s3268_s12 }
  0x1c   :  { %p3275_p0 = por %p3274_p13, %p3273_p12 }
  0x1e   :  { %p3276_p1 = pnand %p3275_p0, %p3269_p11 }
  0x20   :  { %3279 = shalt.err (!%p3276_p1)
}
  0x21   :  { %s3310_s2 = smov 256   ;;  %s3311_s13 = smov 16  }
  0x22   :  { %24 = dma.hbm_to_vmem [thread:$0]  %s3606_s1, 512, %s19_s30, [#allocation3], %s3310_s2, %s3310_s2, %s3311_s13  }
  0x23   :  { %s3312_s16 = smov [#allocation6]   ;;  %s3280_s20 = scalar_lea.hbm %s3608_s3, 2048 }
  0x24   :  { %s42_s17 = sshll.u32 %s3312_s16, 4  ;;  %p3281_p2 = scmp.ne.s32.totalorder %s3608_s3, %s3280_s20  ;;  %s43_s17 = int_to_ptr.vmem [resolvable:$true] %s42_s17 }
  0x25   :  { %p3284_p3 = scmp.lt.u32.totalorder %s3280_s20, %s3608_s3 }
  0x27   :  { %p3286_p4 = pnand %p3284_p3, %p3281_p2 }
  0x29   :  { %3289 = shalt.err (!%p3286_p4)
}
  0x2a   :  { %s3290_s27 = scalar_lea.vmem %s43_s17, 2048  ;;  %p3295_p6 = scmp.lt.s32.totalorder %s43_s17, %s43_s17 }
  0x2b   :  { %p3291_p5 = scmp.ne.s32.totalorder %s43_s17, %s3290_s27  ;;  %p3296_p7 = scmp.lt.s32.totalorder %s3290_s27, %s3290_s27 }
  0x2d   :  { %p3297_p8 = por %p3296_p7, %p3295_p6 }
  0x2f   :  { %p3298_p9 = pnand %p3297_p8, %p3291_p5 }
  0x31   :  { %3301 = shalt.err (!%p3298_p9)
}
  0x32   :  { %48 = dma.hbm_to_vmem [thread:$0]  %s3608_s3, 2048, %s43_s17, [#allocation5], %s3307_s25, %s3307_s25, %s3308_s26  }
  0x33   :  { %3302 = dma.done.wait [#allocation3], 512  }
  0x34   :  { %3303 = vsyncadd [#allocation3], 4294966784 }
  0x35   :  { %3304 = dma.done.wait [#allocation5], 100352  }
  0x36   :  { %3305 = vsyncadd [#allocation5], 4294866944  ;;  %v3313_v0 = vmov 0.0   ;;  %vm79_vm0 = vcmask 1043456   ;;  %vm3314_vm1 = vmmov 1   ;;  %v61_v2 = vld [vmem:[#allocation2 + $0x8] sm:$0xff] }
  0x37   :  { %150 = vmatprep.mubr.f32.mxu0 %v3313_v0  ;;  %vm3382_vm2 = vmpackc.low %vm79_vm0, %vm3314_vm1  ;;  %v63_v3 = vld [vmem:[#allocation2 + $0x18] sm:$0xf]  ;;  %v60_v4 = vld [vmem:[#allocation2] sm:$0xff]  ;;  %vm75_vm3 = vcmask 97280   ;;  %vm2422_vm4 = vcmask 7168  }
  0x38   :  { %v2433_v5 = vpack.c.bf16 %v63_v3, %v61_v2  ;;  %v62_v6 = vld [vmem:[#allocation2 + $0x10] sm:$0xf]  ;;  %v160_v7 = vld [vmem:[#allocation4 + $0x8] sm:$0xff]  ;;  %v58_v9 = vld [vmem:[%s3605_s0] sm:$0xff] }
  0x39   :  { %v2436_v8 = vpack.c.bf16 %v62_v6, %v60_v4  ;;  %v164_v10 = vld [vmem:[#allocation4 + $0x48] sm:$0xff]  ;;  %v162_v11 = vld [vmem:[#allocation4 + $0x18] sm:$0xff]  ;;  %v159_v15 = vld [vmem:[#allocation4] sm:$0xff] }
  0x3a   :  { %v166_v12 = vld [vmem:[#allocation4 + $0x58] sm:$0xff]  ;;  %2435 = vmatprep.subr.msk.bf16.mxu0 %vm3382_vm2, %v2433_v5  ;;  %v2439_v13 = vpack.c.bf16 %v164_v10, %v160_v7  ;;  %v163_v16 = vld [vmem:[#allocation4 + $0x40] sm:$0xff]  ;;  %v161_v17 = vld [vmem:[#allocation4 + $0x10] sm:$0xff] }
  0x3b   :  { %v2503_v14 = vpack.c.bf16 %v166_v12, %v162_v11  ;;  %2438 = vmatpush1.bf16.msk.msra.mxu0 %vm3382_vm2, %v2436_v8  ;;  %v2441_v18 = vpack.c.bf16 %v163_v16, %v159_v15  ;;  %v165_v19 = vld [vmem:[#allocation4 + $0x50] sm:$0xff]  ;;  %v168_v20 = vld [vmem:[#allocation4 + $0x88] sm:$0xff]  ;;  %v170_v24 = vld [vmem:[#allocation4 + $0x98] sm:$0xff] }
  0x3c   :  { %v172_v21 = vld [vmem:[#allocation4 + $0xc8] sm:$0xff]  ;;  %2440 = vmatprep.subr.bf16.mxu1 %v2439_v13  ;;  %v2505_v22 = vpack.c.bf16 %v165_v19, %v161_v17  ;;  %v174_v25 = vld [vmem:[#allocation4 + $0xd8] sm:$0xff]  ;;  %v167_v26 = vld [vmem:[#allocation4 + $0x80] sm:$0xff] }
  0x3d   :  { %2504 = vmatprep.subr.bf16.mxu0 %v2503_v14  ;;  %v2443_v23 = vpack.c.bf16 %v172_v21, %v168_v20  ;;  %2442 = vmatpush1.bf16.msra.mxu1 %v2441_v18  ;;  %v2507_v27 = vpack.c.bf16 %v174_v25, %v170_v24  ;;  %v171_v28 = vld [vmem:[#allocation4 + $0xc0] sm:$0xff]  ;;  %v169_v29 = vld [vmem:[#allocation4 + $0x90] sm:$0xff]  ;;  %v176_v32 = vld [vmem:[#allocation4 + $0x108] sm:$0xff] }
  0x3e   :  { %v173_v30 = vld [vmem:[#allocation4 + $0xd0] sm:$0xff]  ;;  %2432 = vmatmul.mubr.msk.f32.vlgmr.msra.gmra.mrb[0].mxu0 %vm75_vm3, %v58_v9  ;;  %v2445_v31 = vpack.c.bf16 %v171_v28, %v167_v26  ;;  %v180_v33 = vld [vmem:[#allocation4 + $0x148] sm:$0xff]  ;;  %v178_v34 = vld [vmem:[#allocation4 + $0x118] sm:$0xff] }
  0x3f   :  { %2444 = vmatprep.subr.bf16.mxu1 %v2443_v23  ;;  %2506 = vmatpush1.bf16.msra.mxu0 %v2505_v22  ;;  %v2509_v35 = vpack.c.bf16 %v173_v30, %v169_v29  ;;  %v2447_v36 = vpack.c.bf16 %v180_v33, %v176_v32  ;;  %v182_v37 = vld [vmem:[#allocation4 + $0x158] sm:$0xff]  ;;  %v175_v38 = vld [vmem:[#allocation4 + $0x100] sm:$0xff]  ;;  %v177_v41 = vld [vmem:[#allocation4 + $0x110] sm:$0xff] }
  0x40   :  { %v179_v39 = vld [vmem:[#allocation4 + $0x140] sm:$0xff]  ;;  %2508 = vmatprep.subr.bf16.mxu0 %v2507_v27  ;;  %v2511_v40 = vpack.c.bf16 %v182_v37, %v178_v34  ;;  %v181_v42 = vld [vmem:[#allocation4 + $0x150] sm:$0xff]  ;;  %v184_v43 = vld [vmem:[#allocation4 + $0x188] sm:$0xff] }
  0x41   :  { %2446 = vmatpush1.bf16.msra.mxu1 %v2445_v31  ;;  %v2449_v44 = vpack.c.bf16 %v179_v39, %v175_v38  ;;  %v188_v45 = vld [vmem:[#allocation4 + $0x1c8] sm:$0xff]  ;;  %v186_v46 = vld [vmem:[#allocation4 + $0x198] sm:$0xff]  ;;  %v183_v49 = vld [vmem:[#allocation4 + $0x180] sm:$0xff]  ;;  %v2513_v51 = vpack.c.bf16 %v181_v42, %v177_v41 }
  0x42   :  { %v190_v47 = vld [vmem:[#allocation4 + $0x1d8] sm:$0xff]  ;;  %2448 = vmatprep.subr.bf16.mxu1 %v2447_v36  ;;  %v2451_v48 = vpack.c.bf16 %v188_v45, %v184_v43  ;;  %v187_v50 = vld [vmem:[#allocation4 + $0x1c0] sm:$0xff]  ;;  %v192_v52 = vld [vmem:[#allocation4 + $0x208] sm:$0xff] }
  0x43   :  { %2510 = vmatpush1.bf16.msra.mxu0 %v2509_v35  ;;  %v196_v53 = vld [vmem:[#allocation4 + $0x248] sm:$0xff]  ;;  %v2515_v54 = vpack.c.bf16 %v190_v47, %v186_v46  ;;  %v185_v55 = vld [vmem:[#allocation4 + $0x190] sm:$0xff]  ;;  %v2453_v57 = vpack.c.bf16 %v187_v50, %v183_v49  ;;  %v194_v58 = vld [vmem:[#allocation4 + $0x218] sm:$0xff] }
  0x44   :  { %2512 = vmatprep.subr.bf16.mxu0 %v2511_v40  ;;  %v189_v56 = vld [vmem:[#allocation4 + $0x1d0] sm:$0xff]  ;;  %v198_v59 = vld [vmem:[#allocation4 + $0x258] sm:$0xff]  ;;  %v2455_v60 = vpack.c.bf16 %v196_v53, %v192_v52  ;;  %v191_v61 = vld [vmem:[#allocation4 + $0x200] sm:$0xff] }
  0x45   :  { %2450 = vmatpush1.bf16.msra.mxu1 %v2449_v44  ;;  %v195_v62 = vld [vmem:[#allocation4 + $0x240] sm:$0xff]  ;;  %v2517_v63 = vpack.c.bf16 %v189_v56, %v185_v55  ;;  %v200_v0 = vld [vmem:[#allocation4 + $0x288] sm:$0xff]  ;;  %v2519_v2 = vpack.c.bf16 %v198_v59, %v194_v58  ;;  %v193_v3 = vld [vmem:[#allocation4 + $0x210] sm:$0xff] }
  0x46   :  { %2452 = vmatprep.subr.bf16.mxu1 %v2451_v48  ;;  %v204_v1 = vld [vmem:[#allocation4 + $0x2c8] sm:$0xff]  ;;  %v197_v4 = vld [vmem:[#allocation4 + $0x250] sm:$0xff]  ;;  %v2457_v5 = vpack.c.bf16 %v195_v62, %v191_v61  ;;  %v202_v6 = vld [vmem:[#allocation4 + $0x298] sm:$0xff] }
  0x47   :  { %2514 = vmatpush1.bf16.msra.mxu0 %v2513_v51  ;;  %v206_v7 = vld [vmem:[#allocation4 + $0x2d8] sm:$0xff]  ;;  %v2459_v8 = vpack.c.bf16 %v204_v1, %v200_v0  ;;  %v199_v9 = vld [vmem:[#allocation4 + $0x280] sm:$0xff]  ;;  %v2521_v11 = vpack.c.bf16 %v197_v4, %v193_v3  ;;  %v208_v12 = vld [vmem:[#allocation4 + $0x308] sm:$0xff] }
  0x48   :  { %2516 = vmatprep.subr.bf16.mxu0 %v2515_v54  ;;  %v203_v10 = vld [vmem:[#allocation4 + $0x2c0] sm:$0xff]  ;;  %v212_v13 = vld [vmem:[#allocation4 + $0x348] sm:$0xff]  ;;  %v2523_v14 = vpack.c.bf16 %v206_v7, %v202_v6  ;;  %v201_v15 = vld [vmem:[#allocation4 + $0x290] sm:$0xff] }
  0x49   :  { %2454 = vmatpush1.bf16.msra.mxu1 %v2453_v57  ;;  %v205_v16 = vld [vmem:[#allocation4 + $0x2d0] sm:$0xff]  ;;  %v2461_v17 = vpack.c.bf16 %v203_v10, %v199_v9  ;;  %v210_v18 = vld [vmem:[#allocation4 + $0x318] sm:$0xff]  ;;  %v2463_v20 = vpack.c.bf16 %v212_v13, %v208_v12  ;;  %v207_v21 = vld [vmem:[#allocation4 + $0x300] sm:$0xff] }
  0x4a   :  { %2456 = vmatprep.subr.bf16.mxu1 %v2455_v60  ;;  %v214_v19 = vld [vmem:[#allocation4 + $0x358] sm:$0xff]  ;;  %v211_v22 = vld [vmem:[#allocation4 + $0x340] sm:$0xff]  ;;  %v2525_v23 = vpack.c.bf16 %v205_v16, %v201_v15  ;;  %v216_v24 = vld [vmem:[#allocation4 + $0x388] sm:$0xff] }
  0x4b   :  { %2518 = vmatpush1.bf16.msra.mxu0 %v2517_v63  ;;  %v220_v25 = vld [vmem:[#allocation4 + $0x3c8] sm:$0xff]  ;;  %v2527_v26 = vpack.c.bf16 %v214_v19, %v210_v18  ;;  %v209_v27 = vld [vmem:[#allocation4 + $0x310] sm:$0xff]  ;;  %v2465_v29 = vpack.c.bf16 %v211_v22, %v207_v21  ;;  %v218_v30 = vld [vmem:[#allocation4 + $0x398] sm:$0xff] }
  0x4c   :  { %2520 = vmatprep.subr.bf16.mxu0 %v2519_v2  ;;  %v213_v28 = vld [vmem:[#allocation4 + $0x350] sm:$0xff]  ;;  %v222_v31 = vld [vmem:[#allocation4 + $0x3d8] sm:$0xff]  ;;  %v2467_v32 = vpack.c.bf16 %v220_v25, %v216_v24  ;;  %v215_v33 = vld [vmem:[#allocation4 + $0x380] sm:$0xff] }
  0x4d   :  { %2458 = vmatpush1.bf16.msra.mxu1 %v2457_v5  ;;  %v219_v34 = vld [vmem:[#allocation4 + $0x3c0] sm:$0xff]  ;;  %v2529_v35 = vpack.c.bf16 %v213_v28, %v209_v27  ;;  %v224_v36 = vld [vmem:[#allocation4 + $0x408] sm:$0xff]  ;;  %v2531_v38 = vpack.c.bf16 %v222_v31, %v218_v30  ;;  %v217_v39 = vld [vmem:[#allocation4 + $0x390] sm:$0xff] }
  0x4e   :  { %2460 = vmatprep.subr.bf16.mxu1 %v2459_v8  ;;  %v228_v37 = vld [vmem:[#allocation4 + $0x448] sm:$0xff]  ;;  %v221_v40 = vld [vmem:[#allocation4 + $0x3d0] sm:$0xff]  ;;  %v2469_v41 = vpack.c.bf16 %v219_v34, %v215_v33  ;;  %v226_v42 = vld [vmem:[#allocation4 + $0x418] sm:$0xff] }
  0x4f   :  { %2522 = vmatpush1.bf16.msra.mxu0 %v2521_v11  ;;  %v230_v43 = vld [vmem:[#allocation4 + $0x458] sm:$0xff]  ;;  %v2471_v44 = vpack.c.bf16 %v228_v37, %v224_v36  ;;  %v223_v45 = vld [vmem:[#allocation4 + $0x400] sm:$0xff]  ;;  %v2533_v47 = vpack.c.bf16 %v221_v40, %v217_v39  ;;  %v232_v48 = vld [vmem:[#allocation4 + $0x488] sm:$0xff] }
  0x50   :  { %2524 = vmatprep.subr.bf16.mxu0 %v2523_v14  ;;  %v227_v46 = vld [vmem:[#allocation4 + $0x440] sm:$0xff]  ;;  %v236_v49 = vld [vmem:[#allocation4 + $0x4c8] sm:$0xff]  ;;  %v2535_v50 = vpack.c.bf16 %v230_v43, %v226_v42  ;;  %v225_v51 = vld [vmem:[#allocation4 + $0x410] sm:$0xff] }
  0x51   :  { %2462 = vmatpush1.bf16.msra.mxu1 %v2461_v17  ;;  %v229_v52 = vld [vmem:[#allocation4 + $0x450] sm:$0xff]  ;;  %v2473_v53 = vpack.c.bf16 %v227_v46, %v223_v45  ;;  %v234_v54 = vld [vmem:[#allocation4 + $0x498] sm:$0xff]  ;;  %v2475_v56 = vpack.c.bf16 %v236_v49, %v232_v48  ;;  %v231_v57 = vld [vmem:[#allocation4 + $0x480] sm:$0xff] }
  0x52   :  { %2464 = vmatprep.subr.bf16.mxu1 %v2463_v20  ;;  %v238_v55 = vld [vmem:[#allocation4 + $0x4d8] sm:$0xff]  ;;  %v235_v58 = vld [vmem:[#allocation4 + $0x4c0] sm:$0xff]  ;;  %v2537_v59 = vpack.c.bf16 %v229_v52, %v225_v51  ;;  %v240_v60 = vld [vmem:[#allocation4 + $0x508] sm:$0xff] }
  0x53   :  { %2526 = vmatpush1.bf16.msra.mxu0 %v2525_v23  ;;  %v244_v61 = vld [vmem:[#allocation4 + $0x548] sm:$0xff]  ;;  %v2539_v62 = vpack.c.bf16 %v238_v55, %v234_v54  ;;  %v233_v63 = vld [vmem:[#allocation4 + $0x490] sm:$0xff]  ;;  %v2477_v1 = vpack.c.bf16 %v235_v58, %v231_v57  ;;  %v242_v2 = vld [vmem:[#allocation4 + $0x518] sm:$0xff] }
  0x54   :  { %2528 = vmatprep.subr.bf16.mxu0 %v2527_v26  ;;  %v237_v0 = vld [vmem:[#allocation4 + $0x4d0] sm:$0xff]  ;;  %v246_v3 = vld [vmem:[#allocation4 + $0x558] sm:$0xff]  ;;  %v2479_v4 = vpack.c.bf16 %v244_v61, %v240_v60  ;;  %v239_v5 = vld [vmem:[#allocation4 + $0x500] sm:$0xff] }
  0x55   :  { %2466 = vmatpush1.bf16.msra.mxu1 %v2465_v29  ;;  %v243_v6 = vld [vmem:[#allocation4 + $0x540] sm:$0xff]  ;;  %v2541_v7 = vpack.c.bf16 %v237_v0, %v233_v63  ;;  %v248_v8 = vld [vmem:[#allocation4 + $0x588] sm:$0xff]  ;;  %v2543_v10 = vpack.c.bf16 %v246_v3, %v242_v2  ;;  %v241_v11 = vld [vmem:[#allocation4 + $0x510] sm:$0xff] }
  0x56   :  { %2468 = vmatprep.subr.bf16.mxu1 %v2467_v32  ;;  %v252_v9 = vld [vmem:[#allocation4 + $0x5c8] sm:$0xff]  ;;  %v245_v12 = vld [vmem:[#allocation4 + $0x550] sm:$0xff]  ;;  %v2481_v13 = vpack.c.bf16 %v243_v6, %v239_v5  ;;  %v250_v14 = vld [vmem:[#allocation4 + $0x598] sm:$0xff] }
  0x57   :  { %2530 = vmatpush1.bf16.msra.mxu0 %v2529_v35  ;;  %v254_v15 = vld [vmem:[#allocation4 + $0x5d8] sm:$0xff]  ;;  %v2483_v16 = vpack.c.bf16 %v252_v9, %v248_v8  ;;  %v247_v17 = vld [vmem:[#allocation4 + $0x580] sm:$0xff]  ;;  %v2545_v19 = vpack.c.bf16 %v245_v12, %v241_v11  ;;  %v256_v20 = vld [vmem:[#allocation4 + $0x608] sm:$0xff]  ;;  %v65_v9 = vlaneseq }
  0x58   :  { %2532 = vmatprep.subr.bf16.mxu0 %v2531_v38  ;;  %v251_v18 = vld [vmem:[#allocation4 + $0x5c0] sm:$0xff]  ;;  %v260_v21 = vld [vmem:[#allocation4 + $0x648] sm:$0xff]  ;;  %v2547_v22 = vpack.c.bf16 %v254_v15, %v250_v14  ;;  %v249_v23 = vld [vmem:[#allocation4 + $0x590] sm:$0xff] }
  0x59   :  { %2470 = vmatpush1.bf16.msra.mxu1 %v2469_v41  ;;  %v253_v24 = vld [vmem:[#allocation4 + $0x5d0] sm:$0xff]  ;;  %v2485_v25 = vpack.c.bf16 %v251_v18, %v247_v17  ;;  %v258_v26 = vld [vmem:[#allocation4 + $0x618] sm:$0xff]  ;;  %v2487_v28 = vpack.c.bf16 %v260_v21, %v256_v20  ;;  %v255_v29 = vld [vmem:[#allocation4 + $0x600] sm:$0xff] }
  0x5a   :  { %2472 = vmatprep.subr.bf16.mxu1 %v2471_v44  ;;  %v262_v27 = vld [vmem:[#allocation4 + $0x658] sm:$0xff]  ;;  %v259_v30 = vld [vmem:[#allocation4 + $0x640] sm:$0xff]  ;;  %v2549_v31 = vpack.c.bf16 %v253_v24, %v249_v23  ;;  %v264_v32 = vld [vmem:[#allocation4 + $0x688] sm:$0xff] }
  0x5b   :  { %2534 = vmatpush1.bf16.msra.mxu0 %v2533_v47  ;;  %v268_v33 = vld [vmem:[#allocation4 + $0x6c8] sm:$0xff]  ;;  %v2551_v34 = vpack.c.bf16 %v262_v27, %v258_v26  ;;  %v257_v35 = vld [vmem:[#allocation4 + $0x610] sm:$0xff]  ;;  %v2489_v37 = vpack.c.bf16 %v259_v30, %v255_v29  ;;  %v266_v38 = vld [vmem:[#allocation4 + $0x698] sm:$0xff] }
  0x5c   :  { %2536 = vmatprep.subr.bf16.mxu0 %v2535_v50  ;;  %v261_v36 = vld [vmem:[#allocation4 + $0x650] sm:$0xff]  ;;  %v270_v39 = vld [vmem:[#allocation4 + $0x6d8] sm:$0xff]  ;;  %v2491_v40 = vpack.c.bf16 %v268_v33, %v264_v32  ;;  %v263_v41 = vld [vmem:[#allocation4 + $0x680] sm:$0xff] }
  0x5d   :  { %2474 = vmatpush1.bf16.msra.mxu1 %v2473_v53  ;;  %v267_v42 = vld [vmem:[#allocation4 + $0x6c0] sm:$0xff]  ;;  %v2553_v43 = vpack.c.bf16 %v261_v36, %v257_v35  ;;  %v272_v44 = vld [vmem:[#allocation4 + $0x708] sm:$0xff]  ;;  %v2555_v46 = vpack.c.bf16 %v270_v39, %v266_v38  ;;  %v265_v47 = vld [vmem:[#allocation4 + $0x690] sm:$0xff] }
  0x5e   :  { %2476 = vmatprep.subr.bf16.mxu1 %v2475_v56  ;;  %v276_v45 = vld [vmem:[#allocation4 + $0x748] sm:$0xff]  ;;  %v269_v48 = vld [vmem:[#allocation4 + $0x6d0] sm:$0xff]  ;;  %v2493_v49 = vpack.c.bf16 %v267_v42, %v263_v41  ;;  %v274_v50 = vld [vmem:[#allocation4 + $0x718] sm:$0xff] }
  0x5f   :  { %2538 = vmatpush1.bf16.msra.mxu0 %v2537_v59  ;;  %v278_v51 = vld [vmem:[#allocation4 + $0x758] sm:$0xff]  ;;  %v2495_v52 = vpack.c.bf16 %v276_v45, %v272_v44  ;;  %v2557_v53 = vpack.c.bf16 %v269_v48, %v265_v47  ;;  %v271_v55 = vld [vmem:[#allocation4 + $0x700] sm:$0xff]  ;;  %v273_v57 = vld [vmem:[#allocation4 + $0x710] sm:$0xff] }
  0x60   :  { %2540 = vmatprep.subr.bf16.mxu0 %v2539_v62  ;;  %v2559_v54 = vpack.c.bf16 %v278_v51, %v274_v50  ;;  %v275_v56 = vld [vmem:[#allocation4 + $0x740] sm:$0xff]  ;;  %v277_v59 = vld [vmem:[#allocation4 + $0x750] sm:$0xff]  ;;  %v280_v61 = vld [vmem:[#allocation4 + $0x788] sm:$0xff] }
  0x61   :  { %2478 = vmatpush1.bf16.msra.mxu1 %v2477_v1  ;;  %v2497_v58 = vpack.c.bf16 %v275_v56, %v271_v55  ;;  %v2561_v60 = vpack.c.bf16 %v277_v59, %v273_v57  ;;  %v284_v62 = vld [vmem:[#allocation4 + $0x7c8] sm:$0xff]  ;;  %v282_v63 = vld [vmem:[#allocation4 + $0x798] sm:$0xff]  ;;  %v279_v2 = vld [vmem:[#allocation4 + $0x780] sm:$0xff] }
  0x62   :  { %2480 = vmatprep.subr.bf16.mxu1 %v2479_v4  ;;  %v2499_v0 = vpack.c.bf16 %v284_v62, %v280_v61  ;;  %v286_v1 = vld [vmem:[#allocation4 + $0x7d8] sm:$0xff]  ;;  %v283_v3 = vld [vmem:[#allocation4 + $0x7c0] sm:$0xff]  ;;  %v281_v6 = vld [vmem:[#allocation4 + $0x790] sm:$0xff] }
  0x63   :  { %2542 = vmatpush1.bf16.msra.mxu0 %v2541_v7  ;;  %v2563_v4 = vpack.c.bf16 %v286_v1, %v282_v63  ;;  %v2501_v5 = vpack.c.bf16 %v283_v3, %v279_v2  ;;  %v285_v7 = vld [vmem:[#allocation4 + $0x7d0] sm:$0xff]  ;;  %v59_v12 = vld [vmem:[#allocation6] ss:$8 sm:$0x3] }
  0x64   :  { %2544 = vmatprep.subr.bf16.mxu0 %v2543_v10  ;;  %v2565_v8 = vpack.c.bf16 %v285_v7, %v281_v6  ;;  %v3394_v10 = vshrl.u32 %v65_v9, 7  ;;  %v290_v23 = vld [vmem:[#allocation4 + $0x68] sm:$0xff]  ;;  %v287_v24 = vld [vmem:[#allocation4 + $0x20] sm:$0xff] }
  0x65   :  { %2482 = vmatpush1.bf16.msra.mxu1 %v2481_v13  ;;  %v289_v26 = vld [vmem:[#allocation4 + $0x60] sm:$0xff]  ;;  %v292_v27 = vld [vmem:[#allocation4 + $0xa8] sm:$0xff] }
  0x66   :  { %2484 = vmatprep.subr.bf16.mxu1 %v2483_v16  ;;  %v3397_v11 = vsub.s32 0, %v3394_v10  ;;  %v3400_v13 = vsub.s32 1, %v3394_v10  ;;  %v2569_v29 = vpack.c.bf16 %v289_v26, %v287_v24  ;;  %v293_v32 = vld [vmem:[#allocation4 + $0xe0] sm:$0xff]  ;;  %v296_v33 = vld [vmem:[#allocation4 + $0x128] sm:$0xff] }
  0x67   :  { %2546 = vmatpush1.bf16.msra.mxu0 %v2545_v19  ;;  %v297_v38 = vld [vmem:[#allocation4 + $0x160] sm:$0xff]  ;;  %v300_v39 = vld [vmem:[#allocation4 + $0x1a8] sm:$0xff] }
  0x68   :  { %2548 = vmatprep.subr.bf16.mxu0 %v2547_v22  ;;  %v68_v14 = vrot.slane %v59_v12, %v3397_v11  ;;  %v72_v15 = vrot.slane %v59_v12, %v3400_v13  ;;  %v288_v22 = vld [vmem:[#allocation4 + $0x28] sm:$0xff]  ;;  %v301_v44 = vld [vmem:[#allocation4 + $0x1e0] sm:$0xff] }
  0x69   :  { %2486 = vmatpush1.bf16.msra.mxu1 %v2485_v25  ;;  %v2567_v25 = vpack.c.bf16 %v290_v23, %v288_v22  ;;  %v304_v45 = vld [vmem:[#allocation4 + $0x228] sm:$0xff]  ;;  %v305_v50 = vld [vmem:[#allocation4 + $0x260] sm:$0xff] }
  0x6a   :  { %2488 = vmatprep.subr.bf16.mxu1 %v2487_v28  ;;  %v294_v28 = vld [vmem:[#allocation4 + $0xe8] sm:$0xff]  ;;  %v307_v55 = vld [vmem:[#allocation4 + $0x2a0] sm:$0xff] }
  0x6b   :  { %2550 = vmatpush1.bf16.msra.mxu0 %v2549_v31  ;;  %v2571_v30 = vpack.c.bf16 %v294_v28, %v292_v27  ;;  %v291_v31 = vld [vmem:[#allocation4 + $0xa0] sm:$0xff]  ;;  %v308_v51 = vld [vmem:[#allocation4 + $0x2a8] sm:$0xff] }
  0x6c   :  { %2552 = vmatprep.subr.bf16.mxu0 %v2551_v34  ;;  %v298_v34 = vld [vmem:[#allocation4 + $0x168] sm:$0xff]  ;;  %v2573_v35 = vpack.c.bf16 %v293_v32, %v291_v31  ;;  %v309_v56 = vld [vmem:[#allocation4 + $0x2e0] sm:$0xff] }
  0x6d   :  { %2490 = vmatpush1.bf16.msra.mxu1 %v2489_v37  ;;  %v2575_v36 = vpack.c.bf16 %v298_v34, %v296_v33  ;;  %v295_v37 = vld [vmem:[#allocation4 + $0x120] sm:$0xff]  ;;  %v312_v57 = vld [vmem:[#allocation4 + $0x328] sm:$0xff]  ;;  %v2589_v59 = vpack.c.bf16 %v309_v56, %v307_v55 }
  0x6e   :  { %2492 = vmatprep.subr.bf16.mxu1 %v2491_v40  ;;  %v302_v40 = vld [vmem:[#allocation4 + $0x1e8] sm:$0xff]  ;;  %v2577_v41 = vpack.c.bf16 %v297_v38, %v295_v37  ;;  %v311_v61 = vld [vmem:[#allocation4 + $0x320] sm:$0xff] }
  0x6f   :  { %2554 = vmatpush1.bf16.msra.mxu0 %v2553_v43  ;;  %v2579_v42 = vpack.c.bf16 %v302_v40, %v300_v39  ;;  %v299_v43 = vld [vmem:[#allocation4 + $0x1a0] sm:$0xff]  ;;  %v316_v63 = vld [vmem:[#allocation4 + $0x3a8] sm:$0xff] }
  0x70   :  { %2556 = vmatprep.subr.bf16.mxu0 %v2555_v46  ;;  %v306_v46 = vld [vmem:[#allocation4 + $0x268] sm:$0xff]  ;;  %v2581_v47 = vpack.c.bf16 %v301_v44, %v299_v43  ;;  %v313_v62 = vld [vmem:[#allocation4 + $0x360] sm:$0xff] }
  0x71   :  { %2494 = vmatpush1.bf16.msra.mxu1 %v2493_v49  ;;  %v2583_v48 = vpack.c.bf16 %v306_v46, %v304_v45  ;;  %v303_v49 = vld [vmem:[#allocation4 + $0x220] sm:$0xff]  ;;  %v2593_v1 = vpack.c.bf16 %v313_v62, %v311_v61  ;;  %v322_v6 = vld [vmem:[#allocation4 + $0x468] sm:$0xff] }
  0x72   :  { %2496 = vmatprep.subr.bf16.mxu1 %v2495_v52  ;;  %v310_v52 = vld [vmem:[#allocation4 + $0x2e8] sm:$0xff]  ;;  %v315_v3 = vld [vmem:[#allocation4 + $0x3a0] sm:$0xff] }
  0x73   :  { %2558 = vmatpush1.bf16.msra.mxu0 %v2557_v53  ;;  %v2585_v53 = vpack.c.bf16 %v305_v50, %v303_v49  ;;  %v319_v9 = vld [vmem:[#allocation4 + $0x420] sm:$0xff]  ;;  %v324_v32 = vld [vmem:[#allocation4 + $0x4a8] sm:$0xff] }
  0x74   :  { %2560 = vmatprep.subr.bf16.mxu0 %v2559_v54  ;;  %v2587_v54 = vpack.c.bf16 %v310_v52, %v308_v51  ;;  %v321_v12 = vld [vmem:[#allocation4 + $0x460] sm:$0xff]  ;;  %v326_v33 = vld [vmem:[#allocation4 + $0x4e8] sm:$0xff] }
  0x75   :  { %2498 = vmatpush1.bf16.msra.mxu1 %v2497_v58  ;;  %v314_v58 = vld [vmem:[#allocation4 + $0x368] sm:$0xff]  ;;  %v2603_v34 = vpack.c.bf16 %v326_v33, %v324_v32 }
  0x76   :  { %2500 = vmatprep.subr.bf16.mxu1 %v2499_v0  ;;  %v318_v0 = vld [vmem:[#allocation4 + $0x3e8] sm:$0xff] }
  0x77   :  { %2562 = vmatpush1.bf16.msra.mxu0 %v2561_v60  ;;  %v2591_v60 = vpack.c.bf16 %v314_v58, %v312_v57  ;;  %v2595_v2 = vpack.c.bf16 %v318_v0, %v316_v63  ;;  %v328_v38 = vld [vmem:[#allocation4 + $0x528] sm:$0xff]  ;;  %v339_v58 = vld [vmem:[#allocation4 + $0x6a0] sm:$0xff] }
  0x78   :  { %2564 = vmatprep.subr.bf16.mxu0 %v2563_v4  ;;  %v317_v4 = vld [vmem:[#allocation4 + $0x3e0] sm:$0xff]  ;;  %v330_v39 = vld [vmem:[#allocation4 + $0x568] sm:$0xff] }
  0x79   :  { %2502 = vmatpush1.bf16.msra.mxu1 %v2501_v5  ;;  %v320_v5 = vld [vmem:[#allocation4 + $0x428] sm:$0xff]  ;;  %v2597_v7 = vpack.c.bf16 %v317_v4, %v315_v3  ;;  %v2607_v40 = vpack.c.bf16 %v330_v39, %v328_v38 }
  0x7a   :  { %2568 = vmatprep.subr.bf16.mxu1 %v2567_v25  ;;  %v332_v44 = vld [vmem:[#allocation4 + $0x5a8] sm:$0xff] }
  0x7b   :  { %2566 = vmatpush1.bf16.msra.mxu0 %v2565_v8  ;;  %v2599_v8 = vpack.c.bf16 %v322_v6, %v320_v5  ;;  %v334_v45 = vld [vmem:[#allocation4 + $0x5e8] sm:$0xff] }
  0x7c   :  { %v2611_v46 = vpack.c.bf16 %v334_v45, %v332_v44  ;;  %v336_v50 = vld [vmem:[#allocation4 + $0x628] sm:$0xff]  ;;  %v353_v44 = vld [vmem:[#allocation4 + $0x70] sm:$0xff]  ;;  %v356_v45 = vld [vmem:[#allocation4 + $0xb8] sm:$0xff] }
  0x7d   :  { %v338_v51 = vld [vmem:[#allocation4 + $0x668] sm:$0xff] }
  0x7e   :  { %v2615_v52 = vpack.c.bf16 %v338_v51, %v336_v50  ;;  %v340_v55 = vld [vmem:[#allocation4 + $0x6a8] sm:$0xff]  ;;  %v357_v50 = vld [vmem:[#allocation4 + $0xf0] sm:$0xff]  ;;  %v360_v51 = vld [vmem:[#allocation4 + $0x138] sm:$0xff] }
  0x7f   :  { %v342_v57 = vld [vmem:[#allocation4 + $0x6e8] sm:$0xff] }
  0x80   :  { %v344_v61 = vld [vmem:[#allocation4 + $0x728] sm:$0xff] }
  0x81   :  { %v346_v62 = vld [vmem:[#allocation4 + $0x768] sm:$0xff] }
  0x82   :  { %v2623_v0 = vpack.c.bf16 %v346_v62, %v344_v61  ;;  %v348_v3 = vld [vmem:[#allocation4 + $0x7a8] sm:$0xff]  ;;  %v363_v61 = vld [vmem:[#allocation4 + $0x1b0] sm:$0xff] }
  0x83   :  { %v350_v4 = vld [vmem:[#allocation4 + $0x7e8] sm:$0xff]  ;;  %v365_v62 = vld [vmem:[#allocation4 + $0x1f0] sm:$0xff] }
  0x84   :  { %v2627_v6 = vpack.c.bf16 %v350_v4, %v348_v3  ;;  %v367_v3 = vld [vmem:[#allocation4 + $0x230] sm:$0xff] }
  0x85   :  { %v369_v4 = vld [vmem:[#allocation4 + $0x270] sm:$0xff] }
 0x111   :  { %v152_v16 = vpop.f32.mrb[0].mxu0 }
 0x112   :  { %v153_v17 = vadd.f32 %v152_v16, %v68_v14  ;;  %v154_v18 = vpop.f32.mrb[1].mxu0  ;;  %v2601_v14 = vpack.c.bf16 %v321_v12, %v319_v9 }
 0x113   :  { %v155_v19 = vadd.f32 %v154_v18, %v72_v15  ;;  %v416_v15 = vld [vmem:[#allocation6 + $0x1] ss:$8 sm:$0xf] }
 0x114   :  { %v3406_v21 = vmax.f32 %v153_v17, 0.0  ;;  %v437_v16 = vrot.slane %v416_v15, %v3397_v11  ;;  %v441_v17 = vrot.slane %v416_v15, %v3400_v13 }
 0x115   :  { %v3404_v20 = vmax.f32 %v155_v19, 0.0 }
 0x117   :  { %518 = vmatprep.mubr.f32.mxu1 %v3404_v20  ;;  %589 = vmatprep.mubr.f32.mxu0 %v3404_v20 }
 0x118   :  { %519 = vmatmul.mubr.f32.vlgmr.msra.gmra.mrb[0].mxu1 %v3406_v21  ;;  %590 = vmatmul.mubr.f32.vlgmr.msra.gmra.mrb[2].mxu0 %v3406_v21 }
 0x119   :  { %2570 = vmatpush1.bf16.msra.mxu1 %v2569_v29 }
 0x11a   :  { %2572 = vmatprep.subr.bf16.mxu1 %v2571_v30 }
 0x11d   :  { %2574 = vmatpush1.bf16.msra.mxu1 %v2573_v35  ;;  %v323_v35 = vld [vmem:[#allocation4 + $0x4a0] sm:$0xff] }
 0x11e   :  { %2576 = vmatprep.subr.bf16.mxu1 %v2575_v36  ;;  %v325_v36 = vld [vmem:[#allocation4 + $0x4e0] sm:$0xff] }
 0x11f   :  { %v2605_v37 = vpack.c.bf16 %v325_v36, %v323_v35 }
 0x121   :  { %2578 = vmatpush1.bf16.msra.mxu1 %v2577_v41  ;;  %v327_v41 = vld [vmem:[#allocation4 + $0x520] sm:$0xff] }
 0x122   :  { %2580 = vmatprep.subr.bf16.mxu1 %v2579_v42  ;;  %v329_v42 = vld [vmem:[#allocation4 + $0x560] sm:$0xff] }
 0x123   :  { %v2609_v43 = vpack.c.bf16 %v329_v42, %v327_v41  ;;  %v354_v42 = vld [vmem:[#allocation4 + $0x78] sm:$0xff] }
 0x125   :  { %2582 = vmatpush1.bf16.msra.mxu1 %v2581_v47  ;;  %v331_v47 = vld [vmem:[#allocation4 + $0x5a0] sm:$0xff] }
 0x126   :  { %2584 = vmatprep.subr.bf16.mxu1 %v2583_v48  ;;  %v333_v48 = vld [vmem:[#allocation4 + $0x5e0] sm:$0xff] }
 0x127   :  { %v2613_v49 = vpack.c.bf16 %v333_v48, %v331_v47 }
 0x129   :  { %2586 = vmatpush1.bf16.msra.mxu1 %v2585_v53  ;;  %v335_v53 = vld [vmem:[#allocation4 + $0x620] sm:$0xff] }
 0x12a   :  { %2588 = vmatprep.subr.bf16.mxu1 %v2587_v54  ;;  %v337_v54 = vld [vmem:[#allocation4 + $0x660] sm:$0xff] }
 0x12b   :  { %v2617_v56 = vpack.c.bf16 %v337_v54, %v335_v53 }
 0x12d   :  { %2590 = vmatpush1.bf16.msra.mxu1 %v2589_v59  ;;  %v341_v59 = vld [vmem:[#allocation4 + $0x6e0] sm:$0xff] }
 0x12e   :  { %2592 = vmatprep.subr.bf16.mxu1 %v2591_v60  ;;  %v2619_v60 = vpack.c.bf16 %v342_v57, %v340_v55  ;;  %v2621_v63 = vpack.c.bf16 %v341_v59, %v339_v58  ;;  %v359_v55 = vld [vmem:[#allocation4 + $0x130] sm:$0xff]  ;;  %v364_v57 = vld [vmem:[#allocation4 + $0x1b8] sm:$0xff] }
 0x12f   :  { %v366_v58 = vld [vmem:[#allocation4 + $0x1f8] sm:$0xff] }
 0x131   :  { %2594 = vmatpush1.bf16.msra.mxu1 %v2593_v1  ;;  %v343_v1 = vld [vmem:[#allocation4 + $0x720] sm:$0xff] }
 0x132   :  { %2596 = vmatprep.subr.bf16.mxu1 %v2595_v2  ;;  %v345_v2 = vld [vmem:[#allocation4 + $0x760] sm:$0xff] }
 0x133   :  { %v2625_v5 = vpack.c.bf16 %v345_v2, %v343_v1  ;;  %v2645_v1 = vpack.c.bf16 %v365_v62, %v363_v61  ;;  %v396_v62 = vld [vmem:[#allocation4 + $0x5b8] sm:$0xff] }
 0x135   :  { %2598 = vmatpush1.bf16.msra.mxu1 %v2597_v7  ;;  %v347_v7 = vld [vmem:[#allocation4 + $0x7a0] sm:$0xff] }
 0x136   :  { %2600 = vmatprep.subr.bf16.mxu1 %v2599_v8  ;;  %v349_v8 = vld [vmem:[#allocation4 + $0x7e0] sm:$0xff] }
 0x137   :  { %v2629_v9 = vpack.c.bf16 %v349_v8, %v347_v7  ;;  %v2649_v7 = vpack.c.bf16 %v369_v4, %v367_v3  ;;  %v400_v4 = vld [vmem:[#allocation4 + $0x638] sm:$0xff] }
 0x139   :  { %2602 = vmatpush1.bf16.msra.mxu1 %v2601_v14 }
 0x13a   :  { %2604 = vmatprep.subr.bf16.mxu1 %v2603_v34 }
 0x13d   :  { %2606 = vmatpush1.bf16.msra.mxu1 %v2605_v37 }
 0x13e   :  { %2608 = vmatprep.subr.bf16.mxu1 %v2607_v40 }
 0x141   :  { %2610 = vmatpush1.bf16.msra.mxu1 %v2609_v43 }
 0x142   :  { %2612 = vmatprep.subr.bf16.mxu1 %v2611_v46  ;;  %v358_v46 = vld [vmem:[#allocation4 + $0xf8] sm:$0xff] }
 0x143   :  { %v2635_v48 = vpack.c.bf16 %v358_v46, %v356_v45 }
 0x145   :  { %2614 = vmatpush1.bf16.msra.mxu1 %v2613_v49  ;;  %v355_v49 = vld [vmem:[#allocation4 + $0xb0] sm:$0xff] }
 0x146   :  { %2616 = vmatprep.subr.bf16.mxu1 %v2615_v52  ;;  %v362_v52 = vld [vmem:[#allocation4 + $0x178] sm:$0xff]  ;;  %v2637_v53 = vpack.c.bf16 %v357_v50, %v355_v49 }
 0x147   :  { %v2639_v54 = vpack.c.bf16 %v362_v52, %v360_v51  ;;  %v388_v50 = vld [vmem:[#allocation4 + $0x4b8] sm:$0xff] }
 0x148   :  { %v390_v51 = vld [vmem:[#allocation4 + $0x4f8] sm:$0xff] }
 0x149   :  { %2618 = vmatpush1.bf16.msra.mxu1 %v2617_v56  ;;  %v361_v56 = vld [vmem:[#allocation4 + $0x170] sm:$0xff]  ;;  %v2667_v52 = vpack.c.bf16 %v390_v51, %v388_v50 }
 0x14a   :  { %2620 = vmatprep.subr.bf16.mxu1 %v2619_v60  ;;  %v2641_v59 = vpack.c.bf16 %v361_v56, %v359_v55  ;;  %v2643_v60 = vpack.c.bf16 %v366_v58, %v364_v57  ;;  %v392_v56 = vld [vmem:[#allocation4 + $0x538] sm:$0xff] }
 0x14b   :  { %v394_v57 = vld [vmem:[#allocation4 + $0x578] sm:$0xff] }
 0x14c   :  { %v2671_v58 = vpack.c.bf16 %v394_v57, %v392_v56 }
 0x14d   :  { %2622 = vmatpush1.bf16.msra.mxu1 %v2621_v63  ;;  %v368_v63 = vld [vmem:[#allocation4 + $0x238] sm:$0xff] }
 0x14e   :  { %2624 = vmatprep.subr.bf16.mxu1 %v2623_v0  ;;  %v370_v0 = vld [vmem:[#allocation4 + $0x278] sm:$0xff] }
 0x14f   :  { %v2647_v2 = vpack.c.bf16 %v370_v0, %v368_v63  ;;  %v398_v63 = vld [vmem:[#allocation4 + $0x5f8] sm:$0xff] }
 0x150   :  { %v2675_v0 = vpack.c.bf16 %v398_v63, %v396_v62  ;;  %v914_v62 = vld [vmem:[#allocation4 + $0x858] sm:$0xff]  ;;  %v907_v63 = vld [vmem:[#allocation4 + $0x800] sm:$0xff] }
 0x151   :  { %2626 = vmatpush1.bf16.msra.mxu1 %v2625_v5  ;;  %v372_v5 = vld [vmem:[#allocation4 + $0x2b8] sm:$0xff] }
 0x152   :  { %2628 = vmatprep.subr.bf16.mxu1 %v2627_v6  ;;  %v374_v6 = vld [vmem:[#allocation4 + $0x2f8] sm:$0xff] }
 0x153   :  { %v2651_v8 = vpack.c.bf16 %v374_v6, %v372_v5  ;;  %v402_v5 = vld [vmem:[#allocation4 + $0x678] sm:$0xff] }
 0x154   :  { %v2679_v6 = vpack.c.bf16 %v402_v5, %v400_v4  ;;  %v913_v4 = vld [vmem:[#allocation4 + $0x850] sm:$0xff]  ;;  %v916_v5 = vld [vmem:[#allocation4 + $0x888] sm:$0xff] }
 0x155   :  { %2630 = vmatpush1.bf16.msra.mxu1 %v2629_v9  ;;  %v371_v9 = vld [vmem:[#allocation4 + $0x2b0] sm:$0xff] }
 0x1eb   :  { %v520_v18 = vpop.f32.mrb[0].mxu1  ;;  %v3414_v19 = vpop.f32.mrb[2].mxu0 }
 0x1ec   :  { %v521_v22 = vadd.f32 %v520_v18, %v437_v16  ;;  %v522_v23 = vpop.f32.mrb[1].mxu1  ;;  %v3416_v24 = vpop.f32.mrb[3].mxu0 }
 0x1ed   :  { %v523_v25 = vadd.f32 %v522_v23, %v441_v17 }
 0x1ee   :  { %v3418_v26 = vmax.f32 %v521_v22, 0.0 }
 0x1ef   :  { %v3420_v27 = vmax.f32 %v523_v25, 0.0  ;;  %v422_v25 = vld [vmem:[#allocation6 + $0x2] ss:$8 sm:$0x3] }
 0x1f0   :  { %v603_v29 = vmul.f32 %v3418_v26, %v3418_v26  ;;  %v626_v32 = vrot.slane %v422_v25, %v3400_v13 }
 0x1f1   :  { %v598_v28 = vadd.f32 %v3420_v27, %v3418_v26  ;;  %v604_v30 = vmul.f32 %v3420_v27, %v3420_v27 }
 0x1f3   :  { %599 = vadd.xlane.f32.xlu0 %v598_v28  ;;  %v605_v31 = vadd.f32 %v604_v30, %v603_v29  ;;  %v428_v28 = vld [vmem:[#allocation6 + $0x3] ss:$8 sm:$0x3] }
 0x1f4   :  { %v635_v35 = vrot.slane %v428_v28, %v3397_v11  ;;  %v639_v36 = vrot.slane %v428_v28, %v3400_v13 }
 0x1f7   :  { %606 = vadd.xlane.f32.xlu0 %v605_v31  ;;  %v622_v31 = vrot.slane %v422_v25, %v3397_v11  ;;  %v382_v25 = vld [vmem:[#allocation4 + $0x3f8] sm:$0xff] }
 0x280   :  { %v600_v12 = vpop.xlane.xlu0 %599 }
 0x281   :  { %v602_v14 = vmul.f32 0.00390625, %v600_v12  ;;  %v373_v12 = vld [vmem:[#allocation4 + $0x2f0] sm:$0xff] }
 0x283   :  { %v609_v16 = vmul.f32 %v602_v14, %v602_v14  ;;  %v612_v29 = vsub.f32 %v3418_v26, %v602_v14  ;;  %v613_v30 = vsub.f32 %v3420_v27, %v602_v14  ;;  %v352_v26 = vld [vmem:[#allocation4 + $0x38] sm:$0xff]  ;;  %v351_v27 = vld [vmem:[#allocation4 + $0x30] sm:$0xff] }
 0x284   :  { %v607_v15 = vpop.xlane.xlu0 %606  ;;  %v2631_v43 = vpack.c.bf16 %v354_v42, %v352_v26  ;;  %v2633_v47 = vpack.c.bf16 %v353_v44, %v351_v27  ;;  %v376_v14 = vld [vmem:[#allocation4 + $0x338] sm:$0xff] }
 0x285   :  { %v608_v17 = vmul.f32 0.00390625, %v607_v15  ;;  %v378_v15 = vld [vmem:[#allocation4 + $0x378] sm:$0xff] }
 0x286   :  { %2632 = vmatprep.subr.bf16.mxu0 %v2631_v43 }
 0x287   :  { %v610_v18 = vsub.f32 %v608_v17, %v609_v16  ;;  %2634 = vmatpush1.bf16.msra.mxu0 %v2633_v47  ;;  %v2653_v16 = vpack.c.bf16 %v373_v12, %v371_v9  ;;  %v2655_v17 = vpack.c.bf16 %v378_v15, %v376_v14  ;;  %v404_v9 = vld [vmem:[#allocation4 + $0x6b8] sm:$0xff]  ;;  %v403_v15 = vld [vmem:[#allocation4 + $0x6b0] sm:$0xff] }
 0x288   :  { %2636 = vmatprep.subr.bf16.mxu0 %v2635_v48  ;;  %v406_v14 = vld [vmem:[#allocation4 + $0x6f8] sm:$0xff] }
 0x289   :  { %v611_v22 = vmax.f32 %v610_v18, 0.0  ;;  %v375_v18 = vld [vmem:[#allocation4 + $0x330] sm:$0xff] }
 0x28b   :  { %v614_v23 = vadd.f32 1e-05, %v611_v22  ;;  %2638 = vmatpush1.bf16.msra.mxu0 %v2637_v53  ;;  %v377_v22 = vld [vmem:[#allocation4 + $0x370] sm:$0xff] }
 0x28c   :  { %2640 = vmatprep.subr.bf16.mxu0 %v2639_v54  ;;  %v2657_v28 = vpack.c.bf16 %v377_v22, %v375_v18  ;;  %v387_v53 = vld [vmem:[#allocation4 + $0x4b0] sm:$0xff]  ;;  %v408_v18 = vld [vmem:[#allocation4 + $0x738] sm:$0xff] }
 0x28d   :  { %3216 = vrsqrt.f32 %v614_v23  ;;  %v380_v23 = vld [vmem:[#allocation4 + $0x3b8] sm:$0xff]  ;;  %v389_v54 = vld [vmem:[#allocation4 + $0x4f0] sm:$0xff] }
 0x28e   :  { %v2669_v55 = vpack.c.bf16 %v389_v54, %v387_v53  ;;  %v410_v22 = vld [vmem:[#allocation4 + $0x778] sm:$0xff] }
 0x28f   :  { %2642 = vmatpush1.bf16.msra.mxu0 %v2641_v59  ;;  %v391_v59 = vld [vmem:[#allocation4 + $0x530] sm:$0xff] }
 0x290   :  { %2644 = vmatprep.subr.bf16.mxu0 %v2643_v60  ;;  %v393_v60 = vld [vmem:[#allocation4 + $0x570] sm:$0xff] }
 0x291   :  { %v2673_v61 = vpack.c.bf16 %v393_v60, %v391_v59  ;;  %v912_v60 = vld [vmem:[#allocation4 + $0x848] sm:$0xff] }
 0x293   :  { %2646 = vmatpush1.bf16.msra.mxu0 %v2645_v1  ;;  %v395_v1 = vld [vmem:[#allocation4 + $0x5b0] sm:$0xff] }
 0x294   :  { %2648 = vmatprep.subr.bf16.mxu0 %v2647_v2  ;;  %v397_v2 = vld [vmem:[#allocation4 + $0x5f0] sm:$0xff] }
 0x295   :  { %v2677_v3 = vpack.c.bf16 %v397_v2, %v395_v1 }
 0x297   :  { %v3217_v33 = vpop.eup %3216  ;;  %2650 = vmatpush1.bf16.msra.mxu0 %v2649_v7  ;;  %v399_v7 = vld [vmem:[#allocation4 + $0x630] sm:$0xff] }
 0x298   :  { %v617_v34 = vmul.f32 %v3217_v33, %v613_v30  ;;  %v616_v37 = vmul.f32 %v3217_v33, %v612_v29  ;;  %2652 = vmatprep.subr.bf16.mxu0 %v2651_v8  ;;  %v2659_v29 = vpack.c.bf16 %v382_v25, %v380_v23  ;;  %v379_v30 = vld [vmem:[#allocation4 + $0x3b0] sm:$0xff]  ;;  %v386_v33 = vld [vmem:[#allocation4 + $0x478] sm:$0xff]  ;;  %v2687_v25 = vpack.c.bf16 %v410_v22, %v408_v18 }
 0x299   :  { %v401_v8 = vld [vmem:[#allocation4 + $0x670] sm:$0xff] }
 0x29a   :  { %v630_v38 = vmul.f32 %v626_v32, %v617_v34  ;;  %v629_v39 = vmul.f32 %v622_v31, %v616_v37  ;;  %v381_v31 = vld [vmem:[#allocation4 + $0x3f0] sm:$0xff]  ;;  %v384_v32 = vld [vmem:[#allocation4 + $0x438] sm:$0xff]  ;;  %v2681_v12 = vpack.c.bf16 %v401_v8, %v399_v7  ;;  %v920_v7 = vld [vmem:[#allocation4 + $0x8c8] sm:$0xff] }
 0x29b   :  { %2654 = vmatpush1.bf16.msra.mxu0 %v2653_v16  ;;  %v2661_v34 = vpack.c.bf16 %v381_v31, %v379_v30  ;;  %v385_v37 = vld [vmem:[#allocation4 + $0x470] sm:$0xff]  ;;  %v412_v30 = vld [vmem:[#allocation4 + $0x7b8] sm:$0xff] }
 0x29c   :  { %v643_v40 = vadd.f32 %v639_v36, %v630_v38  ;;  %v642_v41 = vadd.f32 %v635_v35, %v629_v39  ;;  %2656 = vmatprep.subr.bf16.mxu0 %v2655_v17  ;;  %v2663_v35 = vpack.c.bf16 %v386_v33, %v384_v32  ;;  %v383_v36 = vld [vmem:[#allocation4 + $0x430] sm:$0xff]  ;;  %v418_v39 = vld [vmem:[#allocation6 + $0x21] ss:$8 sm:$0x3]  ;;  %v2683_v17 = vpack.c.bf16 %v406_v14, %v404_v9  ;;  %v414_v31 = vld [vmem:[#allocation4 + $0x7f8] sm:$0xff] }
 0x29d   :  { %v2665_v38 = vpack.c.bf16 %v385_v37, %v383_v36  ;;  %v405_v16 = vld [vmem:[#allocation4 + $0x6f0] sm:$0xff]  ;;  %v2691_v33 = vpack.c.bf16 %v414_v31, %v412_v30  ;;  %v918_v8 = vld [vmem:[#allocation4 + $0x898] sm:$0xff] }
 0x29e   :  { %719 = vmatprep.mubr.f32.mxu1 %v643_v40  ;;  %v648_v40 = vrot.slane %v418_v39, %v3397_v11  ;;  %v2685_v23 = vpack.c.bf16 %v405_v16, %v403_v15  ;;  %v922_v9 = vld [vmem:[#allocation4 + $0x8d8] sm:$0xff]  ;;  %v915_v15 = vld [vmem:[#allocation4 + $0x880] sm:$0xff]  ;;  %v921_v22 = vld [vmem:[#allocation4 + $0x8d0] sm:$0xff] }
 0x29f   :  { %720 = vmatmul.mubr.f32.vlgmr.msra.gmra.mrb[2].mxu1 %v642_v41  ;;  %2658 = vmatpush1.bf16.msra.mxu0 %v2657_v28  ;;  %v652_v41 = vrot.slane %v418_v39, %v3400_v13  ;;  %v407_v28 = vld [vmem:[#allocation4 + $0x730] sm:$0xff]  ;;  %v2763_v14 = vpack.c.bf16 %v922_v9, %v918_v8  ;;  %v919_v16 = vld [vmem:[#allocation4 + $0x8c0] sm:$0xff]  ;;  %v926_v30 = vld [vmem:[#allocation4 + $0x918] sm:$0xff] }
 0x2a0   :  { %2660 = vmatprep.subr.bf16.mxu0 %v2659_v29  ;;  %v409_v29 = vld [vmem:[#allocation4 + $0x770] sm:$0xff]  ;;  %v2701_v18 = vpack.c.bf16 %v919_v16, %v915_v15  ;;  %v930_v31 = vld [vmem:[#allocation4 + $0x958] sm:$0xff]  ;;  %v960_v8 = vld [vmem:[#allocation4 + $0xb48] sm:$0xff] }
 0x2a1   :  { %v2689_v32 = vpack.c.bf16 %v409_v29, %v407_v28  ;;  %v958_v9 = vld [vmem:[#allocation4 + $0xb18] sm:$0xff] }
 0x2a3   :  { %2662 = vmatpush1.bf16.msra.mxu0 %v2661_v34  ;;  %v411_v34 = vld [vmem:[#allocation4 + $0x7b0] sm:$0xff] }
 0x2a4   :  { %2664 = vmatprep.subr.bf16.mxu0 %v2663_v35  ;;  %v413_v35 = vld [vmem:[#allocation4 + $0x7f0] sm:$0xff] }
 0x2a5   :  { %v2693_v36 = vpack.c.bf16 %v413_v35, %v411_v34  ;;  %v927_v34 = vld [vmem:[#allocation4 + $0x940] sm:$0xff]  ;;  %v925_v35 = vld [vmem:[#allocation4 + $0x910] sm:$0xff] }
 0x2a7   :  { %2666 = vmatpush1.bf16.msra.mxu0 %v2665_v38 }
 0x2a8   :  { %2668 = vmatprep.subr.bf16.mxu0 %v2667_v52 }
 0x2ab   :  { %2670 = vmatpush1.bf16.msra.mxu0 %v2669_v55 }
 0x2ac   :  { %2672 = vmatprep.subr.bf16.mxu0 %v2671_v58 }
 0x2af   :  { %2674 = vmatpush1.bf16.msra.mxu0 %v2673_v61 }
 0x2b0   :  { %2676 = vmatprep.subr.bf16.mxu0 %v2675_v0  ;;  %v911_v0 = vld [vmem:[#allocation4 + $0x840] sm:$0xff] }
 0x2b1   :  { %v2697_v2 = vpack.c.bf16 %v911_v0, %v907_v63 }
 0x2b3   :  { %2678 = vmatpush1.bf16.msra.mxu0 %v2677_v3  ;;  %v909_v3 = vld [vmem:[#allocation4 + $0x810] sm:$0xff] }
 0x2b4   :  { %2680 = vmatprep.subr.bf16.mxu0 %v2679_v6  ;;  %v2761_v6 = vpack.c.bf16 %v913_v4, %v909_v3  ;;  %v951_v3 = vld [vmem:[#allocation4 + $0xac0] sm:$0xff]  ;;  %v949_v4 = vld [vmem:[#allocation4 + $0xa90] sm:$0xff] }
 0x2b7   :  { %2682 = vmatpush1.bf16.msra.mxu0 %v2681_v12  ;;  %v2699_v12 = vpack.c.bf16 %v920_v7, %v916_v5  ;;  %v956_v7 = vld [vmem:[#allocation4 + $0xb08] sm:$0xff] }
 0x2b8   :  { %2684 = vmatprep.subr.bf16.mxu0 %v2683_v17  ;;  %v917_v17 = vld [vmem:[#allocation4 + $0x890] sm:$0xff]  ;;  %v2719_v16 = vpack.c.bf16 %v960_v8, %v956_v7  ;;  %v983_v7 = vld [vmem:[#allocation4 + $0xcc0] sm:$0xff] }
 0x2b9   :  { %v2765_v28 = vpack.c.bf16 %v921_v22, %v917_v17  ;;  %v955_v17 = vld [vmem:[#allocation4 + $0xb00] sm:$0xff]  ;;  %v957_v22 = vld [vmem:[#allocation4 + $0xb10] sm:$0xff] }
 0x2bb   :  { %2686 = vmatpush1.bf16.msra.mxu0 %v2685_v23  ;;  %v924_v23 = vld [vmem:[#allocation4 + $0x908] sm:$0xff] }
 0x2bc   :  { %2688 = vmatprep.subr.bf16.mxu0 %v2687_v25  ;;  %v928_v25 = vld [vmem:[#allocation4 + $0x948] sm:$0xff] }
 0x2bd   :  { %v2703_v29 = vpack.c.bf16 %v928_v25, %v924_v23  ;;  %v961_v25 = vld [vmem:[#allocation4 + $0xb50] sm:$0xff] }
 0x2bf   :  { %2690 = vmatpush1.bf16.msra.mxu0 %v2689_v32  ;;  %v923_v32 = vld [vmem:[#allocation4 + $0x900] sm:$0xff] }
 0x2c0   :  { %2692 = vmatprep.subr.bf16.mxu0 %v2691_v33  ;;  %v2767_v33 = vpack.c.bf16 %v930_v31, %v926_v30  ;;  %v966_v30 = vld [vmem:[#allocation4 + $0xb98] sm:$0xff] }
 0x2c1   :  { %v970_v31 = vld [vmem:[#allocation4 + $0xbd8] sm:$0xff] }
 0x2c3   :  { %2694 = vmatpush1.bf16.msra.mxu0 %v2693_v36  ;;  %v929_v36 = vld [vmem:[#allocation4 + $0x950] sm:$0xff] }
 0x372   :  { %v721_v26 = vpop.f32.mrb[2].mxu1 }
 0x373   :  { %v722_v42 = vadd.f32 %v721_v26, %v648_v40  ;;  %v723_v27 = vpop.f32.mrb[3].mxu1 }
 0x374   :  { %v724_v43 = vadd.f32 %v723_v27, %v652_v41 }
 0x375   :  { %v3436_v44 = vmax.f32 %v722_v42, 0.0 }
 0x376   :  { %v3438_v45 = vmax.f32 %v724_v43, 0.0  ;;  %v424_v43 = vld [vmem:[#allocation6 + $0x12] ss:$8 sm:$0x3] }
 0x377   :  { %v732_v47 = vmul.f32 %v3436_v44, %v3436_v44  ;;  %v755_v50 = vrot.slane %v424_v43, %v3400_v13 }
 0x378   :  { %v728_v46 = vadd.f32 %v3438_v45, %v3436_v44  ;;  %v733_v48 = vmul.f32 %v3438_v45, %v3438_v45 }
 0x37a   :  { %729 = vadd.xlane.f32.xlu1 %v728_v46  ;;  %v734_v49 = vadd.f32 %v733_v48, %v732_v47  ;;  %v430_v46 = vld [vmem:[#allocation6 + $0x13] ss:$8 sm:$0x3] }
 0x37b   :  { %v764_v53 = vrot.slane %v430_v46, %v3397_v11  ;;  %v768_v54 = vrot.slane %v430_v46, %v3400_v13 }
 0x37e   :  { %735 = vadd.xlane.f32.xlu1 %v734_v49  ;;  %v751_v49 = vrot.slane %v424_v43, %v3397_v11  ;;  %v935_v43 = vld [vmem:[#allocation4 + $0x9c0] sm:$0xff] }
 0x407   :  { %v730_v37 = vpop.xlane.xlu1 %729 }
 0x408   :  { %v731_v38 = vmul.f32 0.00390625, %v730_v37  ;;  %v2705_v37 = vpack.c.bf16 %v927_v34, %v923_v32 }
 0x40a   :  { %v738_v40 = vmul.f32 %v731_v38, %v731_v38  ;;  %v741_v47 = vsub.f32 %v3436_v44, %v731_v38  ;;  %v742_v48 = vsub.f32 %v3438_v45, %v731_v38  ;;  %v908_v44 = vld [vmem:[#allocation4 + $0x808] sm:$0xff]  ;;  %v910_v45 = vld [vmem:[#allocation4 + $0x818] sm:$0xff] }
 0x40b   :  { %v736_v39 = vpop.xlane.xlu1 %735  ;;  %v2695_v61 = vpack.c.bf16 %v912_v60, %v908_v44  ;;  %v2759_v1 = vpack.c.bf16 %v914_v62, %v910_v45  ;;  %v932_v38 = vld [vmem:[#allocation4 + $0x988] sm:$0xff]  ;;  %v945_v44 = vld [vmem:[#allocation4 + $0xa50] sm:$0xff]  ;;  %v954_v62 = vld [vmem:[#allocation4 + $0xad8] sm:$0xff] }
 0x40c   :  { %v737_v41 = vmul.f32 0.00390625, %v736_v39  ;;  %v936_v39 = vld [vmem:[#allocation4 + $0x9c8] sm:$0xff] }
 0x40d   :  { %2696 = vmatprep.subr.bf16.mxu1 %v2695_v61  ;;  %2760 = vmatprep.subr.bf16.mxu0 %v2759_v1  ;;  %v948_v60 = vld [vmem:[#allocation4 + $0xa88] sm:$0xff]  ;;  %v950_v61 = vld [vmem:[#allocation4 + $0xa98] sm:$0xff] }
 0x40e   :  { %v739_v26 = vsub.f32 %v737_v41, %v738_v40  ;;  %2698 = vmatpush1.bf16.msra.mxu1 %v2697_v2  ;;  %v934_v40 = vld [vmem:[#allocation4 + $0x998] sm:$0xff]  ;;  %v2769_v41 = vpack.c.bf16 %v929_v36, %v925_v35  ;;  %v952_v45 = vld [vmem:[#allocation4 + $0xac8] sm:$0xff]  ;;  %v947_v2 = vld [vmem:[#allocation4 + $0xa80] sm:$0xff]  ;;  %v2779_v5 = vpack.c.bf16 %v954_v62, %v950_v61 }
 0x40f   :  { %2700 = vmatprep.subr.bf16.mxu1 %v2699_v12  ;;  %v2715_v1 = vpack.c.bf16 %v952_v45, %v948_v60  ;;  %v962_v12 = vld [vmem:[#allocation4 + $0xb58] sm:$0xff]  ;;  %v963_v35 = vld [vmem:[#allocation4 + $0xb80] sm:$0xff]  ;;  %v973_v62 = vld [vmem:[#allocation4 + $0xc10] sm:$0xff] }
 0x410   :  { %v740_v42 = vmax.f32 %v739_v26, 0.0  ;;  %v2707_v26 = vpack.c.bf16 %v936_v39, %v932_v38  ;;  %v2783_v23 = vpack.c.bf16 %v962_v12, %v958_v9  ;;  %v967_v36 = vld [vmem:[#allocation4 + $0xbc0] sm:$0xff]  ;;  %v965_v38 = vld [vmem:[#allocation4 + $0xb90] sm:$0xff] }
 0x411   :  { %v969_v39 = vld [vmem:[#allocation4 + $0xbd0] sm:$0xff]  ;;  %v975_v60 = vld [vmem:[#allocation4 + $0xc40] sm:$0xff] }
 0x412   :  { %v743_v27 = vadd.f32 1e-05, %v740_v42  ;;  %2702 = vmatpush1.bf16.msra.mxu1 %v2701_v18  ;;  %v938_v42 = vld [vmem:[#allocation4 + $0x9d8] sm:$0xff]  ;;  %v959_v18 = vld [vmem:[#allocation4 + $0xb40] sm:$0xff]  ;;  %v981_v12 = vld [vmem:[#allocation4 + $0xc90] sm:$0xff] }
 0x413   :  { %2704 = vmatprep.subr.bf16.mxu1 %v2703_v29  ;;  %v2771_v46 = vpack.c.bf16 %v938_v42, %v934_v40  ;;  %v968_v29 = vld [vmem:[#allocation4 + $0xbc8] sm:$0xff]  ;;  %v2721_v32 = vpack.c.bf16 %v959_v18, %v955_v17  ;;  %v2725_v40 = vpack.c.bf16 %v967_v36, %v963_v35  ;;  %v990_v18 = vld [vmem:[#allocation4 + $0xd18] sm:$0xff] }
 0x414   :  { %3218 = vrsqrt.f32 %v743_v27  ;;  %v931_v27 = vld [vmem:[#allocation4 + $0x980] sm:$0xff]  ;;  %v992_v17 = vld [vmem:[#allocation4 + $0xd48] sm:$0xff]  ;;  %v998_v36 = vld [vmem:[#allocation4 + $0xd98] sm:$0xff] }
 0x415   :  { %v1000_v35 = vld [vmem:[#allocation4 + $0xdc8] sm:$0xff] }
 0x416   :  { %2706 = vmatpush1.bf16.msra.mxu1 %v2705_v37  ;;  %v2787_v37 = vpack.c.bf16 %v970_v31, %v966_v30  ;;  %v989_v31 = vld [vmem:[#allocation4 + $0xd10] sm:$0xff] }
 0x417   :  { %2708 = vmatprep.subr.bf16.mxu1 %v2707_v26  ;;  %v420_v26 = vld [vmem:[#allocation6 + $0x31] ss:$8 sm:$0x3] }
 0x418   :  { %v777_v42 = vrot.slane %v420_v26, %v3397_v11 }
 0x41e   :  { %v3219_v51 = vpop.eup %3218 }
 0x41f   :  { %v746_v52 = vmul.f32 %v3219_v51, %v742_v48  ;;  %v745_v55 = vmul.f32 %v3219_v51, %v741_v47  ;;  %v933_v47 = vld [vmem:[#allocation4 + $0x990] sm:$0xff]  ;;  %v942_v51 = vld [vmem:[#allocation4 + $0xa18] sm:$0xff] }
 0x420   :  { %v937_v48 = vld [vmem:[#allocation4 + $0x9d0] sm:$0xff] }
 0x421   :  { %v759_v56 = vmul.f32 %v755_v50, %v746_v52  ;;  %v758_v57 = vmul.f32 %v751_v49, %v745_v55  ;;  %v940_v49 = vld [vmem:[#allocation4 + $0xa08] sm:$0xff]  ;;  %v946_v52 = vld [vmem:[#allocation4 + $0xa58] sm:$0xff] }
 0x422   :  { %v944_v50 = vld [vmem:[#allocation4 + $0xa48] sm:$0xff] }
 0x423   :  { %v772_v58 = vadd.f32 %v768_v54, %v759_v56  ;;  %v771_v59 = vadd.f32 %v764_v53, %v758_v57  ;;  %v2709_v53 = vpack.c.bf16 %v935_v43, %v931_v27  ;;  %v2773_v54 = vpack.c.bf16 %v937_v48, %v933_v47  ;;  %v939_v56 = vld [vmem:[#allocation4 + $0xa00] sm:$0xff] }
 0x424   :  { %v2711_v55 = vpack.c.bf16 %v944_v50, %v940_v49  ;;  %v943_v57 = vld [vmem:[#allocation4 + $0xa40] sm:$0xff]  ;;  %v781_v27 = vrot.slane %v420_v26, %v3400_v13 }
 0x425   :  { %848 = vmatprep.mubr.f32.mxu0 %v772_v58  ;;  %v941_v58 = vld [vmem:[#allocation4 + $0xa10] sm:$0xff]  ;;  %2710 = vmatpush1.bf16.msra.mxu1 %v2709_v53  ;;  %v2713_v63 = vpack.c.bf16 %v943_v57, %v939_v56  ;;  %v976_v56 = vld [vmem:[#allocation4 + $0xc48] sm:$0xff]  ;;  %v974_v57 = vld [vmem:[#allocation4 + $0xc18] sm:$0xff] }
 0x426   :  { %849 = vmatmul.mubr.f32.vlgmr.msra.gmra.mrb[4].mxu0 %v771_v59  ;;  %v2775_v59 = vpack.c.bf16 %v946_v52, %v942_v51  ;;  %2712 = vmatprep.subr.bf16.mxu1 %v2711_v55  ;;  %v2777_v0 = vpack.c.bf16 %v945_v44, %v941_v58  ;;  %v972_v55 = vld [vmem:[#allocation4 + $0xc08] sm:$0xff]  ;;  %v971_v44 = vld [vmem:[#allocation4 + $0xc00] sm:$0xff] }
 0x427   :  { %2762 = vmatpush1.bf16.msra.mxu0 %v2761_v6  ;;  %v953_v6 = vld [vmem:[#allocation4 + $0xad0] sm:$0xff]  ;;  %v2727_v58 = vpack.c.bf16 %v976_v56, %v972_v55  ;;  %v2729_v61 = vpack.c.bf16 %v975_v60, %v971_v44  ;;  %v1007_v55 = vld [vmem:[#allocation4 + $0xe40] sm:$0xff]  ;;  %v1016_v44 = vld [vmem:[#allocation4 + $0xec8] sm:$0xff] }
 0x428   :  { %2764 = vmatprep.subr.bf16.mxu0 %v2763_v14  ;;  %v2717_v14 = vpack.c.bf16 %v951_v3, %v947_v2  ;;  %v2781_v15 = vpack.c.bf16 %v953_v6, %v949_v4  ;;  %v984_v2 = vld [vmem:[#allocation4 + $0xcc8] sm:$0xff]  ;;  %v982_v3 = vld [vmem:[#allocation4 + $0xc98] sm:$0xff]  ;;  %v979_v6 = vld [vmem:[#allocation4 + $0xc80] sm:$0xff] }
 0x429   :  { %2714 = vmatpush1.bf16.msra.mxu1 %v2713_v63  ;;  %v977_v63 = vld [vmem:[#allocation4 + $0xc50] sm:$0xff]  ;;  %v2733_v9 = vpack.c.bf16 %v983_v7, %v979_v6  ;;  %v1024_v6 = vld [vmem:[#allocation4 + $0xf48] sm:$0xff]  ;;  %v1022_v7 = vld [vmem:[#allocation4 + $0xf18] sm:$0xff] }
 0x42a   :  { %2716 = vmatprep.subr.bf16.mxu1 %v2715_v1  ;;  %v980_v1 = vld [vmem:[#allocation4 + $0xc88] sm:$0xff]  ;;  %v1005_v56 = vld [vmem:[#allocation4 + $0xe10] sm:$0xff] }
 0x42b   :  { %2766 = vmatpush1.bf16.msra.mxu0 %v2765_v28  ;;  %v964_v28 = vld [vmem:[#allocation4 + $0xb88] sm:$0xff]  ;;  %v2731_v4 = vpack.c.bf16 %v984_v2, %v980_v1  ;;  %v1015_v1 = vld [vmem:[#allocation4 + $0xec0] sm:$0xff]  ;;  %v1013_v2 = vld [vmem:[#allocation4 + $0xe90] sm:$0xff] }
 0x42c   :  { %2768 = vmatprep.subr.bf16.mxu0 %v2767_v33  ;;  %v2785_v33 = vpack.c.bf16 %v961_v25, %v957_v22  ;;  %v2723_v34 = vpack.c.bf16 %v968_v29, %v964_v28  ;;  %v987_v25 = vld [vmem:[#allocation4 + $0xd00] sm:$0xff] }
 0x42d   :  { %2718 = vmatpush1.bf16.msra.mxu1 %v2717_v14  ;;  %v985_v14 = vld [vmem:[#allocation4 + $0xcd0] sm:$0xff]  ;;  %v991_v28 = vld [vmem:[#allocation4 + $0xd40] sm:$0xff] }
 0x42e   :  { %2720 = vmatprep.subr.bf16.mxu1 %v2719_v16  ;;  %v988_v16 = vld [vmem:[#allocation4 + $0xd08] sm:$0xff]  ;;  %v2737_v30 = vpack.c.bf16 %v991_v28, %v987_v25  ;;  %v1030_v25 = vld [vmem:[#allocation4 + $0xf98] sm:$0xff] }
 0x42f   :  { %2770 = vmatpush1.bf16.msra.mxu0 %v2769_v41  ;;  %v2789_v41 = vpack.c.bf16 %v969_v39, %v965_v38  ;;  %v2735_v22 = vpack.c.bf16 %v992_v17, %v988_v16  ;;  %v1002_v38 = vld [vmem:[#allocation4 + $0xdd8] sm:$0xff]  ;;  %v995_v39 = vld [vmem:[#allocation4 + $0xd80] sm:$0xff]  ;;  %v1021_v17 = vld [vmem:[#allocation4 + $0xf10] sm:$0xff] }
 0x430   :  { %2772 = vmatprep.subr.bf16.mxu0 %v2771_v46  ;;  %v1034_v28 = vld [vmem:[#allocation4 + $0xfd8] sm:$0xff] }
 0x431   :  { %2722 = vmatpush1.bf16.msra.mxu1 %v2721_v32  ;;  %v993_v32 = vld [vmem:[#allocation4 + $0xd50] sm:$0xff] }
 0x432   :  { %2724 = vmatprep.subr.bf16.mxu1 %v2723_v34  ;;  %v996_v34 = vld [vmem:[#allocation4 + $0xd88] sm:$0xff] }
 0x433   :  { %2774 = vmatpush1.bf16.msra.mxu0 %v2773_v54 }
 0x434   :  { %2776 = vmatprep.subr.bf16.mxu0 %v2775_v59  ;;  %v978_v59 = vld [vmem:[#allocation4 + $0xc58] sm:$0xff] }
 0x435   :  { %2726 = vmatpush1.bf16.msra.mxu1 %v2725_v40  ;;  %v2791_v45 = vpack.c.bf16 %v978_v59, %v974_v57  ;;  %v999_v40 = vld [vmem:[#allocation4 + $0xdc0] sm:$0xff]  ;;  %v1012_v59 = vld [vmem:[#allocation4 + $0xe88] sm:$0xff] }
 0x436   :  { %2728 = vmatprep.subr.bf16.mxu1 %v2727_v58  ;;  %v2741_v26 = vpack.c.bf16 %v999_v40, %v995_v39  ;;  %v1009_v58 = vld [vmem:[#allocation4 + $0xe50] sm:$0xff] }
 0x437   :  { %2778 = vmatpush1.bf16.msra.mxu0 %v2777_v0  ;;  %v2793_v0 = vpack.c.bf16 %v977_v63, %v973_v62  ;;  %v2809_v60 = vpack.c.bf16 %v1009_v58, %v1005_v56  ;;  %v1018_v62 = vld [vmem:[#allocation4 + $0xed8] sm:$0xff]  ;;  %v1011_v63 = vld [vmem:[#allocation4 + $0xe80] sm:$0xff] }
 0x438   :  { %2780 = vmatprep.subr.bf16.mxu0 %v2779_v5  ;;  %v986_v5 = vld [vmem:[#allocation4 + $0xcd8] sm:$0xff] }
 0x439   :  { %2730 = vmatpush1.bf16.msra.mxu1 %v2729_v61  ;;  %v2795_v8 = vpack.c.bf16 %v986_v5, %v982_v3  ;;  %v1014_v61 = vld [vmem:[#allocation4 + $0xe98] sm:$0xff]  ;;  %v1017_v3 = vld [vmem:[#allocation4 + $0xed0] sm:$0xff]  ;;  %v1020_v5 = vld [vmem:[#allocation4 + $0xf08] sm:$0xff] }
 0x43a   :  { %2732 = vmatprep.subr.bf16.mxu1 %v2731_v4  ;;  %v2749_v4 = vpack.c.bf16 %v1015_v1, %v1011_v63  ;;  %v3234_v58 = vld [vmem:[#allocation6 + $0x1] ss:$8 sm:$0xf] }
 0x43b   :  { %2782 = vmatpush1.bf16.msra.mxu0 %v2781_v15  ;;  %v2797_v15 = vpack.c.bf16 %v985_v14, %v981_v12  ;;  %v1026_v12 = vld [vmem:[#allocation4 + $0xf58] sm:$0xff]  ;;  %v1019_v14 = vld [vmem:[#allocation4 + $0xf00] sm:$0xff] }
 0x43c   :  { %2784 = vmatprep.subr.bf16.mxu0 %v2783_v23  ;;  %v994_v23 = vld [vmem:[#allocation4 + $0xd58] sm:$0xff]  ;;  %v2815_v16 = vpack.c.bf16 %v1026_v12, %v1022_v7  ;;  %v1038_v7 = vld [vmem:[#allocation4 + $0x868] sm:$0xff]  ;;  %v1037_v12 = vld [vmem:[#allocation4 + $0x860] sm:$0xff] }
 0x43d   :  { %2734 = vmatpush1.bf16.msra.mxu1 %v2733_v9  ;;  %v2799_v29 = vpack.c.bf16 %v994_v23, %v990_v18  ;;  %v2751_v9 = vpack.c.bf16 %v1024_v6, %v1020_v5  ;;  %v1025_v18 = vld [vmem:[#allocation4 + $0xf50] sm:$0xff]  ;;  %v1032_v23 = vld [vmem:[#allocation4 + $0xfc8] sm:$0xff] }
 0x43e   :  { %2736 = vmatprep.subr.bf16.mxu1 %v2735_v22  ;;  %v1028_v22 = vld [vmem:[#allocation4 + $0xf88] sm:$0xff] }
 0x43f   :  { %2786 = vmatpush1.bf16.msra.mxu0 %v2785_v33  ;;  %v2801_v33 = vpack.c.bf16 %v993_v32, %v989_v31  ;;  %v2755_v31 = vpack.c.bf16 %v1032_v23, %v1028_v22  ;;  %v1027_v32 = vld [vmem:[#allocation4 + $0xf80] sm:$0xff]  ;;  %v1036_v6 = vld [vmem:[#allocation4 + $0x828] sm:$0xff] }
 0x440   :  { %2788 = vmatprep.subr.bf16.mxu0 %v2787_v37  ;;  %v2739_v37 = vpack.c.bf16 %v1000_v35, %v996_v34  ;;  %v2819_v34 = vpack.c.bf16 %v1034_v28, %v1030_v25  ;;  %v1029_v35 = vld [vmem:[#allocation4 + $0xf90] sm:$0xff]  ;;  %v1046_v22 = vld [vmem:[#allocation4 + $0x968] sm:$0xff]  ;;  %v1043_v28 = vld [vmem:[#allocation4 + $0x920] sm:$0xff] }
 0x441   :  { %2738 = vmatpush1.bf16.msra.mxu1 %v2737_v30  ;;  %v2817_v30 = vpack.c.bf16 %v1025_v18, %v1021_v17  ;;  %v1041_v17 = vld [vmem:[#allocation4 + $0x8e0] sm:$0xff]  ;;  %v1044_v18 = vld [vmem:[#allocation4 + $0x928] sm:$0xff] }
 0x442   :  { %2740 = vmatprep.subr.bf16.mxu1 %v2739_v37  ;;  %v2831_v25 = vpack.c.bf16 %v1046_v22, %v1044_v18  ;;  %v1072_v18 = vld [vmem:[#allocation4 + $0xca8] sm:$0xff] }
 0x443   :  { %2790 = vmatpush1.bf16.msra.mxu0 %v2789_v41  ;;  %v2803_v41 = vpack.c.bf16 %v1002_v38, %v998_v36  ;;  %v1033_v36 = vld [vmem:[#allocation4 + $0xfd0] sm:$0xff]  ;;  %v1074_v22 = vld [vmem:[#allocation4 + $0xce8] sm:$0xff] }
 0x444   :  { %2792 = vmatprep.subr.bf16.mxu0 %v2791_v45  ;;  %v2747_v45 = vpack.c.bf16 %v1016_v44, %v1012_v59  ;;  %v2821_v38 = vpack.c.bf16 %v1033_v36, %v1029_v35  ;;  %v1049_v35 = vld [vmem:[#allocation4 + $0x9e0] sm:$0xff]  ;;  %v1052_v36 = vld [vmem:[#allocation4 + $0xa28] sm:$0xff] }
 0x445   :  { %2742 = vmatpush1.bf16.msra.mxu1 %v2741_v26 }
 0x447   :  { %2794 = vmatpush1.bf16.msra.mxu0 %v2793_v0  ;;  %v2811_v0 = vpack.c.bf16 %v1018_v62, %v1014_v61 }
 0x448   :  { %2796 = vmatprep.subr.bf16.mxu0 %v2795_v8  ;;  %v2813_v8 = vpack.c.bf16 %v1017_v3, %v1013_v2 }
 0x44b   :  { %2798 = vmatpush1.bf16.msra.mxu0 %v2797_v15  ;;  %v1023_v15 = vld [vmem:[#allocation4 + $0xf40] sm:$0xff] }
 0x44c   :  { %2800 = vmatprep.subr.bf16.mxu0 %v2799_v29  ;;  %v2753_v29 = vpack.c.bf16 %v1023_v15, %v1019_v14  ;;  %v1040_v14 = vld [vmem:[#allocation4 + $0x8a8] sm:$0xff] }
 0x44d   :  { %v1042_v15 = vld [vmem:[#allocation4 + $0x8e8] sm:$0xff] }
 0x44f   :  { %2802 = vmatpush1.bf16.msra.mxu0 %v2801_v33  ;;  %v1031_v33 = vld [vmem:[#allocation4 + $0xfc0] sm:$0xff] }
 0x450   :  { %2804 = vmatprep.subr.bf16.mxu0 %v2803_v41  ;;  %v2757_v37 = vpack.c.bf16 %v1031_v33, %v1027_v32 }
 0x4f9   :  { %v850_v43 = vpop.f32.mrb[4].mxu0 }
 0x4fa   :  { %v851_v46 = vadd.f32 %v850_v43, %v777_v42  ;;  %v852_v47 = vpop.f32.mrb[5].mxu0  ;;  %v997_v42 = vld [vmem:[#allocation4 + $0xd90] sm:$0xff]  ;;  %v1004_v43 = vld [vmem:[#allocation4 + $0xe08] sm:$0xff] }
 0x4fb   :  { %v853_v48 = vadd.f32 %v852_v47, %v781_v27  ;;  %v1001_v27 = vld [vmem:[#allocation4 + $0xdd0] sm:$0xff]  ;;  %v1008_v47 = vld [vmem:[#allocation4 + $0xe48] sm:$0xff] }
 0x4fc   :  { %v3454_v49 = vmax.f32 %v851_v46, 0.0  ;;  %v2805_v46 = vpack.c.bf16 %v1001_v27, %v997_v42 }
 0x4fd   :  { %v3456_v50 = vmax.f32 %v853_v48, 0.0  ;;  %v1006_v48 = vld [vmem:[#allocation4 + $0xe18] sm:$0xff] }
 0x4fe   :  { %v861_v51 = vmul.f32 %v3454_v49, %v3454_v49  ;;  %2806 = vmatpush1.bf16.msra.mxu0 %v2805_v46 }
 0x4ff   :  { %v857_v52 = vadd.f32 %v3456_v50, %v3454_v49  ;;  %v862_v53 = vmul.f32 %v3456_v50, %v3456_v50 }
 0x501   :  { %858 = vadd.xlane.f32.xlu0 %v857_v52  ;;  %v863_v54 = vadd.f32 %v862_v53, %v861_v51  ;;  %v1010_v51 = vld [vmem:[#allocation4 + $0xe58] sm:$0xff]  ;;  %v2743_v52 = vpack.c.bf16 %v1008_v47, %v1004_v43  ;;  %v3465_v47 = vsub.s32 2, %v3394_v10 }
 0x502   :  { %v2807_v53 = vpack.c.bf16 %v1010_v51, %v1006_v48  ;;  %v3468_v48 = vsub.s32 3, %v3394_v10  ;;  %v426_v51 = vld [vmem:[#allocation6 + $0x22] ss:$8 sm:$0x3] }
 0x503   :  { %864 = vadd.xlane.f32.xlu1 %v863_v54  ;;  %v1003_v54 = vld [vmem:[#allocation4 + $0xe00] sm:$0xff]  ;;  %2744 = vmatprep.subr.bf16.mxu1 %v2743_v52  ;;  %v884_v56 = vrot.slane %v426_v51, %v3400_v13  ;;  %v445_v59 = vrot.slane %v3234_v58, %v3465_v47 }
 0x504   :  { %v2745_v57 = vpack.c.bf16 %v1007_v55, %v1003_v54  ;;  %2808 = vmatprep.subr.bf16.mxu0 %v2807_v53  ;;  %v432_v52 = vld [vmem:[#allocation6 + $0x23] ss:$8 sm:$0x3]  ;;  %v880_v55 = vrot.slane %v426_v51, %v3397_v11  ;;  %v449_v44 = vrot.slane %v3234_v58, %v3468_v48 }
 0x505   :  { %2810 = vmatpush1.bf16.msra.mxu0 %v2809_v60  ;;  %v893_v10 = vrot.slane %v432_v52, %v3397_v11  ;;  %v1057_v51 = vld [vmem:[#allocation4 + $0xae0] sm:$0xff]  ;;  %v1064_v58 = vld [vmem:[#allocation4 + $0xba8] sm:$0xff] }
 0x506   :  { %2746 = vmatpush1.bf16.msra.mxu1 %v2745_v57  ;;  %2812 = vmatprep.subr.bf16.mxu0 %v2811_v0  ;;  %v594_v63 = vadd.f32 %v3416_v24, %v449_v44  ;;  %v1039_v24 = vld [vmem:[#allocation4 + $0x8a0] sm:$0xff] }
 0x507   :  { %2748 = vmatprep.subr.bf16.mxu1 %v2747_v45  ;;  %v897_v45 = vrot.slane %v432_v52, %v3400_v13  ;;  %v2829_v23 = vpack.c.bf16 %v1041_v17, %v1039_v24  ;;  %v1060_v52 = vld [vmem:[#allocation4 + $0xb28] sm:$0xff] }
 0x509   :  { %2814 = vmatpush1.bf16.msra.mxu0 %v2813_v8  ;;  %v1035_v8 = vld [vmem:[#allocation4 + $0x820] sm:$0xff] }
 0x50a   :  { %2750 = vmatpush1.bf16.msra.mxu1 %v2749_v4  ;;  %2816 = vmatprep.subr.bf16.mxu0 %v2815_v16  ;;  %v2827_v16 = vpack.c.bf16 %v1042_v15, %v1040_v14 }
 0x50b   :  { %2752 = vmatprep.subr.bf16.mxu1 %v2751_v9  ;;  %v2823_v9 = vpack.c.bf16 %v1038_v7, %v1036_v6 }
 0x50d   :  { %2818 = vmatpush1.bf16.msra.mxu0 %v2817_v30  ;;  %v1048_v30 = vld [vmem:[#allocation4 + $0x9a8] sm:$0xff] }
 0x50e   :  { %2754 = vmatpush1.bf16.msra.mxu1 %v2753_v29  ;;  %2820 = vmatprep.subr.bf16.mxu0 %v2819_v34  ;;  %v1045_v29 = vld [vmem:[#allocation4 + $0x960] sm:$0xff] }
 0x50f   :  { %2756 = vmatprep.subr.bf16.mxu1 %v2755_v31  ;;  %v1050_v31 = vld [vmem:[#allocation4 + $0x9e8] sm:$0xff]  ;;  %v2833_v32 = vpack.c.bf16 %v1045_v29, %v1043_v28  ;;  %v1047_v34 = vld [vmem:[#allocation4 + $0x9a0] sm:$0xff] }
 0x510   :  { %v2835_v33 = vpack.c.bf16 %v1050_v31, %v1048_v30  ;;  %v1073_v28 = vld [vmem:[#allocation4 + $0xce0] sm:$0xff]  ;;  %v1076_v30 = vld [vmem:[#allocation4 + $0xd28] sm:$0xff] }
 0x511   :  { %2822 = vmatpush1.bf16.msra.mxu0 %v2821_v38  ;;  %v2837_v38 = vpack.c.bf16 %v1049_v35, %v1047_v34  ;;  %v1078_v31 = vld [vmem:[#allocation4 + $0xd68] sm:$0xff]  ;;  %v1077_v34 = vld [vmem:[#allocation4 + $0xd60] sm:$0xff] }
 0x512   :  { %2758 = vmatpush1.bf16.msra.mxu1 %v2757_v37  ;;  %v1054_v37 = vld [vmem:[#allocation4 + $0xa68] sm:$0xff] }
 0x513   :  { %2824 = vmatprep.subr.bf16.mxu1 %v2823_v9 }
 0x58e   :  { %v859_v39 = vpop.xlane.xlu0 %858 }
 0x58f   :  { %v860_v40 = vmul.f32 0.00390625, %v859_v39  ;;  %v2839_v39 = vpack.c.bf16 %v1054_v37, %v1052_v36  ;;  %v1080_v36 = vld [vmem:[#allocation4 + $0xda8] sm:$0xff] }
 0x590   :  { %v865_v41 = vpop.xlane.xlu1 %864  ;;  %v1082_v37 = vld [vmem:[#allocation4 + $0xde8] sm:$0xff] }
 0x591   :  { %v866_v26 = vmul.f32 0.00390625, %v865_v41  ;;  %v867_v42 = vmul.f32 %v860_v40, %v860_v40  ;;  %v870_v53 = vsub.f32 %v3454_v49, %v860_v40  ;;  %v871_v54 = vsub.f32 %v3456_v50, %v860_v40  ;;  %v1051_v40 = vld [vmem:[#allocation4 + $0xa20] sm:$0xff] }
 0x592   :  { %v592_v50 = vadd.f32 %v3414_v19, %v445_v59  ;;  %v2825_v19 = vpack.c.bf16 %v1037_v12, %v1035_v8  ;;  %v1053_v41 = vld [vmem:[#allocation4 + $0xa60] sm:$0xff]  ;;  %v1066_v59 = vld [vmem:[#allocation4 + $0xbe8] sm:$0xff] }
 0x593   :  { %v868_v27 = vsub.f32 %v866_v26, %v867_v42  ;;  %v1056_v26 = vld [vmem:[#allocation4 + $0xaa8] sm:$0xff] }
 0x594   :  { %v1058_v42 = vld [vmem:[#allocation4 + $0xae8] sm:$0xff] }
 0x595   :  { %v869_v43 = vmax.f32 %v868_v27, 0.0  ;;  %v2841_v27 = vpack.c.bf16 %v1053_v41, %v1051_v40  ;;  %v1081_v40 = vld [vmem:[#allocation4 + $0xde0] sm:$0xff] }
 0x597   :  { %v872_v46 = vadd.f32 1e-05, %v869_v43  ;;  %v2843_v43 = vpack.c.bf16 %v1058_v42, %v1056_v26  ;;  %v1084_v26 = vld [vmem:[#allocation4 + $0xe28] sm:$0xff] }
 0x598   :  { %v1086_v42 = vld [vmem:[#allocation4 + $0xe68] sm:$0xff] }
 0x599   :  { %3220 = vrsqrt.f32 %v872_v46  ;;  %v1055_v46 = vld [vmem:[#allocation4 + $0xaa0] sm:$0xff] }
 0x5a3   :  { %v3221_v57 = vpop.eup %3220 }
 0x5a4   :  { %v875_v60 = vmul.f32 %v3221_v57, %v871_v54  ;;  %v874_v61 = vmul.f32 %v3221_v57, %v870_v53  ;;  %v1062_v53 = vld [vmem:[#allocation4 + $0xb68] sm:$0xff]  ;;  %v2845_v54 = vpack.c.bf16 %v1057_v51, %v1055_v46  ;;  %v1061_v57 = vld [vmem:[#allocation4 + $0xb60] sm:$0xff] }
 0x5a5   :  { %v1085_v46 = vld [vmem:[#allocation4 + $0xe60] sm:$0xff]  ;;  %v1088_v51 = vld [vmem:[#allocation4 + $0xea8] sm:$0xff] }
 0x5a6   :  { %v888_v62 = vmul.f32 %v884_v56, %v875_v60  ;;  %v887_v49 = vmul.f32 %v880_v55, %v874_v61  ;;  %v2847_v55 = vpack.c.bf16 %v1062_v53, %v1060_v52  ;;  %v1059_v56 = vld [vmem:[#allocation4 + $0xb20] sm:$0xff]  ;;  %v2851_v60 = vpack.c.bf16 %v1066_v59, %v1064_v58  ;;  %v1068_v61 = vld [vmem:[#allocation4 + $0xc28] sm:$0xff] }
 0x5a7   :  { %v2849_v44 = vpack.c.bf16 %v1061_v57, %v1059_v56  ;;  %v1090_v53 = vld [vmem:[#allocation4 + $0xee8] sm:$0xff] }
 0x5a8   :  { %v901_v0 = vadd.f32 %v897_v45, %v888_v62  ;;  %v900_v1 = vadd.f32 %v893_v10, %v887_v49  ;;  %v1063_v10 = vld [vmem:[#allocation4 + $0xba0] sm:$0xff]  ;;  %v1070_v62 = vld [vmem:[#allocation4 + $0xc68] sm:$0xff]  ;;  %v2875_v56 = vpack.c.bf16 %v1090_v53, %v1088_v51  ;;  %v1109_v53 = vld [vmem:[#allocation4 + $0x970] sm:$0xff] }
 0x5a9   :  { %v1065_v45 = vld [vmem:[#allocation4 + $0xbe0] sm:$0xff]  ;;  %v1092_v57 = vld [vmem:[#allocation4 + $0xf28] sm:$0xff] }
 0x5aa   :  { %v903_v2 = vadd.f32 %v901_v0, %v594_v63  ;;  %v902_v3 = vadd.f32 %v900_v1, %v592_v50  ;;  %v2853_v49 = vpack.c.bf16 %v1065_v45, %v1063_v10  ;;  %v2855_v50 = vpack.c.bf16 %v1070_v62, %v1068_v61  ;;  %v1067_v63 = vld [vmem:[#allocation4 + $0xc20] sm:$0xff]  ;;  %v1094_v58 = vld [vmem:[#allocation4 + $0xf68] sm:$0xff] }
 0x5ab   :  { %v1069_v0 = vld [vmem:[#allocation4 + $0xc60] sm:$0xff]  ;;  %v1096_v45 = vld [vmem:[#allocation4 + $0xfa8] sm:$0xff] }
 0x5ac   :  { %v905_v4 = vmax.f32 %v903_v2, 0.0  ;;  %v904_v5 = vmax.f32 %v902_v3, 0.0  ;;  %v2857_v1 = vpack.c.bf16 %v1069_v0, %v1067_v63  ;;  %v1164_v2 = vld [vmem:[#allocation6 + $0x4] ss:$8 sm:$0xf] }
 0x5ad   :  { %v1185_v3 = vrot.slane %v1164_v2, %v3397_v11  ;;  %v1093_v10 = vld [vmem:[#allocation4 + $0xf60] sm:$0xff]  ;;  %v1098_v61 = vld [vmem:[#allocation4 + $0xfe8] sm:$0xff] }
 0x5ae   :  { %1266 = vmatprep.mubr.f32.mxu1 %v905_v4  ;;  %1337 = vmatprep.mubr.f32.mxu0 %v905_v4  ;;  %v1189_v4 = vrot.slane %v1164_v2, %v3400_v13  ;;  %v1097_v63 = vld [vmem:[#allocation4 + $0xfe0] sm:$0xff] }
 0x5af   :  { %1267 = vmatmul.mubr.f32.vlgmr.msra.gmra.mrb[4].mxu1 %v904_v5  ;;  %1338 = vmatmul.mubr.f32.vlgmr.msra.gmra.mrb[6].mxu0 %v904_v5 }
 0x5b0   :  { %2826 = vmatpush1.bf16.msra.mxu1 %v2825_v19 }
 0x5b1   :  { %2828 = vmatprep.subr.bf16.mxu1 %v2827_v16 }
 0x5b4   :  { %2830 = vmatpush1.bf16.msra.mxu1 %v2829_v23  ;;  %v2859_v23 = vpack.c.bf16 %v1074_v22, %v1072_v18 }
 0x5b5   :  { %2832 = vmatprep.subr.bf16.mxu1 %v2831_v25  ;;  %v1071_v25 = vld [vmem:[#allocation4 + $0xca0] sm:$0xff] }
 0x5b6   :  { %v2861_v29 = vpack.c.bf16 %v1073_v28, %v1071_v25 }
 0x5b8   :  { %2834 = vmatpush1.bf16.msra.mxu1 %v2833_v32  ;;  %v2863_v32 = vpack.c.bf16 %v1078_v31, %v1076_v30 }
 0x5b9   :  { %2836 = vmatprep.subr.bf16.mxu1 %v2835_v33  ;;  %v1075_v33 = vld [vmem:[#allocation4 + $0xd20] sm:$0xff] }
 0x5ba   :  { %v2865_v35 = vpack.c.bf16 %v1077_v34, %v1075_v33 }
 0x5bc   :  { %2838 = vmatpush1.bf16.msra.mxu1 %v2837_v38  ;;  %v2867_v38 = vpack.c.bf16 %v1082_v37, %v1080_v36  ;;  %v1101_v37 = vld [vmem:[#allocation4 + $0x870] sm:$0xff] }
 0x5bd   :  { %2840 = vmatprep.subr.bf16.mxu1 %v2839_v39  ;;  %v1079_v39 = vld [vmem:[#allocation4 + $0xda0] sm:$0xff] }
 0x5be   :  { %v2869_v41 = vpack.c.bf16 %v1081_v40, %v1079_v39  ;;  %v1106_v39 = vld [vmem:[#allocation4 + $0x8f8] sm:$0xff] }
 0x5c0   :  { %2842 = vmatpush1.bf16.msra.mxu1 %v2841_v27  ;;  %v2871_v27 = vpack.c.bf16 %v1086_v42, %v1084_v26  ;;  %v1103_v26 = vld [vmem:[#allocation4 + $0x8b0] sm:$0xff] }
 0x5c1   :  { %2844 = vmatprep.subr.bf16.mxu1 %v2843_v43  ;;  %v1083_v43 = vld [vmem:[#allocation4 + $0xe20] sm:$0xff]  ;;  %v1105_v42 = vld [vmem:[#allocation4 + $0x8f0] sm:$0xff] }
 0x5c2   :  { %v2873_v52 = vpack.c.bf16 %v1085_v46, %v1083_v43  ;;  %v1110_v43 = vld [vmem:[#allocation4 + $0x978] sm:$0xff]  ;;  %v2893_v46 = vpack.c.bf16 %v1105_v42, %v1103_v26 }
 0x5c4   :  { %2846 = vmatpush1.bf16.msra.mxu1 %v2845_v54  ;;  %v1087_v54 = vld [vmem:[#allocation4 + $0xea0] sm:$0xff] }
 0x5c5   :  { %2848 = vmatprep.subr.bf16.mxu1 %v2847_v55  ;;  %v1089_v55 = vld [vmem:[#allocation4 + $0xee0] sm:$0xff] }
 0x5c6   :  { %v2877_v59 = vpack.c.bf16 %v1089_v55, %v1087_v54  ;;  %v1112_v54 = vld [vmem:[#allocation4 + $0x9b8] sm:$0xff] }
 0x5c7   :  { %v1114_v55 = vld [vmem:[#allocation4 + $0x9f8] sm:$0xff] }
 0x5c8   :  { %2850 = vmatpush1.bf16.msra.mxu1 %v2849_v44  ;;  %v2879_v44 = vpack.c.bf16 %v1094_v58, %v1092_v57  ;;  %v2899_v57 = vpack.c.bf16 %v1114_v55, %v1112_v54  ;;  %v1111_v58 = vld [vmem:[#allocation4 + $0x9b0] sm:$0xff]  ;;  %v1140_v54 = vld [vmem:[#allocation4 + $0xd38] sm:$0xff] }
 0x5c9   :  { %2852 = vmatprep.subr.bf16.mxu1 %v2851_v60  ;;  %v1091_v60 = vld [vmem:[#allocation4 + $0xf20] sm:$0xff]  ;;  %v1142_v55 = vld [vmem:[#allocation4 + $0xd78] sm:$0xff] }
 0x5ca   :  { %v2881_v62 = vpack.c.bf16 %v1093_v10, %v1091_v60  ;;  %v1118_v60 = vld [vmem:[#allocation4 + $0xa78] sm:$0xff] }
 0x5cc   :  { %2854 = vmatpush1.bf16.msra.mxu1 %v2853_v49  ;;  %v2883_v49 = vpack.c.bf16 %v1098_v61, %v1096_v45  ;;  %v1115_v61 = vld [vmem:[#allocation4 + $0xa30] sm:$0xff] }
 0x5cd   :  { %2856 = vmatprep.subr.bf16.mxu1 %v2855_v50  ;;  %v1095_v50 = vld [vmem:[#allocation4 + $0xfa0] sm:$0xff] }
 0x5ce   :  { %v2885_v0 = vpack.c.bf16 %v1097_v63, %v1095_v50  ;;  %v1122_v50 = vld [vmem:[#allocation4 + $0xaf8] sm:$0xff] }
 0x5d0   :  { %2858 = vmatpush1.bf16.msra.mxu1 %v2857_v1 }
 0x5d1   :  { %2860 = vmatprep.subr.bf16.mxu1 %v2859_v23 }
 0x5d4   :  { %2862 = vmatpush1.bf16.msra.mxu1 %v2861_v29 }
 0x5d5   :  { %2864 = vmatprep.subr.bf16.mxu1 %v2863_v32 }
 0x5d8   :  { %2866 = vmatpush1.bf16.msra.mxu1 %v2865_v35  ;;  %v1102_v35 = vld [vmem:[#allocation4 + $0x878] sm:$0xff] }
 0x5d9   :  { %2868 = vmatprep.subr.bf16.mxu1 %v2867_v38  ;;  %v1104_v38 = vld [vmem:[#allocation4 + $0x8b8] sm:$0xff] }
 0x5dc   :  { %2870 = vmatpush1.bf16.msra.mxu1 %v2869_v41  ;;  %v2891_v41 = vpack.c.bf16 %v1106_v39, %v1104_v38 }
 0x5dd   :  { %2872 = vmatprep.subr.bf16.mxu1 %v2871_v27  ;;  %v1108_v27 = vld [vmem:[#allocation4 + $0x938] sm:$0xff] }
 0x5de   :  { %v2895_v51 = vpack.c.bf16 %v1110_v43, %v1108_v27  ;;  %v1136_v27 = vld [vmem:[#allocation4 + $0xcb8] sm:$0xff] }
 0x5df   :  { %v1138_v43 = vld [vmem:[#allocation4 + $0xcf8] sm:$0xff] }
 0x5e0   :  { %2874 = vmatpush1.bf16.msra.mxu1 %v2873_v52  ;;  %v1107_v52 = vld [vmem:[#allocation4 + $0x930] sm:$0xff] }
 0x5e1   :  { %2876 = vmatprep.subr.bf16.mxu1 %v2875_v56  ;;  %v2897_v56 = vpack.c.bf16 %v1109_v53, %v1107_v52  ;;  %v1137_v52 = vld [vmem:[#allocation4 + $0xcf0] sm:$0xff] }
 0x5e4   :  { %2878 = vmatpush1.bf16.msra.mxu1 %v2877_v59  ;;  %v1113_v59 = vld [vmem:[#allocation4 + $0x9f0] sm:$0xff] }
 0x5e5   :  { %2880 = vmatprep.subr.bf16.mxu1 %v2879_v44  ;;  %v1116_v44 = vld [vmem:[#allocation4 + $0xa38] sm:$0xff]  ;;  %v2901_v10 = vpack.c.bf16 %v1113_v59, %v1111_v58  ;;  %v1141_v58 = vld [vmem:[#allocation4 + $0xd70] sm:$0xff] }
 0x5e6   :  { %v2903_v45 = vpack.c.bf16 %v1118_v60, %v1116_v44  ;;  %v1144_v44 = vld [vmem:[#allocation4 + $0xdb8] sm:$0xff] }
 0x5e7   :  { %v1146_v60 = vld [vmem:[#allocation4 + $0xdf8] sm:$0xff] }
 0x5e8   :  { %2882 = vmatpush1.bf16.msra.mxu1 %v2881_v62  ;;  %v1117_v62 = vld [vmem:[#allocation4 + $0xa70] sm:$0xff] }
 0x5e9   :  { %2884 = vmatprep.subr.bf16.mxu1 %v2883_v49  ;;  %v1120_v49 = vld [vmem:[#allocation4 + $0xab8] sm:$0xff]  ;;  %v2905_v63 = vpack.c.bf16 %v1117_v62, %v1115_v61  ;;  %v1145_v61 = vld [vmem:[#allocation4 + $0xdf0] sm:$0xff] }
 0x5ec   :  { %2886 = vmatpush1.bf16.msra.mxu1 %v2885_v0  ;;  %v2907_v0 = vpack.c.bf16 %v1122_v50, %v1120_v49  ;;  %v1148_v49 = vld [vmem:[#allocation4 + $0xe38] sm:$0xff] }
 0x5ed   :  { %v1150_v50 = vld [vmem:[#allocation4 + $0xe78] sm:$0xff] }
 0x682   :  { %v1268_v5 = vpop.f32.mrb[4].mxu1  ;;  %v3482_v6 = vpop.f32.mrb[6].mxu0 }
 0x683   :  { %v1269_v7 = vadd.f32 %v1268_v5, %v1185_v3  ;;  %v1270_v8 = vpop.f32.mrb[5].mxu1  ;;  %v3484_v9 = vpop.f32.mrb[7].mxu0 }
 0x684   :  { %v1271_v12 = vadd.f32 %v1270_v8, %v1189_v4 }
 0x685   :  { %v3486_v14 = vmax.f32 %v1269_v7, 0.0 }
 0x686   :  { %v3488_v15 = vmax.f32 %v1271_v12, 0.0 }
 0x687   :  { %v1350_v19 = vmul.f32 %v3486_v14, %v3486_v14 }
 0x688   :  { %v1346_v16 = vadd.f32 %v3488_v15, %v3486_v14  ;;  %v1351_v24 = vmul.f32 %v3488_v15, %v3488_v15 }
 0x68a   :  { %1347 = vadd.xlane.f32.xlu0 %v1346_v16  ;;  %v1352_v17 = vadd.f32 %v1351_v24, %v1350_v19  ;;  %v1170_v19 = vld [vmem:[#allocation6 + $0x5] ss:$8 sm:$0x3]  ;;  %v1176_v16 = vld [vmem:[#allocation6 + $0x6] ss:$8 sm:$0x3] }
 0x68b   :  { %v1369_v18 = vrot.slane %v1170_v19, %v3397_v11  ;;  %v1373_v22 = vrot.slane %v1170_v19, %v3400_v13  ;;  %v1382_v28 = vrot.slane %v1176_v16, %v3397_v11  ;;  %v1386_v29 = vrot.slane %v1176_v16, %v3400_v13  ;;  %v1128_v19 = vld [vmem:[#allocation4 + $0xbb8] sm:$0xff] }
 0x68c   :  { %1353 = vadd.xlane.f32.xlu1 %v1352_v17  ;;  %v1130_v16 = vld [vmem:[#allocation4 + $0xbf8] sm:$0xff] }
 0x717   :  { %v1348_v1 = vpop.xlane.xlu0 %1347 }
 0x718   :  { %v1349_v2 = vmul.f32 0.00390625, %v1348_v1  ;;  %v1119_v1 = vld [vmem:[#allocation4 + $0xab0] sm:$0xff] }
 0x719   :  { %v1354_v3 = vpop.xlane.xlu1 %1353 }
 0x71a   :  { %v1355_v4 = vmul.f32 0.00390625, %v1354_v3  ;;  %v1356_v5 = vmul.f32 %v1349_v2, %v1349_v2  ;;  %v1359_v24 = vsub.f32 %v3486_v14, %v1349_v2  ;;  %v1360_v17 = vsub.f32 %v3488_v15, %v1349_v2  ;;  %v1100_v14 = vld [vmem:[#allocation4 + $0x838] sm:$0xff]  ;;  %v1099_v15 = vld [vmem:[#allocation4 + $0x830] sm:$0xff] }
 0x71b   :  { %v2887_v36 = vpack.c.bf16 %v1102_v35, %v1100_v14  ;;  %v2889_v40 = vpack.c.bf16 %v1101_v37, %v1099_v15  ;;  %v1121_v2 = vld [vmem:[#allocation4 + $0xaf0] sm:$0xff]  ;;  %v1124_v3 = vld [vmem:[#allocation4 + $0xb38] sm:$0xff] }
 0x71c   :  { %v1357_v7 = vsub.f32 %v1355_v4, %v1356_v5  ;;  %v1126_v4 = vld [vmem:[#allocation4 + $0xb78] sm:$0xff]  ;;  %v2909_v5 = vpack.c.bf16 %v1121_v2, %v1119_v1  ;;  %v1149_v1 = vld [vmem:[#allocation4 + $0xe70] sm:$0xff] }
 0x71d   :  { %2888 = vmatprep.subr.bf16.mxu0 %v2887_v36  ;;  %v1152_v2 = vld [vmem:[#allocation4 + $0xeb8] sm:$0xff] }
 0x71e   :  { %v1358_v8 = vmax.f32 %v1357_v7, 0.0  ;;  %2890 = vmatpush1.bf16.msra.mxu0 %v2889_v40  ;;  %v2911_v7 = vpack.c.bf16 %v1126_v4, %v1124_v3  ;;  %v1154_v4 = vld [vmem:[#allocation4 + $0xef8] sm:$0xff] }
 0x71f   :  { %2892 = vmatprep.subr.bf16.mxu0 %v2891_v41 }
 0x720   :  { %v1361_v12 = vadd.f32 1e-05, %v1358_v8  ;;  %v1123_v8 = vld [vmem:[#allocation4 + $0xb30] sm:$0xff] }
 0x722   :  { %3222 = vrsqrt.f32 %v1361_v12  ;;  %2894 = vmatpush1.bf16.msra.mxu0 %v2893_v46  ;;  %v1125_v12 = vld [vmem:[#allocation4 + $0xb70] sm:$0xff]  ;;  %v2923_v46 = vpack.c.bf16 %v1138_v43, %v1136_v27 }
 0x723   :  { %2896 = vmatprep.subr.bf16.mxu0 %v2895_v51  ;;  %v1135_v51 = vld [vmem:[#allocation4 + $0xcb0] sm:$0xff] }
 0x724   :  { %v2925_v53 = vpack.c.bf16 %v1137_v52, %v1135_v51 }
 0x726   :  { %2898 = vmatpush1.bf16.msra.mxu0 %v2897_v56  ;;  %v2927_v56 = vpack.c.bf16 %v1142_v55, %v1140_v54 }
 0x727   :  { %2900 = vmatprep.subr.bf16.mxu0 %v2899_v57  ;;  %v1139_v57 = vld [vmem:[#allocation4 + $0xd30] sm:$0xff] }
 0x728   :  { %v2929_v59 = vpack.c.bf16 %v1141_v58, %v1139_v57 }
 0x72a   :  { %2902 = vmatpush1.bf16.msra.mxu0 %v2901_v10  ;;  %v2931_v10 = vpack.c.bf16 %v1146_v60, %v1144_v44  ;;  %v1661_v60 = vld [vmem:[#allocation4 + $0x1058] sm:$0xff] }
 0x72b   :  { %2904 = vmatprep.subr.bf16.mxu0 %v2903_v45  ;;  %v1143_v45 = vld [vmem:[#allocation4 + $0xdb0] sm:$0xff] }
 0x72c   :  { %v3223_v23 = vpop.eup %3222  ;;  %v2933_v62 = vpack.c.bf16 %v1145_v61, %v1143_v45  ;;  %v1658_v45 = vld [vmem:[#allocation4 + $0x1040] sm:$0xff] }
 0x72d   :  { %v1364_v25 = vmul.f32 %v3223_v23, %v1360_v17  ;;  %v1363_v30 = vmul.f32 %v3223_v23, %v1359_v24  ;;  %v2913_v24 = vpack.c.bf16 %v1125_v12, %v1123_v8  ;;  %v2915_v17 = vpack.c.bf16 %v1130_v16, %v1128_v19  ;;  %v1132_v23 = vld [vmem:[#allocation4 + $0xc38] sm:$0xff] }
 0x72e   :  { %2906 = vmatpush1.bf16.msra.mxu0 %v2905_v63  ;;  %v2935_v63 = vpack.c.bf16 %v1150_v50, %v1148_v49  ;;  %v2939_v8 = vpack.c.bf16 %v1154_v4, %v1152_v2  ;;  %v1156_v12 = vld [vmem:[#allocation4 + $0xf38] sm:$0xff]  ;;  %v1656_v49 = vld [vmem:[#allocation4 + $0x1010] sm:$0xff] }
 0x72f   :  { %v1377_v31 = vmul.f32 %v1373_v22, %v1364_v25  ;;  %v1376_v32 = vmul.f32 %v1369_v18, %v1363_v30  ;;  %2908 = vmatprep.subr.bf16.mxu0 %v2907_v0  ;;  %v1127_v18 = vld [vmem:[#allocation4 + $0xbb0] sm:$0xff]  ;;  %v1134_v25 = vld [vmem:[#allocation4 + $0xc78] sm:$0xff] }
 0x730   :  { %v1129_v22 = vld [vmem:[#allocation4 + $0xbf0] sm:$0xff]  ;;  %v1158_v19 = vld [vmem:[#allocation4 + $0xf78] sm:$0xff] }
 0x731   :  { %v1390_v33 = vadd.f32 %v1386_v29, %v1377_v31  ;;  %v1389_v34 = vadd.f32 %v1382_v28, %v1376_v32  ;;  %v2917_v28 = vpack.c.bf16 %v1129_v22, %v1127_v18  ;;  %v2919_v29 = vpack.c.bf16 %v1134_v25, %v1132_v23  ;;  %v1131_v30 = vld [vmem:[#allocation4 + $0xc30] sm:$0xff]  ;;  %v1160_v22 = vld [vmem:[#allocation4 + $0xfb8] sm:$0xff] }
 0x732   :  { %2910 = vmatpush1.bf16.msra.mxu0 %v2909_v5  ;;  %v1133_v31 = vld [vmem:[#allocation4 + $0xc70] sm:$0xff]  ;;  %v1162_v23 = vld [vmem:[#allocation4 + $0xff8] sm:$0xff] }
 0x733   :  { %1466 = vmatprep.mubr.f32.mxu1 %v1390_v33  ;;  %2912 = vmatprep.subr.bf16.mxu0 %v2911_v7  ;;  %v2921_v32 = vpack.c.bf16 %v1133_v31, %v1131_v30  ;;  %v1166_v33 = vld [vmem:[#allocation6 + $0x24] ss:$8 sm:$0x3]  ;;  %v1147_v0 = vld [vmem:[#allocation4 + $0xe30] sm:$0xff]  ;;  %v1665_v2 = vld [vmem:[#allocation4 + $0x1098] sm:$0xff] }
 0x734   :  { %1467 = vmatmul.mubr.f32.vlgmr.msra.gmra.mrb[6].mxu1 %v1389_v34  ;;  %v1395_v34 = vrot.slane %v1166_v33, %v3397_v11  ;;  %v1399_v14 = vrot.slane %v1166_v33, %v3400_v13  ;;  %v2937_v3 = vpack.c.bf16 %v1149_v1, %v1147_v0  ;;  %v1151_v5 = vld [vmem:[#allocation4 + $0xeb0] sm:$0xff]  ;;  %v1667_v1 = vld [vmem:[#allocation4 + $0x10c8] sm:$0xff] }
 0x735   :  { %v1153_v7 = vld [vmem:[#allocation4 + $0xef0] sm:$0xff] }
 0x736   :  { %2914 = vmatpush1.bf16.msra.mxu0 %v2913_v24  ;;  %v2941_v16 = vpack.c.bf16 %v1153_v7, %v1151_v5  ;;  %v2943_v24 = vpack.c.bf16 %v1158_v19, %v1156_v12  ;;  %v1157_v18 = vld [vmem:[#allocation4 + $0xf70] sm:$0xff]  ;;  %v1662_v7 = vld [vmem:[#allocation4 + $0x1080] sm:$0xff] }
 0x737   :  { %2916 = vmatprep.subr.bf16.mxu0 %v2915_v17  ;;  %v1155_v17 = vld [vmem:[#allocation4 + $0xf30] sm:$0xff] }
 0x738   :  { %v2945_v25 = vpack.c.bf16 %v1157_v18, %v1155_v17  ;;  %v1161_v30 = vld [vmem:[#allocation4 + $0xff0] sm:$0xff]  ;;  %v1675_v17 = vld [vmem:[#allocation4 + $0x1148] sm:$0xff] }
 0x739   :  { %v1660_v50 = vld [vmem:[#allocation4 + $0x1050] sm:$0xff] }
 0x73a   :  { %2918 = vmatpush1.bf16.msra.mxu0 %v2917_v28  ;;  %v2947_v28 = vpack.c.bf16 %v1162_v23, %v1160_v22  ;;  %v3017_v0 = vpack.c.bf16 %v1660_v50, %v1656_v49  ;;  %v1664_v12 = vld [vmem:[#allocation4 + $0x1090] sm:$0xff]  ;;  %v1673_v23 = vld [vmem:[#allocation4 + $0x1118] sm:$0xff]  ;;  %v1694_v49 = vld [vmem:[#allocation4 + $0x1280] sm:$0xff] }
 0x73b   :  { %2920 = vmatprep.subr.bf16.mxu0 %v2919_v29  ;;  %v1159_v29 = vld [vmem:[#allocation4 + $0xfb0] sm:$0xff]  ;;  %v1698_v50 = vld [vmem:[#allocation4 + $0x12c0] sm:$0xff] }
 0x73c   :  { %v2949_v31 = vpack.c.bf16 %v1161_v30, %v1159_v29  ;;  %v1674_v30 = vld [vmem:[#allocation4 + $0x1140] sm:$0xff] }
 0x73e   :  { %2922 = vmatpush1.bf16.msra.mxu0 %v2921_v32 }
 0x73f   :  { %2924 = vmatprep.subr.bf16.mxu0 %v2923_v46 }
 0x742   :  { %2926 = vmatpush1.bf16.msra.mxu0 %v2925_v53 }
 0x743   :  { %2928 = vmatprep.subr.bf16.mxu0 %v2927_v56 }
 0x746   :  { %2930 = vmatpush1.bf16.msra.mxu0 %v2929_v59  ;;  %v1659_v59 = vld [vmem:[#allocation4 + $0x1048] sm:$0xff] }
 0x747   :  { %2932 = vmatprep.subr.bf16.mxu0 %v2931_v10  ;;  %v1654_v10 = vld [vmem:[#allocation4 + $0x1000] sm:$0xff] }
 0x74a   :  { %2934 = vmatpush1.bf16.msra.mxu0 %v2933_v62  ;;  %v2953_v62 = vpack.c.bf16 %v1658_v45, %v1654_v10  ;;  %v1701_v10 = vld [vmem:[#allocation4 + $0x12d8] sm:$0xff] }
 0x74b   :  { %2936 = vmatprep.subr.bf16.mxu0 %v2935_v63  ;;  %v1663_v63 = vld [vmem:[#allocation4 + $0x1088] sm:$0xff] }
 0x74c   :  { %v2955_v4 = vpack.c.bf16 %v1667_v1, %v1663_v63  ;;  %v1696_v63 = vld [vmem:[#allocation4 + $0x1290] sm:$0xff] }
 0x74d   :  { %v1700_v1 = vld [vmem:[#allocation4 + $0x12d0] sm:$0xff] }
 0x74e   :  { %2938 = vmatpush1.bf16.msra.mxu0 %v2937_v3  ;;  %v1669_v3 = vld [vmem:[#allocation4 + $0x10d8] sm:$0xff] }
 0x74f   :  { %2940 = vmatprep.subr.bf16.mxu0 %v2939_v8  ;;  %v3019_v5 = vpack.c.bf16 %v1669_v3, %v1665_v2  ;;  %v1666_v8 = vld [vmem:[#allocation4 + $0x10c0] sm:$0xff]  ;;  %v1703_v2 = vld [vmem:[#allocation4 + $0x1308] sm:$0xff] }
 0x750   :  { %v2957_v19 = vpack.c.bf16 %v1666_v8, %v1662_v7  ;;  %v1707_v3 = vld [vmem:[#allocation4 + $0x1348] sm:$0xff]  ;;  %v2973_v7 = vpack.c.bf16 %v1698_v50, %v1694_v49  ;;  %v3037_v8 = vpack.c.bf16 %v1700_v1, %v1696_v63  ;;  %v1729_v63 = vld [vmem:[#allocation4 + $0x1498] sm:$0xff] }
 0x751   :  { %v1727_v49 = vld [vmem:[#allocation4 + $0x1488] sm:$0xff]  ;;  %v1733_v1 = vld [vmem:[#allocation4 + $0x14d8] sm:$0xff] }
 0x752   :  { %2942 = vmatpush1.bf16.msra.mxu0 %v2941_v16  ;;  %v1668_v16 = vld [vmem:[#allocation4 + $0x10d0] sm:$0xff]  ;;  %v1731_v50 = vld [vmem:[#allocation4 + $0x14c8] sm:$0xff] }
 0x753   :  { %2944 = vmatprep.subr.bf16.mxu0 %v2943_v24  ;;  %v1671_v24 = vld [vmem:[#allocation4 + $0x1108] sm:$0xff]  ;;  %v3021_v18 = vpack.c.bf16 %v1668_v16, %v1664_v12  ;;  %v2975_v12 = vpack.c.bf16 %v1707_v3, %v1703_v2  ;;  %v1706_v16 = vld [vmem:[#allocation4 + $0x1340] sm:$0xff] }
 0x754   :  { %v2959_v22 = vpack.c.bf16 %v1675_v17, %v1671_v24  ;;  %v1704_v24 = vld [vmem:[#allocation4 + $0x1310] sm:$0xff]  ;;  %v1726_v2 = vld [vmem:[#allocation4 + $0x1480] sm:$0xff] }
 0x755   :  { %v1730_v3 = vld [vmem:[#allocation4 + $0x14c0] sm:$0xff] }
 0x756   :  { %2946 = vmatpush1.bf16.msra.mxu0 %v2945_v25  ;;  %v1677_v25 = vld [vmem:[#allocation4 + $0x1158] sm:$0xff] }
 0x757   :  { %2948 = vmatprep.subr.bf16.mxu0 %v2947_v28  ;;  %v1670_v28 = vld [vmem:[#allocation4 + $0x1100] sm:$0xff]  ;;  %v3023_v29 = vpack.c.bf16 %v1677_v25, %v1673_v23  ;;  %v1715_v23 = vld [vmem:[#allocation4 + $0x13c8] sm:$0xff]  ;;  %v1713_v25 = vld [vmem:[#allocation4 + $0x1398] sm:$0xff] }
 0x75a   :  { %2950 = vmatpush1.bf16.msra.mxu0 %v2949_v31  ;;  %v1672_v31 = vld [vmem:[#allocation4 + $0x1110] sm:$0xff] }
 0x807   :  { %v1468_v35 = vpop.f32.mrb[6].mxu1 }
 0x808   :  { %v1469_v15 = vadd.f32 %v1468_v35, %v1395_v34  ;;  %v1470_v36 = vpop.f32.mrb[7].mxu1 }
 0x809   :  { %v1471_v37 = vadd.f32 %v1470_v36, %v1399_v14 }
 0x80a   :  { %v3504_v38 = vmax.f32 %v1469_v15, 0.0 }
 0x80b   :  { %v3506_v39 = vmax.f32 %v1471_v37, 0.0 }
 0x80c   :  { %v1479_v40 = vmul.f32 %v3504_v38, %v3504_v38 }
 0x80d   :  { %v1475_v41 = vadd.f32 %v3506_v39, %v3504_v38  ;;  %v1480_v26 = vmul.f32 %v3506_v39, %v3506_v39 }
 0x80f   :  { %1476 = vadd.xlane.f32.xlu0 %v1475_v41  ;;  %v1481_v42 = vadd.f32 %v1480_v26, %v1479_v40  ;;  %v1172_v40 = vld [vmem:[#allocation6 + $0x15] ss:$8 sm:$0x3]  ;;  %v1178_v41 = vld [vmem:[#allocation6 + $0x16] ss:$8 sm:$0x3] }
 0x810   :  { %v1498_v27 = vrot.slane %v1172_v40, %v3397_v11  ;;  %v1502_v43 = vrot.slane %v1172_v40, %v3400_v13  ;;  %v1511_v52 = vrot.slane %v1178_v41, %v3397_v11  ;;  %v1515_v53 = vrot.slane %v1178_v41, %v3400_v13  ;;  %v1678_v40 = vld [vmem:[#allocation4 + $0x1180] sm:$0xff] }
 0x811   :  { %1482 = vadd.xlane.f32.xlu1 %v1481_v42  ;;  %v1682_v41 = vld [vmem:[#allocation4 + $0x11c0] sm:$0xff] }
 0x89c   :  { %v1477_v32 = vpop.xlane.xlu0 %1476 }
 0x89d   :  { %v1478_v33 = vmul.f32 0.00390625, %v1477_v32  ;;  %v1676_v32 = vld [vmem:[#allocation4 + $0x1150] sm:$0xff] }
 0x89e   :  { %v1483_v34 = vpop.xlane.xlu1 %1482 }
 0x89f   :  { %v1484_v14 = vmul.f32 0.00390625, %v1483_v34  ;;  %v1485_v35 = vmul.f32 %v1478_v33, %v1478_v33  ;;  %v1488_v26 = vsub.f32 %v3504_v38, %v1478_v33  ;;  %v1489_v42 = vsub.f32 %v3506_v39, %v1478_v33  ;;  %v1655_v38 = vld [vmem:[#allocation4 + $0x1008] sm:$0xff]  ;;  %v1657_v39 = vld [vmem:[#allocation4 + $0x1018] sm:$0xff] }
 0x8a0   :  { %v2951_v44 = vpack.c.bf16 %v1659_v59, %v1655_v38  ;;  %v3015_v61 = vpack.c.bf16 %v1661_v60, %v1657_v39  ;;  %v2961_v33 = vpack.c.bf16 %v1674_v30, %v1670_v28  ;;  %v1679_v34 = vld [vmem:[#allocation4 + $0x1188] sm:$0xff]  ;;  %v1692_v59 = vld [vmem:[#allocation4 + $0x1250] sm:$0xff]  ;;  %v1697_v60 = vld [vmem:[#allocation4 + $0x1298] sm:$0xff] }
 0x8a1   :  { %v1486_v15 = vsub.f32 %v1484_v14, %v1485_v35  ;;  %v1683_v14 = vld [vmem:[#allocation4 + $0x11c8] sm:$0xff]  ;;  %v1681_v35 = vld [vmem:[#allocation4 + $0x1198] sm:$0xff] }
 0x8a2   :  { %2952 = vmatprep.subr.bf16.mxu1 %v2951_v44  ;;  %3016 = vmatprep.subr.bf16.mxu0 %v3015_v61  ;;  %v1695_v39 = vld [vmem:[#allocation4 + $0x1288] sm:$0xff]  ;;  %v1717_v28 = vld [vmem:[#allocation4 + $0x13d8] sm:$0xff] }
 0x8a3   :  { %v1487_v36 = vmax.f32 %v1486_v15, 0.0  ;;  %2954 = vmatpush1.bf16.msra.mxu1 %v2953_v62  ;;  %v3025_v15 = vpack.c.bf16 %v1676_v32, %v1672_v31  ;;  %v1699_v44 = vld [vmem:[#allocation4 + $0x12c8] sm:$0xff]  ;;  %v1710_v32 = vld [vmem:[#allocation4 + $0x1380] sm:$0xff] }
 0x8a4   :  { %2956 = vmatprep.subr.bf16.mxu1 %v2955_v4  ;;  %v2971_v62 = vpack.c.bf16 %v1699_v44, %v1695_v39  ;;  %v1705_v4 = vld [vmem:[#allocation4 + $0x1318] sm:$0xff]  ;;  %v1718_v39 = vld [vmem:[#allocation4 + $0x1400] sm:$0xff] }
 0x8a5   :  { %v1490_v37 = vadd.f32 1e-05, %v1487_v36  ;;  %v2963_v36 = vpack.c.bf16 %v1683_v14, %v1679_v34  ;;  %v3043_v34 = vpack.c.bf16 %v1717_v28, %v1713_v25  ;;  %v1712_v14 = vld [vmem:[#allocation4 + $0x1390] sm:$0xff]  ;;  %v1722_v44 = vld [vmem:[#allocation4 + $0x1440] sm:$0xff] }
 0x8a7   :  { %3224 = vrsqrt.f32 %v1490_v37  ;;  %2958 = vmatpush1.bf16.msra.mxu1 %v2957_v19  ;;  %v1685_v37 = vld [vmem:[#allocation4 + $0x11d8] sm:$0xff]  ;;  %v1702_v19 = vld [vmem:[#allocation4 + $0x1300] sm:$0xff] }
 0x8a8   :  { %2960 = vmatprep.subr.bf16.mxu1 %v2959_v22  ;;  %v1711_v22 = vld [vmem:[#allocation4 + $0x1388] sm:$0xff] }
 0x8a9   :  { %v2979_v31 = vpack.c.bf16 %v1715_v23, %v1711_v22  ;;  %v1734_v22 = vld [vmem:[#allocation4 + $0x1500] sm:$0xff] }
 0x8aa   :  { %v1738_v23 = vld [vmem:[#allocation4 + $0x1540] sm:$0xff] }
 0x8ab   :  { %2962 = vmatpush1.bf16.msra.mxu1 %v2961_v33  ;;  %v1714_v33 = vld [vmem:[#allocation4 + $0x13c0] sm:$0xff]  ;;  %v2993_v28 = vpack.c.bf16 %v1738_v23, %v1734_v22  ;;  %v1779_v22 = vld [vmem:[#allocation4 + $0x17c8] sm:$0xff]  ;;  %v1777_v23 = vld [vmem:[#allocation4 + $0x1798] sm:$0xff] }
 0x8ac   :  { %2964 = vmatprep.subr.bf16.mxu1 %v2963_v36 }
 0x8b1   :  { %v3225_v46 = vpop.eup %3224 }
 0x8b2   :  { %v1493_v51 = vmul.f32 %v3225_v46, %v1489_v42  ;;  %v1492_v54 = vmul.f32 %v3225_v46, %v1488_v26  ;;  %v3027_v26 = vpack.c.bf16 %v1685_v37, %v1681_v35  ;;  %v1680_v42 = vld [vmem:[#allocation4 + $0x1190] sm:$0xff]  ;;  %v1691_v46 = vld [vmem:[#allocation4 + $0x1248] sm:$0xff] }
 0x8b3   :  { %v1716_v35 = vld [vmem:[#allocation4 + $0x13d0] sm:$0xff] }
 0x8b4   :  { %v1506_v55 = vmul.f32 %v1502_v43, %v1493_v51  ;;  %v1505_v56 = vmul.f32 %v1498_v27, %v1492_v54  ;;  %v1684_v27 = vld [vmem:[#allocation4 + $0x11d0] sm:$0xff]  ;;  %v1687_v43 = vld [vmem:[#allocation4 + $0x1208] sm:$0xff]  ;;  %v1689_v51 = vld [vmem:[#allocation4 + $0x1218] sm:$0xff]  ;;  %v3045_v36 = vpack.c.bf16 %v1716_v35, %v1712_v14 }
 0x8b5   :  { %v3029_v54 = vpack.c.bf16 %v1684_v27, %v1680_v42  ;;  %v1168_v37 = vld [vmem:[#allocation6 + $0x34] ss:$8 sm:$0x3] }
 0x8b6   :  { %v1519_v57 = vadd.f32 %v1515_v53, %v1506_v55  ;;  %v1518_v58 = vadd.f32 %v1511_v52, %v1505_v56  ;;  %v1693_v52 = vld [vmem:[#allocation4 + $0x1258] sm:$0xff]  ;;  %v2965_v53 = vpack.c.bf16 %v1682_v41, %v1678_v40  ;;  %v2967_v55 = vpack.c.bf16 %v1691_v46, %v1687_v43  ;;  %v1686_v56 = vld [vmem:[#allocation4 + $0x1200] sm:$0xff] }
 0x8b7   :  { %v3031_v38 = vpack.c.bf16 %v1693_v52, %v1689_v51  ;;  %v1524_v40 = vrot.slane %v1168_v37, %v3397_v11  ;;  %v1528_v41 = vrot.slane %v1168_v37, %v3400_v13  ;;  %v1749_v35 = vld [vmem:[#allocation4 + $0x15d8] sm:$0xff] }
 0x8b8   :  { %1595 = vmatprep.mubr.f32.mxu0 %v1519_v57  ;;  %v1690_v57 = vld [vmem:[#allocation4 + $0x1240] sm:$0xff]  ;;  %2966 = vmatpush1.bf16.msra.mxu1 %v2965_v53 }
 0x8b9   :  { %1596 = vmatmul.mubr.f32.vlgmr.msra.gmra.mrb[8].mxu0 %v1518_v58  ;;  %v1688_v58 = vld [vmem:[#allocation4 + $0x1210] sm:$0xff]  ;;  %v2969_v45 = vpack.c.bf16 %v1690_v57, %v1686_v56  ;;  %2968 = vmatprep.subr.bf16.mxu1 %v2967_v55  ;;  %v1719_v56 = vld [vmem:[#allocation4 + $0x1408] sm:$0xff] }
 0x8ba   :  { %3018 = vmatpush1.bf16.msra.mxu0 %v3017_v0  ;;  %v3033_v61 = vpack.c.bf16 %v1692_v59, %v1688_v58  ;;  %v3035_v0 = vpack.c.bf16 %v1701_v10, %v1697_v60  ;;  %v1723_v57 = vld [vmem:[#allocation4 + $0x1448] sm:$0xff]  ;;  %v1721_v58 = vld [vmem:[#allocation4 + $0x1418] sm:$0xff]  ;;  %v2985_v10 = vpack.c.bf16 %v1722_v44, %v1718_v39 }
 0x8bb   :  { %3020 = vmatprep.subr.bf16.mxu0 %v3019_v5  ;;  %v1709_v5 = vld [vmem:[#allocation4 + $0x1358] sm:$0xff]  ;;  %v1759_v39 = vld [vmem:[#allocation4 + $0x1688] sm:$0xff] }
 0x8bc   :  { %2970 = vmatpush1.bf16.msra.mxu1 %v2969_v45  ;;  %v3039_v17 = vpack.c.bf16 %v1709_v5, %v1705_v4  ;;  %v1725_v59 = vld [vmem:[#allocation4 + $0x1458] sm:$0xff]  ;;  %v1720_v45 = vld [vmem:[#allocation4 + $0x1410] sm:$0xff]  ;;  %v3051_v4 = vpack.c.bf16 %v1733_v1, %v1729_v63  ;;  %v2989_v5 = vpack.c.bf16 %v1730_v3, %v1726_v2  ;;  %v1763_v44 = vld [vmem:[#allocation4 + $0x16c8] sm:$0xff] }
 0x8bd   :  { %2972 = vmatprep.subr.bf16.mxu1 %v2971_v62  ;;  %v3047_v60 = vpack.c.bf16 %v1725_v59, %v1721_v58  ;;  %v1752_v58 = vld [vmem:[#allocation4 + $0x1610] sm:$0xff]  ;;  %v1767_v2 = vld [vmem:[#allocation4 + $0x1708] sm:$0xff] }
 0x8be   :  { %3022 = vmatpush1.bf16.msra.mxu0 %v3021_v18  ;;  %v1708_v18 = vld [vmem:[#allocation4 + $0x1350] sm:$0xff]  ;;  %v1771_v3 = vld [vmem:[#allocation4 + $0x1748] sm:$0xff] }
 0x8bf   :  { %3024 = vmatprep.subr.bf16.mxu0 %v3023_v29  ;;  %v2977_v29 = vpack.c.bf16 %v1706_v16, %v1702_v19  ;;  %v3041_v30 = vpack.c.bf16 %v1708_v18, %v1704_v24  ;;  %v1735_v19 = vld [vmem:[#allocation4 + $0x1508] sm:$0xff]  ;;  %v1737_v24 = vld [vmem:[#allocation4 + $0x1518] sm:$0xff]  ;;  %v1756_v59 = vld [vmem:[#allocation4 + $0x1650] sm:$0xff] }
 0x8c0   :  { %2974 = vmatpush1.bf16.msra.mxu1 %v2973_v7  ;;  %v1728_v7 = vld [vmem:[#allocation4 + $0x1490] sm:$0xff]  ;;  %v1739_v16 = vld [vmem:[#allocation4 + $0x1548] sm:$0xff]  ;;  %v1741_v18 = vld [vmem:[#allocation4 + $0x1558] sm:$0xff] }
 0x8c1   :  { %2976 = vmatprep.subr.bf16.mxu1 %v2975_v12  ;;  %v3055_v25 = vpack.c.bf16 %v1741_v18, %v1737_v24  ;;  %v1760_v63 = vld [vmem:[#allocation4 + $0x1690] sm:$0xff]  ;;  %v1775_v18 = vld [vmem:[#allocation4 + $0x1788] sm:$0xff] }
 0x8c2   :  { %3026 = vmatpush1.bf16.msra.mxu0 %v3025_v15  ;;  %v2981_v15 = vpack.c.bf16 %v1714_v33, %v1710_v32  ;;  %v1743_v32 = vld [vmem:[#allocation4 + $0x1588] sm:$0xff]  ;;  %v1768_v24 = vld [vmem:[#allocation4 + $0x1710] sm:$0xff] }
 0x8c3   :  { %3028 = vmatprep.subr.bf16.mxu0 %v3027_v26  ;;  %v1747_v33 = vld [vmem:[#allocation4 + $0x15c8] sm:$0xff] }
 0x8c4   :  { %2978 = vmatpush1.bf16.msra.mxu1 %v2977_v29  ;;  %v1736_v29 = vld [vmem:[#allocation4 + $0x1510] sm:$0xff]  ;;  %v2995_v14 = vpack.c.bf16 %v1747_v33, %v1743_v32  ;;  %v1778_v32 = vld [vmem:[#allocation4 + $0x17c0] sm:$0xff] }
 0x8c5   :  { %2980 = vmatprep.subr.bf16.mxu1 %v2979_v31 }
 0x8c6   :  { %3030 = vmatpush1.bf16.msra.mxu0 %v3029_v54 }
 0x8c7   :  { %3032 = vmatprep.subr.bf16.mxu0 %v3031_v38  ;;  %v2983_v38 = vpack.c.bf16 %v1723_v57, %v1719_v56  ;;  %v1750_v56 = vld [vmem:[#allocation4 + $0x1600] sm:$0xff] }
 0x8c8   :  { %2982 = vmatpush1.bf16.msra.mxu1 %v2981_v15  ;;  %v1742_v15 = vld [vmem:[#allocation4 + $0x1580] sm:$0xff] }
 0x8c9   :  { %2984 = vmatprep.subr.bf16.mxu1 %v2983_v38  ;;  %v1754_v57 = vld [vmem:[#allocation4 + $0x1640] sm:$0xff] }
 0x8ca   :  { %3034 = vmatpush1.bf16.msra.mxu0 %v3033_v61  ;;  %v1724_v61 = vld [vmem:[#allocation4 + $0x1450] sm:$0xff]  ;;  %v3001_v38 = vpack.c.bf16 %v1754_v57, %v1750_v56 }
 0x8cb   :  { %3036 = vmatprep.subr.bf16.mxu0 %v3035_v0  ;;  %v3049_v62 = vpack.c.bf16 %v1724_v61, %v1720_v45  ;;  %v2987_v0 = vpack.c.bf16 %v1731_v50, %v1727_v49  ;;  %v1761_v45 = vld [vmem:[#allocation4 + $0x1698] sm:$0xff]  ;;  %v1762_v50 = vld [vmem:[#allocation4 + $0x16c0] sm:$0xff] }
 0x8cc   :  { %2986 = vmatpush1.bf16.msra.mxu1 %v2985_v10  ;;  %v3003_v10 = vpack.c.bf16 %v1763_v44, %v1759_v39  ;;  %v1765_v61 = vld [vmem:[#allocation4 + $0x16d8] sm:$0xff] }
 0x8cd   :  { %2988 = vmatprep.subr.bf16.mxu1 %v2987_v0  ;;  %v3067_v49 = vpack.c.bf16 %v1765_v61, %v1761_v45  ;;  %v1764_v0 = vld [vmem:[#allocation4 + $0x16d0] sm:$0xff] }
 0x8ce   :  { %3038 = vmatpush1.bf16.msra.mxu0 %v3037_v8  ;;  %v1732_v8 = vld [vmem:[#allocation4 + $0x14d0] sm:$0xff] }
 0x8cf   :  { %3040 = vmatprep.subr.bf16.mxu0 %v3039_v17  ;;  %v3053_v12 = vpack.c.bf16 %v1732_v8, %v1728_v7  ;;  %v2991_v17 = vpack.c.bf16 %v1739_v16, %v1735_v19  ;;  %v3007_v7 = vpack.c.bf16 %v1771_v3, %v1767_v2  ;;  %v1773_v8 = vld [vmem:[#allocation4 + $0x1758] sm:$0xff]  ;;  %v1770_v19 = vld [vmem:[#allocation4 + $0x1740] sm:$0xff]  ;;  %v1783_v3 = vld [vmem:[#allocation4 + $0x1028] sm:$0xff] }
 0x8d0   :  { %2990 = vmatpush1.bf16.msra.mxu1 %v2989_v5  ;;  %v3069_v5 = vpack.c.bf16 %v1764_v0, %v1760_v63 }
 0x8d1   :  { %2992 = vmatprep.subr.bf16.mxu1 %v2991_v17  ;;  %v1772_v17 = vld [vmem:[#allocation4 + $0x1750] sm:$0xff] }
 0x8d2   :  { %3042 = vmatpush1.bf16.msra.mxu0 %v3041_v30  ;;  %v1740_v30 = vld [vmem:[#allocation4 + $0x1550] sm:$0xff] }
 0x8d3   :  { %3044 = vmatprep.subr.bf16.mxu0 %v3043_v34  ;;  %v3057_v31 = vpack.c.bf16 %v1740_v30, %v1736_v29  ;;  %v1745_v34 = vld [vmem:[#allocation4 + $0x1598] sm:$0xff]  ;;  %v3073_v29 = vpack.c.bf16 %v1772_v17, %v1768_v24  ;;  %v3011_v30 = vpack.c.bf16 %v1779_v22, %v1775_v18  ;;  %v1788_v24 = vld [vmem:[#allocation4 + $0x10e0] sm:$0xff]  ;;  %v1791_v17 = vld [vmem:[#allocation4 + $0x1128] sm:$0xff] }
 0x8d4   :  { %2994 = vmatpush1.bf16.msra.mxu1 %v2993_v28  ;;  %v3059_v37 = vpack.c.bf16 %v1749_v35, %v1745_v34  ;;  %v1776_v34 = vld [vmem:[#allocation4 + $0x1790] sm:$0xff]  ;;  %v1793_v18 = vld [vmem:[#allocation4 + $0x1168] sm:$0xff] }
 0x8d5   :  { %2996 = vmatprep.subr.bf16.mxu1 %v2995_v14  ;;  %v1780_v14 = vld [vmem:[#allocation4 + $0x17d0] sm:$0xff] }
 0x8d6   :  { %3046 = vmatpush1.bf16.msra.mxu0 %v3045_v36  ;;  %v1746_v36 = vld [vmem:[#allocation4 + $0x15c0] sm:$0xff] }
 0x8d7   :  { %3048 = vmatprep.subr.bf16.mxu0 %v3047_v60  ;;  %v3065_v60 = vpack.c.bf16 %v1756_v59, %v1752_v58 }
 0x8da   :  { %3050 = vmatpush1.bf16.msra.mxu0 %v3049_v62  ;;  %v1758_v62 = vld [vmem:[#allocation4 + $0x1680] sm:$0xff] }
 0x8db   :  { %3052 = vmatprep.subr.bf16.mxu0 %v3051_v4  ;;  %v3005_v1 = vpack.c.bf16 %v1762_v50, %v1758_v62  ;;  %v1769_v4 = vld [vmem:[#allocation4 + $0x1718] sm:$0xff] }
 0x8dc   :  { %v3071_v16 = vpack.c.bf16 %v1773_v8, %v1769_v4  ;;  %v1785_v4 = vld [vmem:[#allocation4 + $0x1068] sm:$0xff]  ;;  %v1784_v8 = vld [vmem:[#allocation4 + $0x1060] sm:$0xff] }
 0x8de   :  { %3054 = vmatpush1.bf16.msra.mxu0 %v3053_v12  ;;  %v1766_v12 = vld [vmem:[#allocation4 + $0x1700] sm:$0xff] }
 0x8df   :  { %3056 = vmatprep.subr.bf16.mxu0 %v3055_v25  ;;  %v1781_v25 = vld [vmem:[#allocation4 + $0x17d8] sm:$0xff]  ;;  %v3009_v28 = vpack.c.bf16 %v1770_v19, %v1766_v12  ;;  %v1787_v12 = vld [vmem:[#allocation4 + $0x10a8] sm:$0xff] }
 0x8e0   :  { %v3075_v33 = vpack.c.bf16 %v1781_v25, %v1777_v23  ;;  %v1789_v19 = vld [vmem:[#allocation4 + $0x10e8] sm:$0xff]  ;;  %v3087_v23 = vpack.c.bf16 %v1793_v18, %v1791_v17  ;;  %v1790_v25 = vld [vmem:[#allocation4 + $0x1120] sm:$0xff] }
 0x8e1   :  { %v1819_v17 = vld [vmem:[#allocation4 + $0x14a8] sm:$0xff] }
 0x8e2   :  { %3058 = vmatpush1.bf16.msra.mxu0 %v3057_v31  ;;  %v1774_v31 = vld [vmem:[#allocation4 + $0x1780] sm:$0xff]  ;;  %v1821_v18 = vld [vmem:[#allocation4 + $0x14e8] sm:$0xff] }
 0x8e3   :  { %3060 = vmatprep.subr.bf16.mxu0 %v3059_v37  ;;  %v3013_v35 = vpack.c.bf16 %v1778_v32, %v1774_v31 }
 0x98c   :  { %v1597_v26 = vpop.f32.mrb[8].mxu0 }
 0x98d   :  { %v1598_v42 = vadd.f32 %v1597_v26, %v1524_v40  ;;  %v1599_v27 = vpop.f32.mrb[9].mxu0  ;;  %v2997_v40 = vpack.c.bf16 %v1746_v36, %v1742_v15  ;;  %v1748_v26 = vld [vmem:[#allocation4 + $0x15d0] sm:$0xff]  ;;  %v3077_v15 = vpack.c.bf16 %v1780_v14, %v1776_v34  ;;  %v1796_v34 = vld [vmem:[#allocation4 + $0x11e0] sm:$0xff]  ;;  %v1799_v14 = vld [vmem:[#allocation4 + $0x1228] sm:$0xff] }
 0x98e   :  { %v1600_v43 = vadd.f32 %v1599_v27, %v1528_v41  ;;  %v1744_v41 = vld [vmem:[#allocation4 + $0x1590] sm:$0xff] }
 0x98f   :  { %v3522_v46 = vmax.f32 %v1598_v42, 0.0  ;;  %v1751_v42 = vld [vmem:[#allocation4 + $0x1608] sm:$0xff]  ;;  %v3061_v27 = vpack.c.bf16 %v1748_v26, %v1744_v41  ;;  %2998 = vmatpush1.bf16.msra.mxu1 %v2997_v40 }
 0x990   :  { %v3524_v51 = vmax.f32 %v1600_v43, 0.0  ;;  %v1755_v43 = vld [vmem:[#allocation4 + $0x1648] sm:$0xff] }
 0x991   :  { %v1608_v52 = vmul.f32 %v3522_v46, %v3522_v46  ;;  %3062 = vmatpush1.bf16.msra.mxu0 %v3061_v27 }
 0x992   :  { %v1604_v53 = vadd.f32 %v3524_v51, %v3522_v46  ;;  %v1609_v54 = vmul.f32 %v3524_v51, %v3524_v51 }
 0x994   :  { %1605 = vadd.xlane.f32.xlu0 %v1604_v53  ;;  %v1610_v55 = vadd.f32 %v1609_v54, %v1608_v52  ;;  %v1753_v52 = vld [vmem:[#allocation4 + $0x1618] sm:$0xff]  ;;  %v2999_v54 = vpack.c.bf16 %v1755_v43, %v1751_v42 }
 0x995   :  { %v1757_v53 = vld [vmem:[#allocation4 + $0x1658] sm:$0xff] }
 0x996   :  { %1611 = vadd.xlane.f32.xlu1 %v1610_v55  ;;  %v3063_v55 = vpack.c.bf16 %v1757_v53, %v1753_v52  ;;  %3000 = vmatprep.subr.bf16.mxu1 %v2999_v54  ;;  %v1174_v52 = vld [vmem:[#allocation6 + $0x25] ss:$8 sm:$0x3]  ;;  %v1180_v53 = vld [vmem:[#allocation6 + $0x26] ss:$8 sm:$0x3] }
 0x997   :  { %3002 = vmatpush1.bf16.msra.mxu1 %v3001_v38  ;;  %v1627_v56 = vrot.slane %v1174_v52, %v3397_v11  ;;  %v1631_v57 = vrot.slane %v1174_v52, %v3400_v13  ;;  %v3235_v38 = vld [vmem:[#allocation6 + $0x4] ss:$8 sm:$0xf] }
 0x998   :  { %3064 = vmatprep.subr.bf16.mxu0 %v3063_v55  ;;  %3004 = vmatprep.subr.bf16.mxu1 %v3003_v10  ;;  %v1193_v59 = vrot.slane %v3235_v38, %v3465_v47  ;;  %v1197_v39 = vrot.slane %v3235_v38, %v3468_v48  ;;  %v1644_v10 = vrot.slane %v1180_v53, %v3400_v13  ;;  %v1804_v52 = vld [vmem:[#allocation4 + $0x12e0] sm:$0xff]  ;;  %v1811_v38 = vld [vmem:[#allocation4 + $0x13a8] sm:$0xff] }
 0x999   :  { %3066 = vmatpush1.bf16.msra.mxu0 %v3065_v60  ;;  %v1640_v60 = vrot.slane %v1180_v53, %v3397_v11  ;;  %v1807_v53 = vld [vmem:[#allocation4 + $0x1328] sm:$0xff] }
 0x99a   :  { %3068 = vmatprep.subr.bf16.mxu0 %v3067_v49  ;;  %v1342_v62 = vadd.f32 %v3484_v9, %v1197_v39  ;;  %v1786_v9 = vld [vmem:[#allocation4 + $0x10a0] sm:$0xff] }
 0x99b   :  { %3006 = vmatpush1.bf16.msra.mxu1 %v3005_v1  ;;  %v3085_v22 = vpack.c.bf16 %v1788_v24, %v1786_v9 }
 0x99c   :  { %3008 = vmatprep.subr.bf16.mxu1 %v3007_v7  ;;  %v3079_v7 = vpack.c.bf16 %v1785_v4, %v1783_v3 }
 0x99d   :  { %3070 = vmatpush1.bf16.msra.mxu0 %v3069_v5  ;;  %v1782_v5 = vld [vmem:[#allocation4 + $0x1020] sm:$0xff] }
 0x99e   :  { %3072 = vmatprep.subr.bf16.mxu0 %v3071_v16  ;;  %v3083_v16 = vpack.c.bf16 %v1789_v19, %v1787_v12 }
 0x99f   :  { %3010 = vmatpush1.bf16.msra.mxu1 %v3009_v28  ;;  %v1792_v28 = vld [vmem:[#allocation4 + $0x1160] sm:$0xff] }
 0x9a0   :  { %3012 = vmatprep.subr.bf16.mxu1 %v3011_v30  ;;  %v1797_v30 = vld [vmem:[#allocation4 + $0x11e8] sm:$0xff]  ;;  %v3089_v31 = vpack.c.bf16 %v1792_v28, %v1790_v25  ;;  %v1820_v25 = vld [vmem:[#allocation4 + $0x14e0] sm:$0xff] }
 0x9a1   :  { %3074 = vmatpush1.bf16.msra.mxu0 %v3073_v29  ;;  %v1795_v29 = vld [vmem:[#allocation4 + $0x11a8] sm:$0xff] }
 0x9a2   :  { %3076 = vmatprep.subr.bf16.mxu0 %v3075_v33  ;;  %v3091_v32 = vpack.c.bf16 %v1797_v30, %v1795_v29  ;;  %v1794_v33 = vld [vmem:[#allocation4 + $0x11a0] sm:$0xff]  ;;  %v1823_v29 = vld [vmem:[#allocation4 + $0x1528] sm:$0xff] }
 0x9a3   :  { %3014 = vmatpush1.bf16.msra.mxu1 %v3013_v35  ;;  %v1801_v35 = vld [vmem:[#allocation4 + $0x1268] sm:$0xff] }
 0x9a4   :  { %3080 = vmatprep.subr.bf16.mxu1 %v3079_v7  ;;  %v1825_v30 = vld [vmem:[#allocation4 + $0x1568] sm:$0xff] }
 0x9a5   :  { %3078 = vmatpush1.bf16.msra.mxu0 %v3077_v15  ;;  %v3093_v15 = vpack.c.bf16 %v1796_v34, %v1794_v33  ;;  %v1824_v33 = vld [vmem:[#allocation4 + $0x1560] sm:$0xff] }
 0xa21   :  { %v1606_v36 = vpop.xlane.xlu0 %1605 }
 0xa22   :  { %v1607_v37 = vmul.f32 0.00390625, %v1606_v36  ;;  %v3095_v36 = vpack.c.bf16 %v1801_v35, %v1799_v14  ;;  %v1827_v14 = vld [vmem:[#allocation4 + $0x15a8] sm:$0xff] }
 0xa23   :  { %v1612_v40 = vpop.xlane.xlu1 %1611  ;;  %v1829_v35 = vld [vmem:[#allocation4 + $0x15e8] sm:$0xff] }
 0xa24   :  { %v1613_v41 = vmul.f32 0.00390625, %v1612_v40  ;;  %v1614_v26 = vmul.f32 %v1607_v37, %v1607_v37  ;;  %v1617_v54 = vsub.f32 %v3522_v46, %v1607_v37  ;;  %v1618_v55 = vsub.f32 %v3524_v51, %v1607_v37  ;;  %v1798_v37 = vld [vmem:[#allocation4 + $0x1220] sm:$0xff] }
 0xa25   :  { %v1340_v51 = vadd.f32 %v3482_v6, %v1193_v59  ;;  %v3081_v6 = vpack.c.bf16 %v1784_v8, %v1782_v5  ;;  %v1800_v40 = vld [vmem:[#allocation4 + $0x1260] sm:$0xff]  ;;  %v1813_v59 = vld [vmem:[#allocation4 + $0x13e8] sm:$0xff] }
 0xa26   :  { %v1615_v42 = vsub.f32 %v1613_v41, %v1614_v26  ;;  %v1803_v41 = vld [vmem:[#allocation4 + $0x12a8] sm:$0xff] }
 0xa27   :  { %v1805_v26 = vld [vmem:[#allocation4 + $0x12e8] sm:$0xff] }
 0xa28   :  { %v1616_v27 = vmax.f32 %v1615_v42, 0.0  ;;  %v3097_v42 = vpack.c.bf16 %v1800_v40, %v1798_v37  ;;  %v1828_v37 = vld [vmem:[#allocation4 + $0x15e0] sm:$0xff] }
 0xa2a   :  { %v1619_v43 = vadd.f32 1e-05, %v1616_v27  ;;  %v3099_v27 = vpack.c.bf16 %v1805_v26, %v1803_v41  ;;  %v1831_v41 = vld [vmem:[#allocation4 + $0x1628] sm:$0xff] }
 0xa2b   :  { %v1833_v26 = vld [vmem:[#allocation4 + $0x1668] sm:$0xff] }
 0xa2c   :  { %3226 = vrsqrt.f32 %v1619_v43  ;;  %v1802_v43 = vld [vmem:[#allocation4 + $0x12a0] sm:$0xff] }
 0xa36   :  { %v3227_v58 = vpop.eup %3226 }
 0xa37   :  { %v1622_v44 = vmul.f32 %v3227_v58, %v1618_v55  ;;  %v1621_v45 = vmul.f32 %v3227_v58, %v1617_v54  ;;  %v1809_v54 = vld [vmem:[#allocation4 + $0x1368] sm:$0xff]  ;;  %v3101_v55 = vpack.c.bf16 %v1804_v52, %v1802_v43  ;;  %v1808_v58 = vld [vmem:[#allocation4 + $0x1360] sm:$0xff] }
 0xa38   :  { %v1832_v43 = vld [vmem:[#allocation4 + $0x1660] sm:$0xff]  ;;  %v1835_v52 = vld [vmem:[#allocation4 + $0x16a8] sm:$0xff] }
 0xa39   :  { %v1635_v61 = vmul.f32 %v1631_v57, %v1622_v44  ;;  %v1634_v46 = vmul.f32 %v1627_v56, %v1621_v45  ;;  %v3103_v56 = vpack.c.bf16 %v1809_v54, %v1807_v53  ;;  %v1806_v57 = vld [vmem:[#allocation4 + $0x1320] sm:$0xff]  ;;  %v3107_v44 = vpack.c.bf16 %v1813_v59, %v1811_v38  ;;  %v1815_v45 = vld [vmem:[#allocation4 + $0x1428] sm:$0xff] }
 0xa3a   :  { %v3105_v39 = vpack.c.bf16 %v1808_v58, %v1806_v57  ;;  %v1837_v54 = vld [vmem:[#allocation4 + $0x16e8] sm:$0xff] }
 0xa3b   :  { %v1648_v49 = vadd.f32 %v1644_v10, %v1635_v61  ;;  %v1647_v50 = vadd.f32 %v1640_v60, %v1634_v46  ;;  %v1810_v60 = vld [vmem:[#allocation4 + $0x13a0] sm:$0xff]  ;;  %v1817_v61 = vld [vmem:[#allocation4 + $0x1468] sm:$0xff]  ;;  %v3131_v57 = vpack.c.bf16 %v1837_v54, %v1835_v52  ;;  %v1854_v54 = vld [vmem:[#allocation4 + $0x1130] sm:$0xff] }
 0xa3c   :  { %v1812_v10 = vld [vmem:[#allocation4 + $0x13e0] sm:$0xff]  ;;  %v1839_v58 = vld [vmem:[#allocation4 + $0x1728] sm:$0xff] }
 0xa3d   :  { %v1650_v63 = vadd.f32 %v1648_v49, %v1342_v62  ;;  %v1649_v0 = vadd.f32 %v1647_v50, %v1340_v51  ;;  %v3109_v46 = vpack.c.bf16 %v1812_v10, %v1810_v60  ;;  %v3111_v51 = vpack.c.bf16 %v1817_v61, %v1815_v45  ;;  %v1814_v62 = vld [vmem:[#allocation4 + $0x1420] sm:$0xff]  ;;  %v1841_v38 = vld [vmem:[#allocation4 + $0x1768] sm:$0xff] }
 0xa3e   :  { %v1816_v49 = vld [vmem:[#allocation4 + $0x1460] sm:$0xff]  ;;  %v1843_v10 = vld [vmem:[#allocation4 + $0x17a8] sm:$0xff] }
 0xa3f   :  { %v1652_v1 = vmax.f32 %v1650_v63, 0.0  ;;  %v1651_v2 = vmax.f32 %v1649_v0, 0.0  ;;  %v3113_v50 = vpack.c.bf16 %v1816_v49, %v1814_v62  ;;  %v3542_v63 = vld [vmem:[#allocation6 + $0x7] ss:$8 sm:$0xf] }
 0xa40   :  { %v1932_v0 = vrot.slane %v3542_v63, %v3397_v11  ;;  %v1840_v60 = vld [vmem:[#allocation4 + $0x1760] sm:$0xff]  ;;  %v1845_v45 = vld [vmem:[#allocation4 + $0x17e8] sm:$0xff] }
 0xa41   :  { %2013 = vmatprep.mubr.f32.mxu1 %v1652_v1  ;;  %2084 = vmatprep.mubr.f32.mxu0 %v1652_v1  ;;  %v1936_v1 = vrot.slane %v3542_v63, %v3400_v13  ;;  %v1844_v62 = vld [vmem:[#allocation4 + $0x17e0] sm:$0xff] }
 0xa42   :  { %2014 = vmatmul.mubr.f32.vlgmr.msra.gmra.mrb[8].mxu1 %v1651_v2  ;;  %2085 = vmatmul.mubr.f32.vlgmr.msra.gmra.mrb[10].mxu0 %v1651_v2 }
 0xa43   :  { %3082 = vmatpush1.bf16.msra.mxu1 %v3081_v6 }
 0xa44   :  { %3084 = vmatprep.subr.bf16.mxu1 %v3083_v16 }
 0xa47   :  { %3086 = vmatpush1.bf16.msra.mxu1 %v3085_v22  ;;  %v3115_v22 = vpack.c.bf16 %v1821_v18, %v1819_v17 }
 0xa48   :  { %3088 = vmatprep.subr.bf16.mxu1 %v3087_v23  ;;  %v1818_v23 = vld [vmem:[#allocation4 + $0x14a0] sm:$0xff] }
 0xa49   :  { %v3117_v28 = vpack.c.bf16 %v1820_v25, %v1818_v23 }
 0xa4b   :  { %3090 = vmatpush1.bf16.msra.mxu1 %v3089_v31  ;;  %v3119_v31 = vpack.c.bf16 %v1825_v30, %v1823_v29 }
 0xa4c   :  { %3092 = vmatprep.subr.bf16.mxu1 %v3091_v32  ;;  %v1822_v32 = vld [vmem:[#allocation4 + $0x1520] sm:$0xff] }
 0xa4d   :  { %v3121_v34 = vpack.c.bf16 %v1824_v33, %v1822_v32 }
 0xa4f   :  { %3094 = vmatpush1.bf16.msra.mxu1 %v3093_v15  ;;  %v3123_v15 = vpack.c.bf16 %v1829_v35, %v1827_v14  ;;  %v1849_v14 = vld [vmem:[#allocation4 + $0x1078] sm:$0xff] }
 0xa50   :  { %3096 = vmatprep.subr.bf16.mxu1 %v3095_v36  ;;  %v1826_v36 = vld [vmem:[#allocation4 + $0x15a0] sm:$0xff] }
 0xa51   :  { %v3125_v40 = vpack.c.bf16 %v1828_v37, %v1826_v36  ;;  %v1851_v36 = vld [vmem:[#allocation4 + $0x10b8] sm:$0xff] }
 0xa52   :  { %v1853_v37 = vld [vmem:[#allocation4 + $0x10f8] sm:$0xff] }
 0xa53   :  { %3098 = vmatpush1.bf16.msra.mxu1 %v3097_v42  ;;  %v3127_v42 = vpack.c.bf16 %v1833_v26, %v1831_v41  ;;  %v3147_v41 = vpack.c.bf16 %v1853_v37, %v1851_v36  ;;  %v1850_v26 = vld [vmem:[#allocation4 + $0x10b0] sm:$0xff] }
 0xa54   :  { %3100 = vmatprep.subr.bf16.mxu1 %v3099_v27  ;;  %v1830_v27 = vld [vmem:[#allocation4 + $0x1620] sm:$0xff] }
 0xa55   :  { %v3129_v53 = vpack.c.bf16 %v1832_v43, %v1830_v27  ;;  %v1855_v27 = vld [vmem:[#allocation4 + $0x1138] sm:$0xff] }
 0xa56   :  { %v1857_v43 = vld [vmem:[#allocation4 + $0x1178] sm:$0xff] }
 0xa57   :  { %3102 = vmatpush1.bf16.msra.mxu1 %v3101_v55  ;;  %v1834_v55 = vld [vmem:[#allocation4 + $0x16a0] sm:$0xff] }
 0xa58   :  { %3104 = vmatprep.subr.bf16.mxu1 %v3103_v56  ;;  %v1836_v56 = vld [vmem:[#allocation4 + $0x16e0] sm:$0xff] }
 0xa59   :  { %v3133_v59 = vpack.c.bf16 %v1836_v56, %v1834_v55  ;;  %v1856_v55 = vld [vmem:[#allocation4 + $0x1170] sm:$0xff]  ;;  %v1859_v56 = vld [vmem:[#allocation4 + $0x11b8] sm:$0xff] }
 0xa5b   :  { %3106 = vmatpush1.bf16.msra.mxu1 %v3105_v39  ;;  %v3135_v39 = vpack.c.bf16 %v1841_v38, %v1839_v58  ;;  %v3153_v58 = vpack.c.bf16 %v1856_v55, %v1854_v54  ;;  %v1882_v54 = vld [vmem:[#allocation4 + $0x14b0] sm:$0xff] }
 0xa5c   :  { %3108 = vmatprep.subr.bf16.mxu1 %v3107_v44  ;;  %v1838_v44 = vld [vmem:[#allocation4 + $0x1720] sm:$0xff]  ;;  %v1884_v55 = vld [vmem:[#allocation4 + $0x14f0] sm:$0xff] }
 0xa5d   :  { %v3137_v61 = vpack.c.bf16 %v1840_v60, %v1838_v44  ;;  %v1863_v44 = vld [vmem:[#allocation4 + $0x1238] sm:$0xff] }
 0xa5e   :  { %v1865_v60 = vld [vmem:[#allocation4 + $0x1278] sm:$0xff] }
 0xa5f   :  { %3110 = vmatpush1.bf16.msra.mxu1 %v3109_v46  ;;  %v3139_v46 = vpack.c.bf16 %v1845_v45, %v1843_v10  ;;  %v3159_v45 = vpack.c.bf16 %v1865_v60, %v1863_v44  ;;  %v1891_v60 = vld [vmem:[#allocation4 + $0x15b8] sm:$0xff] }
 0xa60   :  { %3112 = vmatprep.subr.bf16.mxu1 %v3111_v51  ;;  %v1842_v51 = vld [vmem:[#allocation4 + $0x17a0] sm:$0xff] }
 0xa61   :  { %v3141_v49 = vpack.c.bf16 %v1844_v62, %v1842_v51  ;;  %v1867_v51 = vld [vmem:[#allocation4 + $0x12b8] sm:$0xff] }
 0xa62   :  { %v1869_v62 = vld [vmem:[#allocation4 + $0x12f8] sm:$0xff] }
 0xa63   :  { %3114 = vmatpush1.bf16.msra.mxu1 %v3113_v50 }
 0xa64   :  { %3116 = vmatprep.subr.bf16.mxu1 %v3115_v22 }
 0xa67   :  { %3118 = vmatpush1.bf16.msra.mxu1 %v3117_v28 }
 0xa68   :  { %3120 = vmatprep.subr.bf16.mxu1 %v3119_v31 }
 0xa6b   :  { %3122 = vmatpush1.bf16.msra.mxu1 %v3121_v34 }
 0xa6c   :  { %3124 = vmatprep.subr.bf16.mxu1 %v3123_v15  ;;  %v1848_v15 = vld [vmem:[#allocation4 + $0x1070] sm:$0xff] }
 0xa6f   :  { %3126 = vmatpush1.bf16.msra.mxu1 %v3125_v40 }
 0xa70   :  { %3128 = vmatprep.subr.bf16.mxu1 %v3127_v42  ;;  %v1852_v42 = vld [vmem:[#allocation4 + $0x10f0] sm:$0xff] }
 0xa71   :  { %v3149_v52 = vpack.c.bf16 %v1852_v42, %v1850_v26 }
 0xa73   :  { %3130 = vmatpush1.bf16.msra.mxu1 %v3129_v53  ;;  %v3151_v53 = vpack.c.bf16 %v1857_v43, %v1855_v27  ;;  %v1883_v43 = vld [vmem:[#allocation4 + $0x14b8] sm:$0xff] }
 0xa74   :  { %3132 = vmatprep.subr.bf16.mxu1 %v3131_v57  ;;  %v1861_v57 = vld [vmem:[#allocation4 + $0x11f8] sm:$0xff] }
 0xa75   :  { %v3155_v38 = vpack.c.bf16 %v1861_v57, %v1859_v56  ;;  %v3181_v56 = vpack.c.bf16 %v1884_v55, %v1882_v54  ;;  %v1887_v57 = vld [vmem:[#allocation4 + $0x1538] sm:$0xff] }
 0xa77   :  { %3134 = vmatpush1.bf16.msra.mxu1 %v3133_v59  ;;  %v1858_v59 = vld [vmem:[#allocation4 + $0x11b0] sm:$0xff] }
 0xa78   :  { %3136 = vmatprep.subr.bf16.mxu1 %v3135_v39  ;;  %v1860_v39 = vld [vmem:[#allocation4 + $0x11f0] sm:$0xff] }
 0xa79   :  { %v3157_v10 = vpack.c.bf16 %v1860_v39, %v1858_v59  ;;  %v1886_v59 = vld [vmem:[#allocation4 + $0x1530] sm:$0xff] }
 0xa7a   :  { %v1888_v39 = vld [vmem:[#allocation4 + $0x1570] sm:$0xff] }
 0xa7b   :  { %3138 = vmatpush1.bf16.msra.mxu1 %v3137_v61  ;;  %v1862_v61 = vld [vmem:[#allocation4 + $0x1230] sm:$0xff]  ;;  %v3185_v44 = vpack.c.bf16 %v1888_v39, %v1886_v59 }
 0xa7c   :  { %3140 = vmatprep.subr.bf16.mxu1 %v3139_v46  ;;  %v1864_v46 = vld [vmem:[#allocation4 + $0x1270] sm:$0xff] }
 0xa7f   :  { %3142 = vmatpush1.bf16.msra.mxu1 %v3141_v49  ;;  %v3161_v49 = vpack.c.bf16 %v1864_v46, %v1862_v61  ;;  %v1890_v61 = vld [vmem:[#allocation4 + $0x15b0] sm:$0xff] }
 0xa80   :  { %v1892_v46 = vld [vmem:[#allocation4 + $0x15f0] sm:$0xff] }
 0xb15   :  { %v2015_v2 = vpop.f32.mrb[8].mxu1  ;;  %v3548_v3 = vpop.f32.mrb[10].mxu0 }
 0xb16   :  { %v2016_v4 = vadd.f32 %v2015_v2, %v1932_v0  ;;  %v2017_v5 = vpop.f32.mrb[9].mxu1  ;;  %v3550_v7 = vpop.f32.mrb[11].mxu0 }
 0xb17   :  { %v2018_v8 = vadd.f32 %v2017_v5, %v1936_v1 }
 0xb18   :  { %v3552_v12 = vmax.f32 %v2016_v4, 0.0 }
 0xb19   :  { %v3554_v19 = vmax.f32 %v2018_v8, 0.0 }
 0xb1a   :  { %v2097_v6 = vmul.f32 %v3552_v12, %v3552_v12 }
 0xb1b   :  { %v2093_v16 = vadd.f32 %v3554_v19, %v3552_v12  ;;  %v2098_v9 = vmul.f32 %v3554_v19, %v3554_v19 }
 0xb1d   :  { %2094 = vadd.xlane.f32.xlu0 %v2093_v16  ;;  %v2099_v24 = vadd.f32 %v2098_v9, %v2097_v6  ;;  %v1917_v16 = vld [vmem:[#allocation6 + $0x40] ss:$8 sm:$0x3]  ;;  %v1923_v9 = vld [vmem:[#allocation6 + $0x41] ss:$8 sm:$0x3] }
 0xb1e   :  { %v2116_v18 = vrot.slane %v1917_v16, %v3397_v11  ;;  %v2120_v22 = vrot.slane %v1917_v16, %v3400_v13  ;;  %v2129_v28 = vrot.slane %v1923_v9, %v3397_v11  ;;  %v2133_v29 = vrot.slane %v1923_v9, %v3400_v13  ;;  %v1872_v16 = vld [vmem:[#allocation4 + $0x1370] sm:$0xff]  ;;  %v1875_v9 = vld [vmem:[#allocation4 + $0x13b8] sm:$0xff] }
 0xb1f   :  { %2100 = vadd.xlane.f32.xlu1 %v2099_v24 }
 0xbaa   :  { %v2095_v50 = vpop.xlane.xlu0 %2094 }
 0xbab   :  { %v2096_v0 = vmul.f32 0.00390625, %v2095_v50  ;;  %v3163_v50 = vpack.c.bf16 %v1869_v62, %v1867_v51  ;;  %v3189_v51 = vpack.c.bf16 %v1892_v46, %v1890_v61  ;;  %v1895_v62 = vld [vmem:[#allocation4 + $0x1638] sm:$0xff] }
 0xbac   :  { %v2101_v1 = vpop.xlane.xlu1 %2100 }
 0xbad   :  { %v2102_v2 = vmul.f32 0.00390625, %v2101_v1  ;;  %v2103_v4 = vmul.f32 %v2096_v0, %v2096_v0  ;;  %v2106_v24 = vsub.f32 %v3552_v12, %v2096_v0  ;;  %v2107_v17 = vsub.f32 %v3554_v19, %v2096_v0  ;;  %v1847_v12 = vld [vmem:[#allocation4 + $0x1038] sm:$0xff]  ;;  %v1846_v19 = vld [vmem:[#allocation4 + $0x1030] sm:$0xff] }
 0xbae   :  { %v3143_v35 = vpack.c.bf16 %v1849_v14, %v1847_v12  ;;  %v3145_v40 = vpack.c.bf16 %v1848_v15, %v1846_v19  ;;  %v1866_v0 = vld [vmem:[#allocation4 + $0x12b0] sm:$0xff] }
 0xbaf   :  { %v2104_v5 = vsub.f32 %v2102_v2, %v2103_v4  ;;  %v1868_v1 = vld [vmem:[#allocation4 + $0x12f0] sm:$0xff]  ;;  %v1871_v2 = vld [vmem:[#allocation4 + $0x1338] sm:$0xff] }
 0xbb0   :  { %3144 = vmatprep.subr.bf16.mxu0 %v3143_v35  ;;  %v1873_v4 = vld [vmem:[#allocation4 + $0x1378] sm:$0xff] }
 0xbb1   :  { %v2105_v8 = vmax.f32 %v2104_v5, 0.0  ;;  %3146 = vmatpush1.bf16.msra.mxu0 %v3145_v40  ;;  %v3165_v5 = vpack.c.bf16 %v1868_v1, %v1866_v0  ;;  %v1894_v0 = vld [vmem:[#allocation4 + $0x1630] sm:$0xff] }
 0xbb2   :  { %3148 = vmatprep.subr.bf16.mxu0 %v3147_v41  ;;  %v1896_v1 = vld [vmem:[#allocation4 + $0x1670] sm:$0xff] }
 0xbb3   :  { %v2108_v6 = vadd.f32 1e-05, %v2105_v8  ;;  %v3167_v8 = vpack.c.bf16 %v1873_v4, %v1871_v2  ;;  %v1899_v2 = vld [vmem:[#allocation4 + $0x16b8] sm:$0xff]  ;;  %v3193_v4 = vpack.c.bf16 %v1896_v1, %v1894_v0 }
 0xbb5   :  { %3228 = vrsqrt.f32 %v2108_v6  ;;  %3150 = vmatpush1.bf16.msra.mxu0 %v3149_v52  ;;  %v1870_v6 = vld [vmem:[#allocation4 + $0x1330] sm:$0xff]  ;;  %v1885_v52 = vld [vmem:[#allocation4 + $0x14f8] sm:$0xff] }
 0xbb6   :  { %3152 = vmatprep.subr.bf16.mxu0 %v3151_v53  ;;  %v3179_v53 = vpack.c.bf16 %v1885_v52, %v1883_v43 }
 0xbb9   :  { %3154 = vmatpush1.bf16.msra.mxu0 %v3153_v58  ;;  %v1889_v58 = vld [vmem:[#allocation4 + $0x1578] sm:$0xff] }
 0xbba   :  { %3156 = vmatprep.subr.bf16.mxu0 %v3155_v38  ;;  %v3183_v38 = vpack.c.bf16 %v1889_v58, %v1887_v57 }
 0xbbd   :  { %3158 = vmatpush1.bf16.msra.mxu0 %v3157_v10  ;;  %v1893_v10 = vld [vmem:[#allocation4 + $0x15f8] sm:$0xff] }
 0xbbe   :  { %3160 = vmatprep.subr.bf16.mxu0 %v3159_v45  ;;  %v3187_v45 = vpack.c.bf16 %v1893_v10, %v1891_v60 }
 0xbbf   :  { %v3229_v23 = vpop.eup %3228 }
 0xbc0   :  { %v2111_v25 = vmul.f32 %v3229_v23, %v2107_v17  ;;  %v2110_v30 = vmul.f32 %v3229_v23, %v2106_v24  ;;  %v1877_v24 = vld [vmem:[#allocation4 + $0x13f8] sm:$0xff]  ;;  %v3169_v17 = vpack.c.bf16 %v1872_v16, %v1870_v6  ;;  %v1876_v23 = vld [vmem:[#allocation4 + $0x13f0] sm:$0xff] }
 0xbc1   :  { %3162 = vmatpush1.bf16.msra.mxu0 %v3161_v49  ;;  %v1897_v49 = vld [vmem:[#allocation4 + $0x1678] sm:$0xff]  ;;  %v1900_v6 = vld [vmem:[#allocation4 + $0x16f0] sm:$0xff] }
 0xbc2   :  { %v2124_v31 = vmul.f32 %v2120_v22, %v2111_v25  ;;  %v2123_v32 = vmul.f32 %v2116_v18, %v2110_v30  ;;  %3164 = vmatprep.subr.bf16.mxu0 %v3163_v50  ;;  %v3171_v18 = vpack.c.bf16 %v1877_v24, %v1875_v9  ;;  %v1874_v22 = vld [vmem:[#allocation4 + $0x13b0] sm:$0xff]  ;;  %v1879_v25 = vld [vmem:[#allocation4 + $0x1438] sm:$0xff]  ;;  %v3191_v50 = vpack.c.bf16 %v1897_v49, %v1895_v62 }
 0xbc3   :  { %v1903_v9 = vld [vmem:[#allocation4 + $0x1738] sm:$0xff] }
 0xbc4   :  { %v2137_v33 = vadd.f32 %v2133_v29, %v2124_v31  ;;  %v2136_v34 = vadd.f32 %v2129_v28, %v2123_v32  ;;  %v1881_v28 = vld [vmem:[#allocation4 + $0x1478] sm:$0xff]  ;;  %v3173_v29 = vpack.c.bf16 %v1876_v23, %v1874_v22  ;;  %v1878_v31 = vld [vmem:[#allocation4 + $0x1430] sm:$0xff] }
 0xbc5   :  { %3166 = vmatpush1.bf16.msra.mxu0 %v3165_v5  ;;  %v3175_v30 = vpack.c.bf16 %v1881_v28, %v1879_v25  ;;  %v1880_v32 = vld [vmem:[#allocation4 + $0x1470] sm:$0xff]  ;;  %v1901_v5 = vld [vmem:[#allocation4 + $0x16f8] sm:$0xff] }
 0xbc6   :  { %2213 = vmatprep.mubr.f32.mxu1 %v2137_v33  ;;  %3168 = vmatprep.subr.bf16.mxu0 %v3167_v8  ;;  %v3177_v33 = vpack.c.bf16 %v1880_v32, %v1878_v31  ;;  %v1898_v8 = vld [vmem:[#allocation4 + $0x16b0] sm:$0xff]  ;;  %v3195_v16 = vpack.c.bf16 %v1901_v5, %v1899_v2  ;;  %v1905_v24 = vld [vmem:[#allocation4 + $0x1778] sm:$0xff] }
 0xbc7   :  { %2214 = vmatmul.mubr.f32.vlgmr.msra.gmra.mrb[10].mxu1 %v2136_v34  ;;  %v1913_v34 = vld [vmem:[#allocation6 + $0x27] ss:$8 sm:$0x3]  ;;  %v1902_v22 = vld [vmem:[#allocation4 + $0x1730] sm:$0xff]  ;;  %v1907_v25 = vld [vmem:[#allocation4 + $0x17b8] sm:$0xff] }
 0xbc8   :  { %v2142_v12 = vrot.slane %v1913_v34, %v3397_v11  ;;  %v2146_v14 = vrot.slane %v1913_v34, %v3400_v13  ;;  %v1904_v23 = vld [vmem:[#allocation4 + $0x1770] sm:$0xff]  ;;  %v1909_v28 = vld [vmem:[#allocation4 + $0x17f8] sm:$0xff] }
 0xbc9   :  { %3170 = vmatpush1.bf16.msra.mxu0 %v3169_v17  ;;  %v3197_v17 = vpack.c.bf16 %v1900_v6, %v1898_v8  ;;  %v1906_v31 = vld [vmem:[#allocation4 + $0x17b0] sm:$0xff] }
 0xbca   :  { %3172 = vmatprep.subr.bf16.mxu0 %v3171_v18  ;;  %v3199_v18 = vpack.c.bf16 %v1905_v24, %v1903_v9  ;;  %v1908_v32 = vld [vmem:[#allocation4 + $0x17f0] sm:$0xff] }
 0xbcd   :  { %3174 = vmatpush1.bf16.msra.mxu0 %v3173_v29  ;;  %v3201_v29 = vpack.c.bf16 %v1904_v23, %v1902_v22 }
 0xbce   :  { %3176 = vmatprep.subr.bf16.mxu0 %v3175_v30  ;;  %v3203_v30 = vpack.c.bf16 %v1909_v28, %v1907_v25 }
 0xbd1   :  { %3178 = vmatpush1.bf16.msra.mxu0 %v3177_v33  ;;  %v3205_v33 = vpack.c.bf16 %v1908_v32, %v1906_v31  ;;  %v1944_v31 = vrot.slane %v3542_v63, %v3468_v48 }
 0xbd2   :  { %3180 = vmatprep.subr.bf16.mxu0 %v3179_v53 }
 0xbd5   :  { %3182 = vmatpush1.bf16.msra.mxu0 %v3181_v56 }
 0xbd6   :  { %3184 = vmatprep.subr.bf16.mxu0 %v3183_v38 }
 0xbd9   :  { %3186 = vmatpush1.bf16.msra.mxu0 %v3185_v44 }
 0xbda   :  { %3188 = vmatprep.subr.bf16.mxu0 %v3187_v45 }
 0xbdd   :  { %3190 = vmatpush1.bf16.msra.mxu0 %v3189_v51 }
 0xbde   :  { %3192 = vmatprep.subr.bf16.mxu0 %v3191_v50 }
 0xbe1   :  { %3194 = vmatpush1.bf16.msra.mxu0 %v3193_v4 }
 0xbe2   :  { %3196 = vmatprep.subr.bf16.mxu0 %v3195_v16 }
 0xbe5   :  { %3198 = vmatpush1.bf16.msra.mxu0 %v3197_v17  ;;  %v1921_v17 = vld [vmem:[#allocation6 + $0x60] ss:$8 sm:$0x3] }
 0xbe6   :  { %3200 = vmatprep.subr.bf16.mxu0 %v3199_v18  ;;  %v1927_v18 = vld [vmem:[#allocation6 + $0x61] ss:$8 sm:$0x3]  ;;  %v2374_v25 = vrot.slane %v1921_v17, %v3397_v11  ;;  %v2378_v28 = vrot.slane %v1921_v17, %v3400_v13 }
 0xbe9   :  { %3202 = vmatpush1.bf16.msra.mxu0 %v3201_v29 }
 0xbea   :  { %3204 = vmatprep.subr.bf16.mxu0 %v3203_v30  ;;  %v1940_v30 = vrot.slane %v3542_v63, %v3465_v47 }
 0xbed   :  { %3206 = vmatpush1.bf16.msra.mxu0 %v3205_v33 }
 0xc9a   :  { %v2215_v19 = vpop.f32.mrb[10].mxu1 }
 0xc9b   :  { %v2216_v35 = vadd.f32 %v2215_v19, %v2142_v12  ;;  %v2217_v15 = vpop.f32.mrb[11].mxu1 }
 0xc9c   :  { %v2218_v36 = vadd.f32 %v2217_v15, %v2146_v14 }
 0xc9d   :  { %v3570_v37 = vmax.f32 %v2216_v35, 0.0 }
 0xc9e   :  { %v3572_v40 = vmax.f32 %v2218_v36, 0.0 }
 0xc9f   :  { %v2226_v41 = vmul.f32 %v3570_v37, %v3570_v37 }
 0xca0   :  { %v2222_v26 = vadd.f32 %v3572_v40, %v3570_v37  ;;  %v2227_v42 = vmul.f32 %v3572_v40, %v3572_v40 }
 0xca2   :  { %2223 = vadd.xlane.f32.xlu0 %v2222_v26  ;;  %v2228_v27 = vadd.f32 %v2227_v42, %v2226_v41  ;;  %v1919_v26 = vld [vmem:[#allocation6 + $0x50] ss:$8 sm:$0x3]  ;;  %v1925_v42 = vld [vmem:[#allocation6 + $0x51] ss:$8 sm:$0x3] }
 0xca3   :  { %v2245_v52 = vrot.slane %v1919_v26, %v3397_v11  ;;  %v2249_v53 = vrot.slane %v1919_v26, %v3400_v13  ;;  %v2258_v56 = vrot.slane %v1925_v42, %v3397_v11  ;;  %v2262_v57 = vrot.slane %v1925_v42, %v3400_v13  ;;  %v2401_v26 = vld [vmem:[#allocation6 + $0x10] ss:$8 sm:$0x3] }
 0xca4   :  { %2229 = vadd.xlane.f32.xlu1 %v2228_v27  ;;  %v2409_v48 = vrot.slane %v2401_v26, %v3397_v11  ;;  %v2413_v63 = vrot.slane %v2401_v26, %v3400_v13 }
 0xd2f   :  { %v2224_v34 = vpop.xlane.xlu0 %2223 }
 0xd30   :  { %v2225_v12 = vmul.f32 0.00390625, %v2224_v34  ;;  %v2387_v34 = vrot.slane %v1927_v18, %v3397_v11 }
 0xd31   :  { %v2230_v14 = vpop.xlane.xlu1 %2229 }
 0xd32   :  { %v2231_v19 = vmul.f32 0.00390625, %v2230_v14  ;;  %v2232_v35 = vmul.f32 %v2225_v12, %v2225_v12  ;;  %v2235_v27 = vsub.f32 %v3570_v37, %v2225_v12  ;;  %v2236_v43 = vsub.f32 %v3572_v40, %v2225_v12  ;;  %v1915_v37 = vld [vmem:[#allocation6 + $0x37] ss:$8 sm:$0x3] }
 0xd33   :  { %v2271_v40 = vrot.slane %v1915_v37, %v3397_v11  ;;  %v2275_v60 = vrot.slane %v1915_v37, %v3400_v13  ;;  %v2391_v12 = vrot.slane %v1927_v18, %v3400_v13 }
 0xd34   :  { %v2233_v15 = vsub.f32 %v2231_v19, %v2232_v35  ;;  %v2087_v35 = vadd.f32 %v3548_v3, %v1940_v30 }
 0xd36   :  { %v2234_v36 = vmax.f32 %v2233_v15, 0.0  ;;  %v2089_v15 = vadd.f32 %v3550_v7, %v1944_v31  ;;  %v2402_v7 = vld [vmem:[#allocation6 + $0x20] ss:$0 sm:$0xff] }
 0xd38   :  { %v2237_v41 = vadd.f32 1e-05, %v2234_v36 }
 0xd3a   :  { %3230 = vrsqrt.f32 %v2237_v41 }
 0xd44   :  { %v3231_v54 = vpop.eup %3230 }
 0xd45   :  { %v2240_v55 = vmul.f32 %v3231_v54, %v2236_v43  ;;  %v2239_v58 = vmul.f32 %v3231_v54, %v2235_v27 }
 0xd47   :  { %v2253_v38 = vmul.f32 %v2249_v53, %v2240_v55  ;;  %v2252_v59 = vmul.f32 %v2245_v52, %v2239_v58 }
 0xd49   :  { %v2266_v39 = vadd.f32 %v2262_v57, %v2253_v38  ;;  %v2265_v44 = vadd.f32 %v2258_v56, %v2252_v59 }
 0xd4b   :  { %2342 = vmatprep.mubr.f32.mxu0 %v2266_v39 }
 0xd4c   :  { %2343 = vmatmul.mubr.f32.vlgmr.msra.gmra.mrb[12].mxu0 %v2265_v44 }
 0xe1f   :  { %v2344_v10 = vpop.f32.mrb[12].mxu0 }
 0xe20   :  { %v2345_v45 = vadd.f32 %v2344_v10, %v2271_v40  ;;  %v2346_v61 = vpop.f32.mrb[13].mxu0 }
 0xe21   :  { %v2347_v46 = vadd.f32 %v2346_v61, %v2275_v60 }
 0xe22   :  { %v2349_v51 = vmax.f32 %v2345_v45, 0.0 }
 0xe23   :  { %v2350_v62 = vmax.f32 %v2347_v46, 0.0 }
 0xe24   :  { %v2355_v49 = vmul.f32 %v2349_v51, %v2349_v51 }
 0xe25   :  { %v2351_v50 = vadd.f32 %v2350_v62, %v2349_v51  ;;  %v2356_v0 = vmul.f32 %v2350_v62, %v2350_v62 }
 0xe27   :  { %2352 = vadd.xlane.f32.xlu0 %v2351_v50  ;;  %v2357_v1 = vadd.f32 %v2356_v0, %v2355_v49 }
 0xe29   :  { %2358 = vadd.xlane.f32.xlu1 %v2357_v1 }
 0xeb4   :  { %v2353_v2 = vpop.xlane.xlu0 %2352 }
 0xeb5   :  { %v2354_v4 = vmul.f32 0.00390625, %v2353_v2 }
 0xeb6   :  { %v2359_v5 = vpop.xlane.xlu1 %2358 }
 0xeb7   :  { %v2360_v8 = vmul.f32 0.00390625, %v2359_v5  ;;  %v2361_v6 = vmul.f32 %v2354_v4, %v2354_v4  ;;  %v2364_v22 = vsub.f32 %v2349_v51, %v2354_v4  ;;  %v2365_v23 = vsub.f32 %v2350_v62, %v2354_v4 }
 0xeb9   :  { %v2362_v16 = vsub.f32 %v2360_v8, %v2361_v6 }
 0xebb   :  { %v2363_v9 = vmax.f32 %v2362_v16, 0.0 }
 0xebd   :  { %v2366_v24 = vadd.f32 1e-05, %v2363_v9 }
 0xebf   :  { %3232 = vrsqrt.f32 %v2366_v24 }
 0xec9   :  { %v3233_v29 = vpop.eup %3232 }
 0xeca   :  { %v2368_v32 = vmul.f32 %v3233_v29, %v2364_v22  ;;  %v2369_v33 = vmul.f32 %v3233_v29, %v2365_v23 }
 0xecc   :  { %v2381_v14 = vmul.f32 %v2374_v25, %v2368_v32  ;;  %v2382_v19 = vmul.f32 %v2378_v28, %v2369_v33 }
 0xece   :  { %v2394_v36 = vadd.f32 %v2387_v34, %v2381_v14  ;;  %v2395_v41 = vadd.f32 %v2391_v12, %v2382_v19 }
 0xed0   :  { %v2396_v42 = vadd.f32 %v2394_v36, %v2087_v35  ;;  %v2397_v47 = vadd.f32 %v2395_v41, %v2089_v15 }
 0xed2   :  { %v2398_v27 = vmax.f32 %v2396_v42, 0.0  ;;  %v2399_v43 = vmax.f32 %v2397_v47, 0.0 }
 0xed4   :  { %v2403_v52 = vadd.f32 %v2398_v27, %v3406_v21  ;;  %v2404_v53 = vadd.f32 %v2399_v43, %v3404_v20 }
 0xed6   :  { %v2416_v54 = vmul.f32 %v2409_v48, %v2403_v52  ;;  %v2417_v55 = vmul.f32 %v2413_v63, %v2404_v53 }
 0xed8   :  { %v2418_v3 = vadd.f32 %v2417_v55, %v2416_v54 }
 0xeda   :  { %2419 = vadd.xlane.f32.xlu0 %v2418_v3 }
 0xf67   :  { %v2420_v56 = vpop.xlane.xlu0 %2419 }
 0xf68   :  { %v2421_v57 = vadd.f32 %v2420_v56, %v2402_v7 }
 0xf6a   :  { %2423 = vst.msk [vmem:[%s3609_s4] sm:$0xff] %vm2422_vm4, %v2421_v57 }
 0xf6b   :  { %2428 = vsyncpa [#allocation3], 1 }
 0xf6c   :  { %2429 = vsyncpa [#allocation5], 1 }

</bundles_post_ra>
